<compile_context>
chip_gen: v7x
topology: tpu7x:2x2x1
jax: 0.10.0
libtpu: 0.0.40
codegen_flags: <defaults>
</compile_context>

<pallas_src>
import jax
import jax.numpy as jnp
from jax import lax
from jax.experimental import pallas as pl
from jax.experimental.pallas import tpu as pltpu

EPS = 1e-5
VMEM_LIMIT = 48 * 1024 * 1024   # above the 16/32 MiB scoped defaults, < v7x physical


# ----------------------------------------------------------------------------
# Pass 1: fused [ConvTranspose2d(2,2)+1x1] || [3x3 conv pad=1]
#         -> ReLU -> channel-concat write -> per-image BN partial statistics.
# One grid step = one batch element (whole image resident in VMEM).
# TODO(synk): for large decoder resolutions (v7x, 64 MiB VMEM) this pass needs
# an extra row-strip grid axis with a 1-row halo for the 3x3 conv.
# ----------------------------------------------------------------------------
def _fused_conv_relu_stats_kernel(up_ref, x_ref, wup_ref, bup_ref, w9_ref,
                                  bx_ref, relu_ref, stats_ref, xpad_ref):
    Hu, Wu, Cup = up_ref.shape[1], up_ref.shape[2], up_ref.shape[3]
    Hx, Wx = relu_ref.shape[1], relu_ref.shape[2]
    Cx = x_ref.shape[3]
    Cu = wup_ref.shape[1] // 4      # up-branch output channels
    Cxo = bx_ref.shape[1]           # x-branch output channels

    # ---- up branch: single MXU matmul against the folded (Cup, 4*Cu) weight.
    u = up_ref[0].reshape(Hu * Wu, Cup)
    y = jnp.dot(u, wup_ref[...], preferred_element_type=jnp.float32)
    y = y + bup_ref[...]                                   # (Hu*Wu, 4*Cu)

    # tap interleave (ki,kj) -> (2i+ki, 2j+kj) in VMEM, using only lane-aligned
    # column slices, sublane concats and lane-preserving reshapes.
    half = []
    for ki in range(2):
        a0 = y[:, (2 * ki) * Cu:(2 * ki + 1) * Cu]         # kj = 0
        a1 = y[:, (2 * ki + 1) * Cu:(2 * ki + 2) * Cu]     # kj = 1
        inter = jnp.concatenate([a0.reshape(Hu * Wu, 1, Cu),
                                 a1.reshape(Hu * Wu, 1, Cu)], axis=1)
        half.append(inter.reshape(Hu, 1, Wx, Cu))          # rows (i, w=2j+kj)
    up_out = jnp.concatenate(half, axis=1).reshape(Hx, Wx, Cu)  # rows 2i+ki
    relu_up = jnp.maximum(up_out, 0.0)

    # ---- x branch: 3x3 conv (padding=1) as one im2col matmul, K = 9*Cx.
    xpad_ref[...] = jnp.zeros_like(xpad_ref)               # zero halo
    xpad_ref[1:Hx + 1, 1:Wx + 1, :] = x_ref[0]
    cols = [xpad_ref[di:di + Hx, dj:dj + Wx, :]
            for di in range(3) for dj in range(3)]
    im2col = jnp.concatenate(cols, axis=2).reshape(Hx * Wx, 9 * Cx)
    xb = jnp.dot(im2col, w9_ref[...], preferred_element_type=jnp.float32)
    relu_x = jnp.maximum(xb + bx_ref[...], 0.0)             # (Hx*Wx, Cxo)

    # ---- fused channel-concat write (no XLA concat, no extra HBM round trip)
    relu_ref[0, :, :, 0:Cu] = relu_up.astype(relu_ref.dtype)
    relu_ref[0, :, :, Cu:Cu + Cxo] = relu_x.reshape(Hx, Wx, Cxo).astype(relu_ref.dtype)

    # ---- per-image BatchNorm partial statistics (sum, sum of squares)
    ru = relu_up.reshape(Hx * Wx, Cu)
    s = jnp.concatenate([jnp.sum(ru, axis=0, keepdims=True),
                         jnp.sum(relu_x, axis=0, keepdims=True)], axis=1)
    sq = jnp.concatenate([jnp.sum(ru * ru, axis=0, keepdims=True),
                          jnp.sum(relu_x * relu_x, axis=0, keepdims=True)],
                         axis=1)
    stats_ref[0] = jnp.concatenate([s, sq], axis=0)         # (2, Cu+Cxo)


def fused_conv_relu_stats(up_nhwc, x_nhwc, w4, b4, w9, bx):
    N, Hu, Wu, Cup = up_nhwc.shape
    _, Hx, Wx, Cx = x_nhwc.shape
    assert Hx == 2 * Hu and Wx == 2 * Wu
    Cu = w4.shape[1] // 4
    Cxo = w9.shape[1]
    C = Cu + Cxo

    flops = 2 * N * (Hu * Wu * Cup * 4 * Cu + Hx * Wx * 9 * Cx * Cxo)
    bytes_accessed = 4 * (up_nhwc.size + x_nhwc.size + w4.size + w9.size
                          + N * Hx * Wx * C + N * 2 * C)

    return pl.pallas_call(
        _fused_conv_relu_stats_kernel,
        out_shape=(jax.ShapeDtypeStruct((N, Hx, Wx, C), jnp.float32),
                   jax.ShapeDtypeStruct((N, 2, C), jnp.float32)),
        grid=(N,),
        in_specs=[
            pl.BlockSpec((1, Hu, Wu, Cup), lambda n: (n, 0, 0, 0)),
            pl.BlockSpec((1, Hx, Wx, Cx), lambda n: (n, 0, 0, 0)),
            pl.BlockSpec((Cup, 4 * Cu), lambda n: (0, 0)),
            pl.BlockSpec((1, 4 * Cu), lambda n: (0, 0)),
            pl.BlockSpec((9 * Cx, Cxo), lambda n: (0, 0)),
            pl.BlockSpec((1, Cxo), lambda n: (0, 0)),
        ],
        out_specs=(
            pl.BlockSpec((1, Hx, Wx, C), lambda n: (n, 0, 0, 0)),
            pl.BlockSpec((1, 2, C), lambda n: (n, 0, 0)),
        ),
        scratch_shapes=[pltpu.VMEM((Hx + 2, Wx + 2, Cx), jnp.float32)],
        compiler_params=pltpu.CompilerParams(
            dimension_semantics=("parallel",),
            vmem_limit_bytes=VMEM_LIMIT),
        cost_estimate=pl.CostEstimate(flops=flops, transcendentals=0,
                                      bytes_accessed=bytes_accessed),
    )(up_nhwc, x_nhwc, w4, b4, w9, bx)


# ----------------------------------------------------------------------------
# Pass 2: row-tiled BatchNorm apply  y = x * scale + shift  (ReLU already done)
# ----------------------------------------------------------------------------
def _bn_apply_kernel(x_ref, scale_ref, shift_ref, o_ref):
    o_ref[...] = (x_ref[...] * scale_ref[...] + shift_ref[...]).astype(o_ref.dtype)


def bn_apply(relu_cat, scale, shift, row_tile=256):
    N, Hx, Wx, C = relu_cat.shape
    rows = N * Hx * Wx
    tr = min(rows, row_tile)
    flat = relu_cat.reshape(rows, C)
    out = pl.pallas_call(
        _bn_apply_kernel,
        out_shape=jax.ShapeDtypeStruct((rows, C), relu_cat.dtype),
        grid=(pl.cdiv(rows, tr),),
        in_specs=[
            pl.BlockSpec((tr, C), lambda r: (r, 0)),
            pl.BlockSpec((1, C), lambda r: (0, 0)),
            pl.BlockSpec((1, C), lambda r: (0, 0)),
        ],
        out_specs=pl.BlockSpec((tr, C), lambda r: (r, 0)),
        compiler_params=pltpu.CompilerParams(
            dimension_semantics=("parallel",),
            vmem_limit_bytes=VMEM_LIMIT),
        cost_estimate=pl.CostEstimate(flops=2 * rows * C, transcendentals=0,
                                      bytes_accessed=4 * (2 * rows * C + 2 * C)),
    )(flat, scale.reshape(1, C), shift.reshape(1, C))
    return out.reshape(N, Hx, Wx, C)


# ----------------------------------------------------------------------------
# Module wrapper (NCHW in / NCHW out, matching the PyTorch module)
# ----------------------------------------------------------------------------
def init_params(key, up_in, x_in, n_out):
    up_out = x_out = n_out // 2
    ks = jax.random.split(key, 8)
    return {
        "w_up": 0.1 * jax.random.normal(ks[0], (up_in, up_in, 2, 2), jnp.float32),
        "b_up": 0.1 * jax.random.normal(ks[1], (up_in,), jnp.float32),
        "w1":   0.1 * jax.random.normal(ks[2], (up_out, up_in, 1, 1), jnp.float32),
        "b1":   0.1 * jax.random.normal(ks[3], (up_out,), jnp.float32),
        "wx":   0.1 * jax.random.normal(ks[4], (x_out, x_in, 3, 3), jnp.float32),
        "bx":   0.1 * jax.random.normal(ks[5], (x_out,), jnp.float32),
        "gamma": 1.0 + 0.1 * jax.random.normal(ks[6], (n_out,), jnp.float32),
        "beta":  0.1 * jax.random.normal(ks[7], (n_out,), jnp.float32),
    }


def _prep_weights(p):
    Cup = p["w_up"].shape[0]
    w1_2d = p["w1"][:, :, 0, 0]                        # (Cu, Cup)
    Cu = w1_2d.shape[0]
    # Fold the 1x1 conv into the 2x2 transposed-conv taps, tap-major packing:
    #   w4[c, (ki*2+kj)*Cu + e] = sum_d w_up[c, d, ki, kj] * w1[e, d]
    w4 = jnp.einsum("cdkl,ed->ckle", p["w_up"], w1_2d).reshape(Cup, 4 * Cu)
    b4 = jnp.tile((w1_2d @ p["b_up"] + p["b1"]).reshape(1, Cu), (1, 4))
    # 3x3 conv as im2col weight: w9[(di*3+dj)*Cx + ci, co] = wx[co, ci, di, dj]
    Co, Cx = p["wx"].shape[0], p["wx"].shape[1]
    w9 = jnp.transpose(p["wx"], (2, 3, 1, 0)).reshape(9 * Cx, Co)
    bx = p["bx"].reshape(1, Co)
    return w4, b4, w9, bx


def unet_block_tran(up_p_nchw, x_p_nchw, p):
    """UnetBlock_tran forward (NCHW in / NCHW out, PyTorch train-mode BN)."""
    w4, b4, w9, bx = _prep_weights(p)
    up_nhwc = jnp.transpose(up_p_nchw, (0, 2, 3, 1))
    x_nhwc = jnp.transpose(x_p_nchw, (0, 2, 3, 1))

    relu_cat, stats = fused_conv_relu_stats(up_nhwc, x_nhwc, w4, b4, w9, bx)

    N, Hx, Wx, C = relu_cat.shape
    count = N * Hx * Wx
    tot = jnp.sum(stats, axis=0)                            # tiny (2, C) reduce
    mean = tot[0] / count
    var = jnp.maximum(tot[1] / count - mean * mean, 0.0)    # biased, as PyTorch
    scale = p["gamma"] / jnp.sqrt(var + EPS)
    shift = p["beta"] - mean * scale
    # TODO(synk): BatchNorm running_mean/running_var buffer updates (a training
    # side effect) are not materialized; forward math uses batch stats exactly
    # as PyTorch does in train mode.
    # TODO(synk): on v6e/v7x the relu_cat intermediate could be stored as bf16
    # to halve HBM traffic; kept f32 here for exact parity with the reference.
    out = bn_apply(relu_cat, scale, shift)
    return jnp.transpose(out, (0, 3, 1, 2))                 # back to NCHW


# ----------------------------------------------------------------------------
# Pure-JAX reference (NCHW) for verification
# ----------------------------------------------------------------------------
def reference(up_p, x_p, p):
    N, Cup, H, W = up_p.shape
    t = jnp.einsum("nchw,cdkl->ndhkwl", up_p, p["w_up"]).reshape(N, Cup, 2 * H, 2 * W)
    t = t + p["b_up"][None, :, None, None]
    u = jnp.einsum("ndhw,ed->nehw", t, p["w1"][:, :, 0, 0]) + p["b1"][None, :, None, None]
    xc = lax.conv_general_dilated(x_p, p["wx"], (1, 1), ((1, 1), (1, 1)),
                                  dimension_numbers=("NCHW", "OIHW", "NCHW"))
    xc = xc + p["bx"][None, :, None, None]
    cat = jnp.concatenate([u, xc], axis=1)
    r = jnp.maximum(cat, 0.0)
    mean = jnp.mean(r, axis=(0, 2, 3), keepdims=True)
    var = jnp.mean((r - mean) ** 2, axis=(0, 2, 3), keepdims=True)
    return (r - mean) / jnp.sqrt(var + EPS) * p["gamma"][None, :, None, None] \
        + p["beta"][None, :, None, None]


if __name__ == "__main__":
    # Shapes mirror ResUnet_illum_tran.up2 = UnetBlock_tran(128, 64, 256)
    # at a small spatial size (realistic channel counts keep lanes dense).
    N = 2
    up_in, x_in, n_out = 128, 64, 256
    Hu = Wu = 8                 # up_p spatial (half resolution)
    Hx = Wx = 16                # x_p / output spatial

    key = jax.random.PRNGKey(0)
    k_up, k_x, k_p = jax.random.split(key, 3)
    up_p = jax.random.normal(k_up, (N, up_in, Hu, Wu), jnp.float32)
    x_p = jax.random.normal(k_x, (N, x_in, Hx, Wx), jnp.float32)
    params = init_params(k_p, up_in, x_in, n_out)

    fwd = jax.jit(unet_block_tran)
    out = jax.block_until_ready(fwd(up_p, x_p, params))

    ref = reference(up_p, x_p, params)
    assert out.shape == (N, n_out, Hx, Wx), out.shape
    max_err = float(jnp.max(jnp.abs(out - ref)))
    assert jnp.allclose(out, ref, atol=1e-3, rtol=1e-3), max_err
    print("KERNEL_OK")
</pallas_src>

<mosaic_0001>
module attributes {stable_mosaic.version = 11 : i64} {
  func.func @_bn_apply_kernel(%arg0: i32, %arg1: memref<256x256xf32, #tpu.memory_space<vmem>>, %arg2: memref<1x256xf32, #tpu.memory_space<vmem>>, %arg3: memref<1x256xf32, #tpu.memory_space<vmem>>, %arg4: memref<256x256xf32, #tpu.memory_space<vmem>>) attributes {dimension_semantics = [#tpu.dimension_semantics<parallel>], iteration_bounds = array<i64: 2>, scalar_prefetch = 0 : i64, scratch_operands = 0 : i64, tpu.core_type = #tpu.core_type<tc>, window_params = [{transform_indices = @transform_0, window_bounds = array<i64: 256, 256>}, {pipeline_mode = #tpu.pipeline_mode<synchronous>, transform_indices = @transform_1, window_bounds = array<i64: 1, 256>}, {pipeline_mode = #tpu.pipeline_mode<synchronous>, transform_indices = @transform_2, window_bounds = array<i64: 1, 256>}, {transform_indices = @transform_3, window_bounds = array<i64: 256, 256>}]} {
    %c0 = arith.constant 0 : index
    %c0_0 = arith.constant 0 : index
    %0 = vector.load %arg1[%c0, %c0_0] : memref<256x256xf32, #tpu.memory_space<vmem>>, vector<256x256xf32>
    %c0_1 = arith.constant 0 : index
    %c0_2 = arith.constant 0 : index
    %1 = vector.load %arg2[%c0_1, %c0_2] : memref<1x256xf32, #tpu.memory_space<vmem>>, vector<1x256xf32>
    %2 = vector.broadcast %1 : vector<1x256xf32> to vector<256x256xf32>
    %3 = arith.mulf %0, %2 : vector<256x256xf32>
    %c0_3 = arith.constant 0 : index
    %c0_4 = arith.constant 0 : index
    %4 = vector.load %arg3[%c0_3, %c0_4] : memref<1x256xf32, #tpu.memory_space<vmem>>, vector<1x256xf32>
    %5 = vector.broadcast %4 : vector<1x256xf32> to vector<256x256xf32>
    %6 = arith.addf %3, %5 : vector<256x256xf32>
    %c0_5 = arith.constant 0 : index
    %c0_6 = arith.constant 0 : index
    %7 = vector.load %arg4[%c0_5, %c0_6] : memref<256x256xf32, #tpu.memory_space<vmem>>, vector<256x256xf32>
    tpu.vector_store %arg4[%c0_5, %c0_6], %6 {strides = array<i32>} : memref<256x256xf32, #tpu.memory_space<vmem>>, vector<256x256xf32>,
    return
  }
  func.func @transform_0(%arg0: i32) -> (i32, i32) {
    %c0_i32 = arith.constant 0 : i32
    %c0_i32_0 = arith.constant 0 : i32
    return %arg0, %c0_i32 : i32, i32
  }
  func.func @transform_1(%arg0: i32) -> (i32, i32) {
    %c0_i32 = arith.constant 0 : i32
    %c0_i32_0 = arith.constant 0 : i32
    %c0_i32_1 = arith.constant 0 : i32
    return %c0_i32, %c0_i32_0 : i32, i32
  }
  func.func @transform_2(%arg0: i32) -> (i32, i32) {
    %c0_i32 = arith.constant 0 : i32
    %c0_i32_0 = arith.constant 0 : i32
    %c0_i32_1 = arith.constant 0 : i32
    return %c0_i32, %c0_i32_0 : i32, i32
  }
  func.func @transform_3(%arg0: i32) -> (i32, i32) {
    %c0_i32 = arith.constant 0 : i32
    %c0_i32_0 = arith.constant 0 : i32
    return %arg0, %c0_i32 : i32, i32
  }
}

module attributes {stable_mosaic.version = 11 : i64} {
  func.func @_fused_conv_relu_stats_kernel(%arg0: i32, %arg1: memref<1x8x8x128xf32, #tpu.memory_space<vmem>>, %arg2: memref<1x16x16x64xf32, #tpu.memory_space<vmem>>, %arg3: memref<128x512xf32, #tpu.memory_space<vmem>>, %arg4: memref<1x512xf32, #tpu.memory_space<vmem>>, %arg5: memref<576x128xf32, #tpu.memory_space<vmem>>, %arg6: memref<1x128xf32, #tpu.memory_space<vmem>>, %arg7: memref<1x16x16x256xf32, #tpu.memory_space<vmem>>, %arg8: memref<1x2x256xf32, #tpu.memory_space<vmem>>, %arg9: memref<18x18x64xf32, #tpu.memory_space<vmem>>) attributes {dimension_semantics = [#tpu.dimension_semantics<parallel>], iteration_bounds = array<i64: 2>, scalar_prefetch = 0 : i64, scratch_operands = 1 : i64, tpu.core_type = #tpu.core_type<tc>, window_params = [{transform_indices = @transform_0, window_bounds = array<i64: 1, 8, 8, 128>}, {transform_indices = @transform_1, window_bounds = array<i64: 1, 16, 16, 64>}, {pipeline_mode = #tpu.pipeline_mode<synchronous>, transform_indices = @transform_2, window_bounds = array<i64: 128, 512>}, {pipeline_mode = #tpu.pipeline_mode<synchronous>, transform_indices = @transform_3, window_bounds = array<i64: 1, 512>}, {pipeline_mode = #tpu.pipeline_mode<synchronous>, transform_indices = @transform_4, window_bounds = array<i64: 576, 128>}, {pipeline_mode = #tpu.pipeline_mode<synchronous>, transform_indices = @transform_5, window_bounds = array<i64: 1, 128>}, {transform_indices = @transform_6, window_bounds = array<i64: 1, 16, 16, 256>}, {transform_indices = @transform_7, window_bounds = array<i64: 1, 2, 256>}]} {
    %c0 = arith.constant 0 : index
    %c0_0 = arith.constant 0 : index
    %c0_1 = arith.constant 0 : index
    %c0_2 = arith.constant 0 : index
    %0 = vector.load %arg1[%c0, %c0_0, %c0_1, %c0_2] : memref<1x8x8x128xf32, #tpu.memory_space<vmem>>, vector<1x8x8x128xf32>
    %1 = vector.shape_cast %0 : vector<1x8x8x128xf32> to vector<8x8x128xf32>
    %2 = vector.shape_cast %1 : vector<8x8x128xf32> to vector<64x128xf32>
    %c0_3 = arith.constant 0 : index
    %c0_4 = arith.constant 0 : index
    %3 = vector.load %arg3[%c0_3, %c0_4] : memref<128x512xf32, #tpu.memory_space<vmem>>, vector<128x512xf32>
    %cst = arith.constant dense<0.000000e+00> : vector<64x512xf32>
    %4 = tpu.matmul %2, %3, %cst {dimension_numbers = #tpu.dot_dimension_numbers<[1], [0], [0], [1], [0, 0, 1, 1], [], []>} : vector<64x128xf32>, vector<128x512xf32>, vector<64x512xf32> -> vector<64x512xf32>
    %c0_5 = arith.constant 0 : index
    %c0_6 = arith.constant 0 : index
    %5 = vector.load %arg4[%c0_5, %c0_6] : memref<1x512xf32, #tpu.memory_space<vmem>>, vector<1x512xf32>
    %6 = vector.broadcast %5 : vector<1x512xf32> to vector<64x512xf32>
    %7 = arith.addf %4, %6 : vector<64x512xf32>
    %8 = vector.extract_strided_slice %7 {offsets = [0, 0], sizes = [64, 128], strides = [1, 1]} : vector<64x512xf32> to vector<64x128xf32>
    %9 = vector.extract_strided_slice %7 {offsets = [0, 128], sizes = [64, 128], strides = [1, 1]} : vector<64x512xf32> to vector<64x128xf32>
    %10 = vector.shape_cast %8 : vector<64x128xf32> to vector<64x1x128xf32>
    %11 = vector.shape_cast %9 : vector<64x128xf32> to vector<64x1x128xf32>
    %12 = tpu.concatenate %10, %11 in 1 : vector<64x1x128xf32>, vector<64x1x128xf32> -> vector<64x2x128xf32>
    %13 = vector.shape_cast %12 : vector<64x2x128xf32> to vector<8x1x16x128xf32>
    %14 = vector.extract_strided_slice %7 {offsets = [0, 256], sizes = [64, 128], strides = [1, 1]} : vector<64x512xf32> to vector<64x128xf32>
    %15 = vector.extract_strided_slice %7 {offsets = [0, 384], sizes = [64, 128], strides = [1, 1]} : vector<64x512xf32> to vector<64x128xf32>
    %16 = vector.shape_cast %14 : vector<64x128xf32> to vector<64x1x128xf32>
    %17 = vector.shape_cast %15 : vector<64x128xf32> to vector<64x1x128xf32>
    %18 = tpu.concatenate %16, %17 in 1 : vector<64x1x128xf32>, vector<64x1x128xf32> -> vector<64x2x128xf32>
    %19 = vector.shape_cast %18 : vector<64x2x128xf32> to vector<8x1x16x128xf32>
    %20 = tpu.concatenate %13, %19 in 1 : vector<8x1x16x128xf32>, vector<8x1x16x128xf32> -> vector<8x2x16x128xf32>
    %21 = vector.shape_cast %20 : vector<8x2x16x128xf32> to vector<16x16x128xf32>
    %cst_7 = arith.constant 0.000000e+00 : f32
    %22 = vector.broadcast %cst_7 : f32 to vector<16x16x128xf32>
    %23 = arith.maximumf %21, %22 : vector<16x16x128xf32>
    %cst_8 = arith.constant 0.000000e+00 : f32
    %24 = vector.broadcast %cst_8 : f32 to vector<18x18x64xf32>
    %c0_9 = arith.constant 0 : index
    %c0_10 = arith.constant 0 : index
    %c0_11 = arith.constant 0 : index
    %25 = vector.load %arg9[%c0_9, %c0_10, %c0_11] : memref<18x18x64xf32, #tpu.memory_space<vmem>>, vector<18x18x64xf32>
    tpu.vector_store %arg9[%c0_9, %c0_10, %c0_11], %24 {strides = array<i32>} : memref<18x18x64xf32, #tpu.memory_space<vmem>>, vector<18x18x64xf32>,
    %c0_12 = arith.constant 0 : index
    %c0_13 = arith.constant 0 : index
    %c0_14 = arith.constant 0 : index
    %c0_15 = arith.constant 0 : index
    %26 = vector.load %arg2[%c0_12, %c0_13, %c0_14, %c0_15] : memref<1x16x16x64xf32, #tpu.memory_space<vmem>>, vector<1x16x16x64xf32>
    %27 = vector.shape_cast %26 : vector<1x16x16x64xf32> to vector<16x16x64xf32>
    %c1 = arith.constant 1 : index
    %c1_16 = arith.constant 1 : index
    %c0_17 = arith.constant 0 : index
    %28 = vector.load %arg9[%c1, %c1_16, %c0_17] : memref<18x18x64xf32, #tpu.memory_space<vmem>>, vector<16x16x64xf32>
    tpu.vector_store %arg9[%c1, %c1_16, %c0_17], %27 {strides = array<i32>} : memref<18x18x64xf32, #tpu.memory_space<vmem>>, vector<16x16x64xf32>,
    %c0_18 = arith.constant 0 : index
    %c0_19 = arith.constant 0 : index
    %c0_20 = arith.constant 0 : index
    %29 = vector.load %arg9[%c0_18, %c0_19, %c0_20] : memref<18x18x64xf32, #tpu.memory_space<vmem>>, vector<16x16x64xf32>
    %c0_21 = arith.constant 0 : index
    %c1_22 = arith.constant 1 : index
    %c0_23 = arith.constant 0 : index
    %30 = vector.load %arg9[%c0_21, %c1_22, %c0_23] : memref<18x18x64xf32, #tpu.memory_space<vmem>>, vector<16x16x64xf32>
    %c0_24 = arith.constant 0 : index
    %c2 = arith.constant 2 : index
    %c0_25 = arith.constant 0 : index
    %31 = vector.load %arg9[%c0_24, %c2, %c0_25] : memref<18x18x64xf32, #tpu.memory_space<vmem>>, vector<16x16x64xf32>
    %c1_26 = arith.constant 1 : index
    %c0_27 = arith.constant 0 : index
    %c0_28 = arith.constant 0 : index
    %32 = vector.load %arg9[%c1_26, %c0_27, %c0_28] : memref<18x18x64xf32, #tpu.memory_space<vmem>>, vector<16x16x64xf32>
    %c1_29 = arith.constant 1 : index
    %c1_30 = arith.constant 1 : index
    %c0_31 = arith.constant 0 : index
    %33 = vector.load %arg9[%c1_29, %c1_30, %c0_31] : memref<18x18x64xf32, #tpu.memory_space<vmem>>, vector<16x16x64xf32>
    %c1_32 = arith.constant 1 : index
    %c2_33 = arith.constant 2 : index
    %c0_34 = arith.constant 0 : index
    %34 = vector.load %arg9[%c1_32, %c2_33, %c0_34] : memref<18x18x64xf32, #tpu.memory_space<vmem>>, vector<16x16x64xf32>
    %c2_35 = arith.constant 2 : index
    %c0_36 = arith.constant 0 : index
    %c0_37 = arith.constant 0 : index
    %35 = vector.load %arg9[%c2_35, %c0_36, %c0_37] : memref<18x18x64xf32, #tpu.memory_space<vmem>>, vector<16x16x64xf32>
    %c2_38 = arith.constant 2 : index
    %c1_39 = arith.constant 1 : index
    %c0_40 = arith.constant 0 : index
    %36 = vector.load %arg9[%c2_38, %c1_39, %c0_40] : memref<18x18x64xf32, #tpu.memory_space<vmem>>, vector<16x16x64xf32>
    %c2_41 = arith.constant 2 : index
    %c2_42 = arith.constant 2 : index
    %c0_43 = arith.constant 0 : index
    %37 = vector.load %arg9[%c2_41, %c2_42, %c0_43] : memref<18x18x64xf32, #tpu.memory_space<vmem>>, vector<16x16x64xf32>
    %38 = tpu.concatenate %29, %30, %31, %32, %33, %34, %35, %36, %37 in 2 : vector<16x16x64xf32>, vector<16x16x64xf32>, vector<16x16x64xf32>, vector<16x16x64xf32>, vector<16x16x64xf32>, vector<16x16x64xf32>, vector<16x16x64xf32>, vector<16x16x64xf32>, vector<16x16x64xf32> -> vector<16x16x576xf32>
    %39 = vector.shape_cast %38 : vector<16x16x576xf32> to vector<256x576xf32>
    %c0_44 = arith.constant 0 : index
    %c0_45 = arith.constant 0 : index
    %40 = vector.load %arg5[%c0_44, %c0_45] : memref<576x128xf32, #tpu.memory_space<vmem>>, vector<576x128xf32>
    %cst_46 = arith.constant dense<0.000000e+00> : vector<256x128xf32>
    %41 = tpu.matmul %39, %40, %cst_46 {dimension_numbers = #tpu.dot_dimension_numbers<[1], [0], [0], [1], [0, 0, 1, 1], [], []>} : vector<256x576xf32>, vector<576x128xf32>, vector<256x128xf32> -> vector<256x128xf32>
    %c0_47 = arith.constant 0 : index
    %c0_48 = arith.constant 0 : index
    %42 = vector.load %arg6[%c0_47, %c0_48] : memref<1x128xf32, #tpu.memory_space<vmem>>, vector<1x128xf32>
    %43 = vector.broadcast %42 : vector<1x128xf32> to vector<256x128xf32>
    %44 = arith.addf %41, %43 : vector<256x128xf32>
    %cst_49 = arith.constant 0.000000e+00 : f32
    %45 = vector.broadcast %cst_49 : f32 to vector<256x128xf32>
    %46 = arith.maximumf %44, %45 : vector<256x128xf32>
    %c0_50 = arith.constant 0 : index
    %c0_51 = arith.constant 0 : index
    %c0_52 = arith.constant 0 : index
    %c0_53 = arith.constant 0 : index
    %47 = vector.load %arg7[%c0_50, %c0_51, %c0_52, %c0_53] : memref<1x16x16x256xf32, #tpu.memory_space<vmem>>, vector<1x16x16x128xf32>
    %48 = vector.shape_cast %47 : vector<1x16x16x128xf32> to vector<16x16x128xf32>
    %49 = vector.shape_cast %23 : vector<16x16x128xf32> to vector<1x16x16x128xf32>
    tpu.vector_store %arg7[%c0_50, %c0_51, %c0_52, %c0_53], %49 {strides = array<i32>} : memref<1x16x16x256xf32, #tpu.memory_space<vmem>>, vector<1x16x16x128xf32>,
    %50 = vector.shape_cast %46 : vector<256x128xf32> to vector<16x16x128xf32>
    %c0_54 = arith.constant 0 : index
    %c0_55 = arith.constant 0 : index
    %c0_56 = arith.constant 0 : index
    %c128 = arith.constant 128 : index
    %51 = vector.load %arg7[%c0_54, %c0_55, %c0_56, %c128] : memref<1x16x16x256xf32, #tpu.memory_space<vmem>>, vector<1x16x16x128xf32>
    %52 = vector.shape_cast %51 : vector<1x16x16x128xf32> to vector<16x16x128xf32>
    %53 = vector.shape_cast %50 : vector<16x16x128xf32> to vector<1x16x16x128xf32>
    tpu.vector_store %arg7[%c0_54, %c0_55, %c0_56, %c128], %53 {strides = array<i32>} : memref<1x16x16x256xf32, #tpu.memory_space<vmem>>, vector<1x16x16x128xf32>,
    %54 = vector.shape_cast %23 : vector<16x16x128xf32> to vector<256x128xf32>
    %cst_57 = arith.constant dense<0.000000e+00> : vector<128xf32>
    %55 = vector.multi_reduction <add>, %54, %cst_57 [0] : vector<256x128xf32> to vector<128xf32>
    %56 = vector.shape_cast %55 : vector<128xf32> to vector<1x128xf32>
    %cst_58 = arith.constant dense<0.000000e+00> : vector<128xf32>
    %57 = vector.multi_reduction <add>, %46, %cst_58 [0] : vector<256x128xf32> to vector<128xf32>
    %58 = vector.shape_cast %57 : vector<128xf32> to vector<1x128xf32>
    %59 = tpu.concatenate %56, %58 in 1 : vector<1x128xf32>, vector<1x128xf32> -> vector<1x256xf32>
    %60 = arith.mulf %54, %54 : vector<256x128xf32>
    %cst_59 = arith.constant dense<0.000000e+00> : vector<128xf32>
    %61 = vector.multi_reduction <add>, %60, %cst_59 [0] : vector<256x128xf32> to vector<128xf32>
    %62 = vector.shape_cast %61 : vector<128xf32> to vector<1x128xf32>
    %63 = arith.mulf %46, %46 : vector<256x128xf32>
    %cst_60 = arith.constant dense<0.000000e+00> : vector<128xf32>
    %64 = vector.multi_reduction <add>, %63, %cst_60 [0] : vector<256x128xf32> to vector<128xf32>
    %65 = vector.shape_cast %64 : vector<128xf32> to vector<1x128xf32>
    %66 = tpu.concatenate %62, %65 in 1 : vector<1x128xf32>, vector<1x128xf32> -> vector<1x256xf32>
    %67 = tpu.concatenate %59, %66 in 0 : vector<1x256xf32>, vector<1x256xf32> -> vector<2x256xf32>
    %c0_61 = arith.constant 0 : index
    %c0_62 = arith.constant 0 : index
    %c0_63 = arith.constant 0 : index
    %68 = vector.load %arg8[%c0_61, %c0_62, %c0_63] : memref<1x2x256xf32, #tpu.memory_space<vmem>>, vector<1x2x256xf32>
    %69 = vector.shape_cast %68 : vector<1x2x256xf32> to vector<2x256xf32>
    %70 = vector.shape_cast %67 : vector<2x256xf32> to vector<1x2x256xf32>
    tpu.vector_store %arg8[%c0_61, %c0_62, %c0_63], %70 {strides = array<i32>} : memref<1x2x256xf32, #tpu.memory_space<vmem>>, vector<1x2x256xf32>,
    return
  }
  func.func @transform_0(%arg0: i32) -> (i32, i32, i32, i32) {
    %c0_i32 = arith.constant 0 : i32
    %c0_i32_0 = arith.constant 0 : i32
    %c0_i32_1 = arith.constant 0 : i32
    %c0_i32_2 = arith.constant 0 : i32
    return %arg0, %c0_i32, %c0_i32_0, %c0_i32_1 : i32, i32, i32, i32
  }
  func.func @transform_1(%arg0: i32) -> (i32, i32, i32, i32) {
    %c0_i32 = arith.constant 0 : i32
    %c0_i32_0 = arith.constant 0 : i32
    %c0_i32_1 = arith.constant 0 : i32
    %c0_i32_2 = arith.constant 0 : i32
    return %arg0, %c0_i32, %c0_i32_0, %c0_i32_1 : i32, i32, i32, i32
  }
  func.func @transform_2(%arg0: i32) -> (i32, i32) {
    %c0_i32 = arith.constant 0 : i32
    %c0_i32_0 = arith.constant 0 : i32
    %c0_i32_1 = arith.constant 0 : i32
    return %c0_i32, %c0_i32_0 : i32, i32
  }
  func.func @transform_3(%arg0: i32) -> (i32, i32) {
    %c0_i32 = arith.constant 0 : i32
    %c0_i32_0 = arith.constant 0 : i32
    %c0_i32_1 = arith.constant 0 : i32
    return %c0_i32, %c0_i32_0 : i32, i32
  }
  func.func @transform_4(%arg0: i32) -> (i32, i32) {
    %c0_i32 = arith.constant 0 : i32
    %c0_i32_0 = arith.constant 0 : i32
    %c0_i32_1 = arith.constant 0 : i32
    return %c0_i32, %c0_i32_0 : i32, i32
  }
  func.func @transform_5(%arg0: i32) -> (i32, i32) {
    %c0_i32 = arith.constant 0 : i32
    %c0_i32_0 = arith.constant 0 : i32
    %c0_i32_1 = arith.constant 0 : i32
    return %c0_i32, %c0_i32_0 : i32, i32
  }
  func.func @transform_6(%arg0: i32) -> (i32, i32, i32, i32) {
    %c0_i32 = arith.constant 0 : i32
    %c0_i32_0 = arith.constant 0 : i32
    %c0_i32_1 = arith.constant 0 : i32
    %c0_i32_2 = arith.constant 0 : i32
    return %arg0, %c0_i32, %c0_i32_0, %c0_i32_1 : i32, i32, i32, i32
  }
  func.func @transform_7(%arg0: i32) -> (i32, i32, i32) {
    %c0_i32 = arith.constant 0 : i32
    %c0_i32_0 = arith.constant 0 : i32
    %c0_i32_1 = arith.constant 0 : i32
    return %arg0, %c0_i32, %c0_i32_0 : i32, i32, i32
  }
}

</mosaic_0001>

<bundles_post_ra>
// kernel: unet_block_tran.3
= control target key start
LH: loop header
LB: loop body
LE: loop exit
PB: predicated region body
PF: predicated region fallthrough
CT: control target
= control target key end

     0   :  { %8 = vsyncpa [#allocation3], 0  ;;  %s1061_s0 = inlined_call_operand.vmem [shape: f32[512,256], index: 0, kind: input, shape index: {}]   ;;  %s1062_s1 = inlined_call_operand.vmem [shape: f32[1,256], index: 1, kind: input, shape index: {}]   ;;  %s1063_s2 = inlined_call_operand.vmem [shape: f32[1,256], index: 2, kind: input, shape index: {}]   ;;  %s1064_s3 = inlined_call_operand.hbm [shape: f32[512,256], index: 3, kind: output, shape index: {}]  }
   0x1   :  { %10 = vsyncpa [#allocation3 + $0x1], 0  ;;  %s677_s12 = smov 0   ;;  %s679_s13 = smov 0  }
   0x2   :  { %s681_s14 = smov 0   ;;  %s683_s15 = smov 0  }
   0x3 LB: > { %s698_s16 = sadd.s32 4294967295, %s652_s15   ;;  %s532_s17 = sadd.s32 4294967294, %s652_s15   ;;  %s652_s15 = sphi %s683_s15, %s1070_s15   ;;  %s648_s14 = sphi %s681_s14, %s1069_s14   ;;  %s644_s13 = sphi %s679_s13, %s1068_s13   ;;  %s640_s12 = sphi %s677_s12, %s1067_s12  }
   0x4   : > { %s702_s18 = sadd.s32 1, %s652_s15   ;;  %s91_s19 = sadd.s32 1, %s648_s14 }
   0x5   : > { %s88_s20 = ssub.s32 %s652_s15, %s702_s18  ;;  %p101_p0 = scmp.ne.s32.totalorder %s648_s14, %s644_s13 }
   0x6   : > { %p89_p1 = scmp.eq.s32.totalorder %s88_s20, 0  ;;  %p102_p2 = scmp.eq.s32.totalorder %s698_s16, 1 }
   0x7   : > { %p107_p3 = scmp.ne.s32.totalorder %s644_s13, %s640_s12  ;;  %p108_p4 = scmp.eq.s32.totalorder %s532_s17, 1 }
   0x8   : > { %s713_s21 = scalar_select %p89_p1, %s648_s14, %s91_s19  }
   0x9   : > { %p715_p5 = por %p102_p2, %p101_p0  ;;  %p719_p6 = por %p108_p4, %p107_p3 }
   0xa   : > { %p535_p7 = scmp.ge.s32.totalorder %s652_s15, 1  ;;  %p142_p8 = scmp.lt.s32.totalorder %s652_s15, 3 }
   0xc   : > { %p143_p9 = pnand %p535_p7, %p142_p8 }
   0xd   : > { %s537_s24 = sshll.u32 (!%p143_p9), %s698_s16, 5  ;;  %v241_v0 = vlaneseq (!%p143_p9)  ;;  %s164_s25 = sand.u32 (!%p143_p9), 1, %s644_s13   ;;  %v239_v2 = vld [vmem:[%s1062_s1] sm:$0x3] (!%p143_p9) }
   0xe   : > { %146 = sbr.rel (%p143_p9) target bundleno = 81 (0x51), region = 32  ;;  %p168_p10 = scmp.lt.s32.totalorder (!%p143_p9), %s537_s24, 63  ;;  %v315_v3 = vld [vmem:[%s1063_s2] sm:$0x3] (!%p143_p9) }
   0xf   : > { %v242_v1 = vshrl.u32 (!%p143_p9), %v241_v0, 7  ;;  %s735_s4 = sshll.u32 (!%p143_p9), %s164_s25, 9  ;;  %s548_s9 = sshll.u32 (!%p143_p9), %s698_s16, 13 }
  0x10   : > { %s780_s8 = scalar_lea.vmem (!%p143_p9), [#allocation2], %s735_s4  ;;  %s1008_s17 = scalar_lea.hbm (!%p143_p9), %s1064_s3, %s548_s9 }
  0x11   : > { %v243_v4 = vsub.s32 (!%p143_p9), 0, %v242_v1  ;;  %v247_v5 = vsub.s32 (!%p143_p9), 1, %v242_v1  ;;  %s470_s10 = sshll.u32 (!%p143_p9), %s780_s8, 4  ;;  %s1020_s19 = scalar_lea.sflag (!%p143_p9), [#allocation3], %s164_s25  ;;  %s1010_s10 = int_to_ptr.vmem [resolvable:$true] %s470_s10 }
  0x12   : > { %s590_s20 = scalar_lea.vmem (!%p143_p9), %s1010_s10, 8192 }
  0x13   : > { %v742_v6 = vrot.slane (!%p143_p9), %v239_v2, %v243_v4  ;;  %v744_v7 = vrot.slane (!%p143_p9), %v315_v3, %v243_v4  ;;  %v746_v8 = vrot.slane (!%p143_p9), %v239_v2, %v247_v5  ;;  %v748_v9 = vrot.slane (!%p143_p9), %v315_v3, %v247_v5  ;;  %p591_p11 = scmp.ne.s32.totalorder (!%p143_p9), %s1010_s10, %s590_s20 }
  0x15   : > { %s1072_s24 = smov (!%p168_p10, %s537_s24), 63  ;;  %p592_p12 = pnand %p591_p11, %p715_p5 }
  0x16   : > { %s546_s30 = sshll.u32 %s1072_s24, 4  ;;  %s654_s24 = smov [#allocation2]  }
  0x17   : > { %s740_s7 = scalar_lea.vmem %s1061_s0, %s546_s30  ;;  %p593_p13 = pneg %p592_p12 }
  0x18   : > { %v175_v10 = vld [vmem:[%s740_s7] sm:$0xff]  ;;  %v176_v11 = vld [vmem:[%s740_s7 + $0x8] sm:$0xff]  ;;  %v177_v12 = vld [vmem:[%s740_s7 + $0x10] sm:$0xff]  ;;  %s594_s26 = sshll.u32 %s654_s24, 4  ;;  %s595_s26 = int_to_ptr.vmem [resolvable:$false] %s594_s26 }
  0x19   : > { %v251_v13 = vmul.f32 %v742_v6, %v175_v10  ;;  %v252_v14 = vmul.f32 %v746_v8, %v176_v11  ;;  %v253_v15 = vmul.f32 %v742_v6, %v177_v12  ;;  %v178_v16 = vld [vmem:[%s740_s7 + $0x18] sm:$0xff]  ;;  %v179_v17 = vld [vmem:[%s740_s7 + $0x20] sm:$0xff]  ;;  %v180_v18 = vld [vmem:[%s740_s7 + $0x28] sm:$0xff]  ;;  %s596_s27 = scalar_lea.vmem %s595_s26, 16384  ;;  %p597_p0 = scmp.lt.s32.totalorder %s1010_s10, %s595_s26 }
  0x1a   : > { %v254_v19 = vmul.f32 %v746_v8, %v178_v16  ;;  %v255_v20 = vmul.f32 %v742_v6, %v179_v17  ;;  %v256_v21 = vmul.f32 %v746_v8, %v180_v18  ;;  %v181_v22 = vld [vmem:[%s740_s7 + $0x30] sm:$0xff]  ;;  %v182_v23 = vld [vmem:[%s740_s7 + $0x38] sm:$0xff]  ;;  %v183_v24 = vld [vmem:[%s740_s7 + $0x40] sm:$0xff]  ;;  %p598_p1 = scmp.lt.s32.totalorder %s596_s27, %s590_s20 }
  0x1b   : > { %v327_v25 = vadd.f32 %v744_v7, %v251_v13  ;;  %v328_v26 = vadd.f32 %v748_v9, %v252_v14  ;;  %v329_v27 = vadd.f32 %v744_v7, %v253_v15  ;;  %v257_v28 = vmul.f32 %v742_v6, %v181_v22  ;;  %v184_v29 = vld [vmem:[%s740_s7 + $0x48] sm:$0xff]  ;;  %v185_v30 = vld [vmem:[%s740_s7 + $0x50] sm:$0xff]  ;;  %v186_v31 = vld [vmem:[%s740_s7 + $0x58] sm:$0xff] }
  0x1c   : > { %v330_v32 = vadd.f32 %v748_v9, %v254_v19  ;;  %v331_v33 = vadd.f32 %v744_v7, %v255_v20  ;;  %v332_v34 = vadd.f32 %v748_v9, %v256_v21  ;;  %v258_v35 = vmul.f32 %v746_v8, %v182_v23  ;;  %v187_v36 = vld [vmem:[%s740_s7 + $0x60] sm:$0xff]  ;;  %v188_v37 = vld [vmem:[%s740_s7 + $0x68] sm:$0xff]  ;;  %v189_v38 = vld [vmem:[%s740_s7 + $0x70] sm:$0xff]  ;;  %p599_p2 = por %p598_p1, %p597_p0 }
  0x1d   : > { %391 = vst [vmem:[%s780_s8] sm:$0xff] %v327_v25  ;;  %392 = vst [vmem:[%s780_s8 + $0x8] sm:$0xff] %v328_v26  ;;  %v333_v39 = vadd.f32 %v744_v7, %v257_v28  ;;  %v259_v40 = vmul.f32 %v742_v6, %v183_v24  ;;  %v260_v41 = vmul.f32 %v746_v8, %v184_v29  ;;  %v190_v43 = vld [vmem:[%s740_s7 + $0x78] sm:$0xff]  ;;  %v191_v48 = vld [vmem:[%s740_s7 + $0x80] sm:$0xff] }
  0x1e   : > { %393 = vst [vmem:[%s780_s8 + $0x10] sm:$0xff] %v329_v27  ;;  %v261_v42 = vmul.f32 %v742_v6, %v185_v30  ;;  %394 = vst [vmem:[%s780_s8 + $0x18] sm:$0xff] %v330_v32  ;;  %v334_v44 = vadd.f32 %v748_v9, %v258_v35  ;;  %v262_v45 = vmul.f32 %v746_v8, %v186_v31  ;;  %v192_v49 = vld [vmem:[%s740_s7 + $0x88] sm:$0xff]  ;;  %v193_v50 = vld [vmem:[%s740_s7 + $0x90] sm:$0xff]  ;;  %p600_p3 = pnand %p599_p2, %p593_p13 }
  0x1f   : > { %395 = vst [vmem:[%s780_s8 + $0x20] sm:$0xff] %v331_v33  ;;  %396 = vst [vmem:[%s780_s8 + $0x28] sm:$0xff] %v332_v34  ;;  %v263_v46 = vmul.f32 %v742_v6, %v187_v36  ;;  %v264_v47 = vmul.f32 %v746_v8, %v188_v37  ;;  %v335_v51 = vadd.f32 %v744_v7, %v259_v40  ;;  %v194_v55 = vld [vmem:[%s740_s7 + $0x98] sm:$0xff]  ;;  %v195_v56 = vld [vmem:[%s740_s7 + $0xa0] sm:$0xff] }
  0x20   : > { %397 = vst [vmem:[%s780_s8 + $0x30] sm:$0xff] %v333_v39  ;;  %v336_v52 = vadd.f32 %v748_v9, %v260_v41  ;;  %v337_v53 = vadd.f32 %v744_v7, %v261_v42  ;;  %v265_v54 = vmul.f32 %v742_v6, %v189_v38  ;;  %v196_v57 = vld [vmem:[%s740_s7 + $0xa8] sm:$0xff]  ;;  %398 = vst [vmem:[%s780_s8 + $0x38] sm:$0xff] %v334_v44  ;;  %v197_v62 = vld [vmem:[%s740_s7 + $0xb0] sm:$0xff] }
  0x21   : > { %v338_v58 = vadd.f32 %v748_v9, %v262_v45  ;;  %v339_v59 = vadd.f32 %v744_v7, %v263_v46  ;;  %v340_v60 = vadd.f32 %v748_v9, %v264_v47  ;;  %v266_v61 = vmul.f32 %v746_v8, %v190_v43  ;;  %399 = vst [vmem:[%s780_s8 + $0x40] sm:$0xff] %v335_v51  ;;  %v198_v3 = vld [vmem:[%s740_s7 + $0xb8] sm:$0xff]  ;;  %v199_v12 = vld [vmem:[%s740_s7 + $0xc0] sm:$0xff]  ;;  %v200_v13 = vld [vmem:[%s740_s7 + $0xc8] sm:$0xff] }
  0x22   : > { %400 = vst [vmem:[%s780_s8 + $0x48] sm:$0xff] %v336_v52  ;;  %401 = vst [vmem:[%s780_s8 + $0x50] sm:$0xff] %v337_v53  ;;  %v341_v63 = vadd.f32 %v744_v7, %v265_v54  ;;  %v267_v0 = vmul.f32 %v742_v6, %v191_v48  ;;  %v268_v1 = vmul.f32 %v746_v8, %v192_v49  ;;  %v201_v14 = vld [vmem:[%s740_s7 + $0xd0] sm:$0xff]  ;;  %v202_v19 = vld [vmem:[%s740_s7 + $0xd8] sm:$0xff] }
  0x23   : > { %v269_v2 = vmul.f32 %v742_v6, %v193_v50  ;;  %402 = vst [vmem:[%s780_s8 + $0x58] sm:$0xff] %v338_v58  ;;  %403 = vst [vmem:[%s780_s8 + $0x60] sm:$0xff] %v339_v59  ;;  %v342_v4 = vadd.f32 %v748_v9, %v266_v61  ;;  %v270_v5 = vmul.f32 %v746_v8, %v194_v55  ;;  %v203_v20 = vld [vmem:[%s740_s7 + $0xe0] sm:$0xff]  ;;  %v204_v21 = vld [vmem:[%s740_s7 + $0xe8] sm:$0xff] }
  0x24   : > { %404 = vst [vmem:[%s780_s8 + $0x68] sm:$0xff] %v340_v60  ;;  %v271_v10 = vmul.f32 %v742_v6, %v195_v56  ;;  %v272_v11 = vmul.f32 %v746_v8, %v196_v57  ;;  %405 = vst [vmem:[%s780_s8 + $0x70] sm:$0xff] %v341_v63  ;;  %v343_v15 = vadd.f32 %v744_v7, %v267_v0  ;;  %v205_v26 = vld [vmem:[%s740_s7 + $0xf0] sm:$0xff]  ;;  %v206_v31 = vld [vmem:[%s740_s7 + $0xf8] sm:$0xff] }
  0x25   : > { %v344_v16 = vadd.f32 %v748_v9, %v268_v1  ;;  %v345_v17 = vadd.f32 %v744_v7, %v269_v2  ;;  %v273_v18 = vmul.f32 %v742_v6, %v197_v62  ;;  %406 = vst [vmem:[%s780_s8 + $0x78] sm:$0xff] %v342_v4  ;;  %v346_v22 = vadd.f32 %v748_v9, %v270_v5  ;;  %v207_v36 = vld [vmem:[%s740_s7 + $0x100] sm:$0xff]  ;;  %v208_v37 = vld [vmem:[%s740_s7 + $0x108] sm:$0xff]  ;;  %v209_v38 = vld [vmem:[%s740_s7 + $0x110] sm:$0xff] }
  0x26   : > { %v347_v23 = vadd.f32 %v744_v7, %v271_v10  ;;  %v348_v24 = vadd.f32 %v748_v9, %v272_v11  ;;  %v274_v25 = vmul.f32 %v746_v8, %v198_v3  ;;  %407 = vst [vmem:[%s780_s8 + $0x80] sm:$0xff] %v343_v15  ;;  %v275_v28 = vmul.f32 %v742_v6, %v199_v12  ;;  %v210_v43 = vld [vmem:[%s740_s7 + $0x118] sm:$0xff]  ;;  %v211_v44 = vld [vmem:[%s740_s7 + $0x120] sm:$0xff]  ;;  %v212_v45 = vld [vmem:[%s740_s7 + $0x128] sm:$0xff] }
  0x27   : > { %408 = vst [vmem:[%s780_s8 + $0x88] sm:$0xff] %v344_v16  ;;  %409 = vst [vmem:[%s780_s8 + $0x90] sm:$0xff] %v345_v17  ;;  %v349_v27 = vadd.f32 %v744_v7, %v273_v18  ;;  %v276_v29 = vmul.f32 %v746_v8, %v200_v13  ;;  %v277_v30 = vmul.f32 %v742_v6, %v201_v14  ;;  %v213_v50 = vld [vmem:[%s740_s7 + $0x130] sm:$0xff]  ;;  %v214_v55 = vld [vmem:[%s740_s7 + $0x138] sm:$0xff] }
  0x28   : > { %410 = vst [vmem:[%s780_s8 + $0x98] sm:$0xff] %v346_v22  ;;  %411 = vst [vmem:[%s780_s8 + $0xa0] sm:$0xff] %v347_v23  ;;  %v350_v32 = vadd.f32 %v748_v9, %v274_v25  ;;  %v278_v33 = vmul.f32 %v746_v8, %v202_v19  ;;  %v279_v34 = vmul.f32 %v742_v6, %v203_v20  ;;  %v215_v60 = vld [vmem:[%s740_s7 + $0x140] sm:$0xff]  ;;  %v216_v61 = vld [vmem:[%s740_s7 + $0x148] sm:$0xff] }
  0x29   : > { %412 = vst [vmem:[%s780_s8 + $0xa8] sm:$0xff] %v348_v24  ;;  %v280_v35 = vmul.f32 %v746_v8, %v204_v21  ;;  %413 = vst [vmem:[%s780_s8 + $0xb0] sm:$0xff] %v349_v27  ;;  %v351_v39 = vadd.f32 %v744_v7, %v275_v28  ;;  %v352_v40 = vadd.f32 %v748_v9, %v276_v29  ;;  %v217_v62 = vld [vmem:[%s740_s7 + $0x150] sm:$0xff]  ;;  %v218_v3 = vld [vmem:[%s740_s7 + $0x158] sm:$0xff] }
  0x2a   : > { %v353_v41 = vadd.f32 %v744_v7, %v277_v30  ;;  %v281_v42 = vmul.f32 %v742_v6, %v205_v26  ;;  %414 = vst [vmem:[%s780_s8 + $0xb8] sm:$0xff] %v350_v32  ;;  %v354_v46 = vadd.f32 %v748_v9, %v278_v33  ;;  %v355_v47 = vadd.f32 %v744_v7, %v279_v34  ;;  %v219_v4 = vld [vmem:[%s740_s7 + $0x160] sm:$0xff]  ;;  %v220_v5 = vld [vmem:[%s740_s7 + $0x168] sm:$0xff]  ;;  %v221_v14 = vld [vmem:[%s740_s7 + $0x170] sm:$0xff] }
  0x2b   : > { %v356_v48 = vadd.f32 %v748_v9, %v280_v35  ;;  %v282_v49 = vmul.f32 %v746_v8, %v206_v31  ;;  %415 = vst [vmem:[%s780_s8 + $0xc0] sm:$0xff] %v351_v39  ;;  %416 = vst [vmem:[%s780_s8 + $0xc8] sm:$0xff] %v352_v40  ;;  %v283_v52 = vmul.f32 %v742_v6, %v207_v36  ;;  %v222_v19 = vld [vmem:[%s740_s7 + $0x178] sm:$0xff]  ;;  %v223_v24 = vld [vmem:[%s740_s7 + $0x180] sm:$0xff] }
  0x2c   : > { %417 = vst [vmem:[%s780_s8 + $0xd0] sm:$0xff] %v353_v41  ;;  %v357_v51 = vadd.f32 %v744_v7, %v281_v42  ;;  %v284_v53 = vmul.f32 %v746_v8, %v208_v37  ;;  %v285_v54 = vmul.f32 %v742_v6, %v209_v38  ;;  %418 = vst [vmem:[%s780_s8 + $0xd8] sm:$0xff] %v354_v46  ;;  %v224_v25 = vld [vmem:[%s740_s7 + $0x188] sm:$0xff]  ;;  %v225_v26 = vld [vmem:[%s740_s7 + $0x190] sm:$0xff] }
  0x2d   : > { %419 = vst [vmem:[%s780_s8 + $0xe0] sm:$0xff] %v355_v47  ;;  %420 = vst [vmem:[%s780_s8 + $0xe8] sm:$0xff] %v356_v48  ;;  %v358_v56 = vadd.f32 %v748_v9, %v282_v49  ;;  %v286_v57 = vmul.f32 %v746_v8, %v210_v43  ;;  %v287_v58 = vmul.f32 %v742_v6, %v211_v44  ;;  %v226_v31 = vld [vmem:[%s740_s7 + $0x198] sm:$0xff]  ;;  %v227_v32 = vld [vmem:[%s740_s7 + $0x1a0] sm:$0xff] }
  0x2e   : > { %v288_v59 = vmul.f32 %v746_v8, %v212_v45  ;;  %421 = vst [vmem:[%s780_s8 + $0xf0] sm:$0xff] %v357_v51  ;;  %v359_v63 = vadd.f32 %v744_v7, %v283_v52  ;;  %v360_v0 = vadd.f32 %v748_v9, %v284_v53  ;;  %v361_v1 = vadd.f32 %v744_v7, %v285_v54  ;;  %v228_v33 = vld [vmem:[%s740_s7 + $0x1a8] sm:$0xff]  ;;  %v229_v38 = vld [vmem:[%s740_s7 + $0x1b0] sm:$0xff]  ;;  %v230_v43 = vld [vmem:[%s740_s7 + $0x1b8] sm:$0xff] }
  0x2f   : > { %v289_v2 = vmul.f32 %v742_v6, %v213_v50  ;;  %422 = vst [vmem:[%s780_s8 + $0xf8] sm:$0xff] %v358_v56  ;;  %v362_v10 = vadd.f32 %v748_v9, %v286_v57  ;;  %v363_v11 = vadd.f32 %v744_v7, %v287_v58  ;;  %v290_v13 = vmul.f32 %v746_v8, %v214_v55  ;;  %v231_v48 = vld [vmem:[%s740_s7 + $0x1c0] sm:$0xff]  ;;  %v232_v49 = vld [vmem:[%s740_s7 + $0x1c8] sm:$0xff]  ;;  %v233_v50 = vld [vmem:[%s740_s7 + $0x1d0] sm:$0xff] }
  0x30   : > { %v364_v12 = vadd.f32 %v748_v9, %v288_v59  ;;  %423 = vst [vmem:[%s780_s8 + $0x100] sm:$0xff] %v359_v63  ;;  %424 = vst [vmem:[%s780_s8 + $0x108] sm:$0xff] %v360_v0  ;;  %v291_v16 = vmul.f32 %v742_v6, %v215_v60  ;;  %v292_v17 = vmul.f32 %v746_v8, %v216_v61  ;;  %v234_v55 = vld [vmem:[%s740_s7 + $0x1d8] sm:$0xff]  ;;  %v235_v56 = vld [vmem:[%s740_s7 + $0x1e0] sm:$0xff] }
  0x31   : > { %425 = vst [vmem:[%s780_s8 + $0x110] sm:$0xff] %v361_v1  ;;  %v365_v15 = vadd.f32 %v744_v7, %v289_v2  ;;  %v293_v18 = vmul.f32 %v742_v6, %v217_v62  ;;  %426 = vst [vmem:[%s780_s8 + $0x118] sm:$0xff] %v362_v10  ;;  %v366_v20 = vadd.f32 %v748_v9, %v290_v13  ;;  %v236_v57 = vld [vmem:[%s740_s7 + $0x1e8] sm:$0xff]  ;;  %v237_v62 = vld [vmem:[%s740_s7 + $0x1f0] sm:$0xff] }
  0x32   : > { %427 = vst [vmem:[%s780_s8 + $0x120] sm:$0xff] %v363_v11  ;;  %428 = vst [vmem:[%s780_s8 + $0x128] sm:$0xff] %v364_v12  ;;  %v294_v21 = vmul.f32 %v746_v8, %v218_v3  ;;  %v295_v22 = vmul.f32 %v742_v6, %v219_v4  ;;  %v296_v23 = vmul.f32 %v746_v8, %v220_v5  ;;  %v238_v3 = vld [vmem:[%s740_s7 + $0x1f8] sm:$0xff] }
  0x33   : > { %429 = vst [vmem:[%s780_s8 + $0x130] sm:$0xff] %v365_v15  ;;  %v367_v27 = vadd.f32 %v744_v7, %v291_v16  ;;  %v368_v28 = vadd.f32 %v748_v9, %v292_v17  ;;  %v369_v29 = vadd.f32 %v744_v7, %v293_v18  ;;  %v297_v30 = vmul.f32 %v742_v6, %v221_v14 }
  0x34   : > { %430 = vst [vmem:[%s780_s8 + $0x138] sm:$0xff] %v366_v20  ;;  %v370_v34 = vadd.f32 %v748_v9, %v294_v21  ;;  %v371_v35 = vadd.f32 %v744_v7, %v295_v22  ;;  %v372_v36 = vadd.f32 %v748_v9, %v296_v23  ;;  %v298_v37 = vmul.f32 %v746_v8, %v222_v19 }
  0x35   : > { %431 = vst [vmem:[%s780_s8 + $0x140] sm:$0xff] %v367_v27  ;;  %432 = vst [vmem:[%s780_s8 + $0x148] sm:$0xff] %v368_v28  ;;  %v373_v39 = vadd.f32 %v744_v7, %v297_v30  ;;  %v299_v40 = vmul.f32 %v742_v6, %v223_v24  ;;  %v300_v41 = vmul.f32 %v746_v8, %v224_v25 }
  0x36   : > { %433 = vst [vmem:[%s780_s8 + $0x150] sm:$0xff] %v369_v29  ;;  %v301_v42 = vmul.f32 %v742_v6, %v225_v26  ;;  %434 = vst [vmem:[%s780_s8 + $0x158] sm:$0xff] %v370_v34  ;;  %v374_v44 = vadd.f32 %v748_v9, %v298_v37  ;;  %v302_v45 = vmul.f32 %v746_v8, %v226_v31 }
  0x37   : > { %435 = vst [vmem:[%s780_s8 + $0x160] sm:$0xff] %v371_v35  ;;  %436 = vst [vmem:[%s780_s8 + $0x168] sm:$0xff] %v372_v36  ;;  %v303_v46 = vmul.f32 %v742_v6, %v227_v32  ;;  %v304_v47 = vmul.f32 %v746_v8, %v228_v33  ;;  %v375_v51 = vadd.f32 %v744_v7, %v299_v40 }
  0x38   : > { %437 = vst [vmem:[%s780_s8 + $0x170] sm:$0xff] %v373_v39  ;;  %v376_v52 = vadd.f32 %v748_v9, %v300_v41  ;;  %v377_v53 = vadd.f32 %v744_v7, %v301_v42  ;;  %v305_v54 = vmul.f32 %v742_v6, %v229_v38  ;;  %438 = vst [vmem:[%s780_s8 + $0x178] sm:$0xff] %v374_v44 }
  0x39   : > { %v378_v58 = vadd.f32 %v748_v9, %v302_v45  ;;  %v379_v59 = vadd.f32 %v744_v7, %v303_v46  ;;  %v380_v60 = vadd.f32 %v748_v9, %v304_v47  ;;  %v306_v61 = vmul.f32 %v746_v8, %v230_v43  ;;  %439 = vst [vmem:[%s780_s8 + $0x180] sm:$0xff] %v375_v51 }
  0x3a   : > { %440 = vst [vmem:[%s780_s8 + $0x188] sm:$0xff] %v376_v52  ;;  %441 = vst [vmem:[%s780_s8 + $0x190] sm:$0xff] %v377_v53  ;;  %v381_v63 = vadd.f32 %v744_v7, %v305_v54  ;;  %v307_v0 = vmul.f32 %v742_v6, %v231_v48  ;;  %v308_v1 = vmul.f32 %v746_v8, %v232_v49 }
  0x3b   : > { %v309_v2 = vmul.f32 %v742_v6, %v233_v50  ;;  %442 = vst [vmem:[%s780_s8 + $0x198] sm:$0xff] %v378_v58  ;;  %443 = vst [vmem:[%s780_s8 + $0x1a0] sm:$0xff] %v379_v59  ;;  %v382_v4 = vadd.f32 %v748_v9, %v306_v61  ;;  %v310_v5 = vmul.f32 %v746_v8, %v234_v55 }
  0x3c   : > { %444 = vst [vmem:[%s780_s8 + $0x1a8] sm:$0xff] %v380_v60  ;;  %v311_v10 = vmul.f32 %v742_v6, %v235_v56  ;;  %v312_v11 = vmul.f32 %v746_v8, %v236_v57  ;;  %445 = vst [vmem:[%s780_s8 + $0x1b0] sm:$0xff] %v381_v63  ;;  %v383_v12 = vadd.f32 %v744_v7, %v307_v0 }
  0x3d   : > { %v384_v13 = vadd.f32 %v748_v9, %v308_v1  ;;  %v385_v14 = vadd.f32 %v744_v7, %v309_v2  ;;  %v313_v15 = vmul.f32 %v742_v6, %v237_v62  ;;  %446 = vst [vmem:[%s780_s8 + $0x1b8] sm:$0xff] %v382_v4  ;;  %v386_v16 = vadd.f32 %v748_v9, %v310_v5 }
  0x3e   : > { %v387_v17 = vadd.f32 %v744_v7, %v311_v10  ;;  %v388_v18 = vadd.f32 %v748_v9, %v312_v11  ;;  %v314_v19 = vmul.f32 %v746_v8, %v238_v3  ;;  %447 = vst [vmem:[%s780_s8 + $0x1c0] sm:$0xff] %v383_v12 }
  0x3f   : > { %448 = vst [vmem:[%s780_s8 + $0x1c8] sm:$0xff] %v384_v13  ;;  %449 = vst [vmem:[%s780_s8 + $0x1d0] sm:$0xff] %v385_v14  ;;  %v389_v20 = vadd.f32 %v744_v7, %v313_v15 }
  0x40   : > { %450 = vst [vmem:[%s780_s8 + $0x1d8] sm:$0xff] %v386_v16  ;;  %451 = vst [vmem:[%s780_s8 + $0x1e0] sm:$0xff] %v387_v17  ;;  %v390_v6 = vadd.f32 %v748_v9, %v314_v19 }
  0x41   : > { %452 = vst [vmem:[%s780_s8 + $0x1e8] sm:$0xff] %v388_v18  ;;  %453 = vst [vmem:[%s780_s8 + $0x1f0] sm:$0xff] %v389_v20 }
  0x42   : > { %454 = vst [vmem:[%s780_s8 + $0x1f8] sm:$0xff] %v390_v6 }
  0x43   : > { %603 = shalt.err (!%p600_p3)
}
  0x44   : > { %s604_s25 = scalar_lea.hbm %s1008_s17, 8192  ;;  %s608_s30 = scalar_lea.hbm %s1064_s3, 16384 }
  0x45   : > { %p605_p4 = scmp.ne.s32.totalorder %s1008_s17, %s604_s25  ;;  %p609_p9 = scmp.lt.u32.totalorder %s1008_s17, %s1064_s3 }
  0x46   : > { %p610_p10 = scmp.lt.u32.totalorder %s608_s30, %s604_s25  ;;  %p612_p12 = scmp.lt.u32.totalorder %s604_s25, %s1008_s17 }
  0x47   : > { %p606_p7 = pnand %p605_p4, %p715_p5 }
  0x48   : > { %p611_p11 = por %p610_p10, %p609_p9 }
  0x49   : > { %p607_p8 = pneg %p606_p7 }
  0x4a   : > { %p613_p13 = por %p612_p12, %p611_p11 }
  0x4c   : > { %p614_p0 = pnand %p613_p13, %p607_p8 }
  0x4e   : > { %617 = shalt.err (!%p614_p0)
}
  0x4f   : > { %s655_s6 = smov 256   ;;  %s656_s7 = smov 16  }
  0x50   : > { %549 = dma.vmem_to_hbm [thread:$0]  (%p715_p5), %s1010_s10, 8192, %s1008_s17, %s1020_s19, %s655_s6, %s655_s6, %s656_s7  }
  0x51 PF: > { %p555_p1 = scmp.ge.s32.totalorder %s652_s15, 2  ;;  %s485_s8 = sand.u32 1, %s640_s12  }
  0x52   : > { %s486_s9 = scalar_lea.sflag [#allocation3], %s485_s8 }
  0x53   : > { %p552_p2 = pnand %p555_p1, %p719_p6 }
  0x55   : > { %635 = dma.done.wait (!%p552_p2), %s486_s9, 8192  }
  0x56   : > { %637 = vsyncadd (!%p552_p2), %s486_s9, 4294959104  ;;  %p13_p3 = scmp.ge.s32.totalorder %s702_s18, 4   ;;  %s1067_s12 = smov %s644_s13 }
  0x57   : > { %s1068_s13 = smov %s648_s14  ;;  %s1069_s14 = smov %s713_s21 }
  0x58   : > { %s1070_s15 = smov %s702_s18  ;;  %15 = sbr.rel (!%p13_p3) target bundleno = 3 (0x3), region = 67 }
  0x5f   :  { %491 = vsyncpa [#allocation3], 1 }
  0x60   :  { %493 = vsyncpa [#allocation3 + $0x1], 1 }

// kernel: unet_block_tran.2
= control target key start
LH: loop header
LB: loop body
LE: loop exit
PB: predicated region body
PF: predicated region fallthrough
CT: control target
= control target key end

     0   :  { %s7917_s24 = smov 0   ;;  %s11045_s0 = inlined_call_operand.vmem [shape: f32[2,8,8,128], index: 0, kind: input, shape index: {}]   ;;  %s11046_s1 = inlined_call_operand.vmem [shape: f32[2,16,16,64], index: 1, kind: input, shape index: {}]   ;;  %s11047_s2 = inlined_call_operand.vmem [shape: f32[128,512], index: 2, kind: input, shape index: {}]   ;;  %s11048_s3 = inlined_call_operand.vmem [shape: f32[1,512], index: 3, kind: input, shape index: {}]   ;;  %s11049_s4 = inlined_call_operand.vmem [shape: f32[576,128], index: 4, kind: input, shape index: {}]   ;;  %s11050_s5 = inlined_call_operand.vmem [shape: f32[1,128], index: 5, kind: input, shape index: {}]   ;;  %s11051_s6 = inlined_call_operand.vmem [shape: f32[2,16,16,256], index: 6, kind: output, shape index: {0}]   ;;  %s11052_s7 = inlined_call_operand.vmem [shape: f32[2,2,256], index: 7, kind: output, shape index: {1}]  }
   0x1 LB: > { %s7089_s25 = sadd.s32 4294967295, %s7870_s24   ;;  %p7093_p0 = scmp.ge.s32.totalorder %s7870_s24, 1  ;;  %s7870_s24 = sphi %s7917_s24, %s18_s24  }
   0x2   : > { %p250_p1 = scmp.lt.s32.totalorder %s7870_s24, 3 }
   0x4   : > { %p251_p2 = pnand %p7093_p0, %p250_p1 }
   0x6   : > { %254 = sbr.rel (%p251_p2) target bundleno = 734 (0x2de), region = 44 }
   0xd   : > { %p7927_p3 = scmp.lt.s32.totalorder %s7089_s25, 1  ;;  %vm3257_vm0 = vcmask 523264   ;;  %v7934_v0 = vld [vmem:[%s11047_s2 + $0x8] sm:$0xff]  ;;  %v7872_v2 = vmov 0.0   ;;  %vm3260_vm1 = vcmask 517120   ;;  %v320_v4 = vld [vmem:[%s11047_s2] sm:$0xff] }
   0xe   : > { %v7939_v1 = vld [vmem:[%s11047_s2 + $0x28] sm:$0xff]  ;;  %3258 = vst.msk [vmem:[#allocation2] sm:$0xff] %vm3257_vm0, %v7872_v2  ;;  %3259 = vst.msk [vmem:[#allocation2 + $0x8] sm:$0xff] %vm3257_vm0, %v7872_v2  ;;  %v324_v5 = vld [vmem:[%s11047_s2 + $0x20] sm:$0xff]  ;;  %470 = vmatprep.mubr.f32.mxu0 %v7872_v2  ;;  %583 = vmatprep.mubr.f32.mxu1 %v7872_v2  ;;  %s7873_s23 = smov 64   ;;  %vm1816_vm2 = vcmask 1040384  }
   0xf   : > { %3262 = vst.msk [vmem:[#allocation2 + $0x18] sm:$0xff] %vm3257_vm0, %v7872_v2  ;;  %3263 = vst.msk [vmem:[#allocation2 + $0x20] sm:$0xff] %vm3257_vm0, %v7872_v2  ;;  %v7246_v3 = vpack.c.bf16 %v7939_v1, %v7934_v0  ;;  %v329_v6 = vld [vmem:[%s11047_s2 + $0x48] sm:$0xff]  ;;  %s11181_s25 = smov (!%p7927_p3, %s7089_s25), 1  ;;  %v7248_v7 = vpack.c.bf16 %v324_v5, %v320_v4  ;;  %v323_v9 = vld [vmem:[%s11047_s2 + $0x18] sm:$0xff] }
  0x10   : > { %3265 = vst.msk [vmem:[#allocation2 + $0x30] sm:$0xff] %vm3257_vm0, %v7872_v2  ;;  %3266 = vst.msk [vmem:[#allocation2 + $0x38] sm:$0xff] %vm3257_vm0, %v7872_v2  ;;  %v333_v8 = vld [vmem:[%s11047_s2 + $0x68] sm:$0xff]  ;;  %v327_v10 = vld [vmem:[%s11047_s2 + $0x38] sm:$0xff]  ;;  %s7139_s28 = sshll.u32 %s11181_s25, 8  ;;  %s7138_s22 = sshll.u32 %s11181_s25, 6 }
  0x11   : > { %3268 = vst.msk [vmem:[#allocation2 + $0x48] sm:$0xff] %vm3257_vm0, %v7872_v2  ;;  %3269 = vst.msk [vmem:[#allocation2 + $0x50] sm:$0xff] %vm3257_vm0, %v7872_v2  ;;  %7247 = vmatprep.subr.bf16.mxu0 %v7246_v3  ;;  %v7250_v11 = vpack.c.bf16 %v333_v8, %v329_v6  ;;  %v7278_v12 = vpack.c.bf16 %v327_v10, %v323_v9  ;;  %v328_v13 = vld [vmem:[%s11047_s2 + $0x40] sm:$0xff]  ;;  %v322_v15 = vld [vmem:[%s11047_s2 + $0x10] sm:$0xff]  ;;  %s8099_s14 = scalar_lea.vmem %s11046_s1, %s7139_s28  ;;  %s8290_s18 = scalar_lea.vmem %s11045_s0, %s7138_s22 }
  0x12   : > { %3271 = vst.msk [vmem:[#allocation2 + $0x60] sm:$0xff] %vm3257_vm0, %v7872_v2  ;;  %3272 = vst.msk [vmem:[#allocation2 + $0x68] sm:$0xff] %vm3257_vm0, %v7872_v2  ;;  %v332_v14 = vld [vmem:[%s11047_s2 + $0x60] sm:$0xff]  ;;  %7249 = vmatpush1.bf16.msra.mxu0 %v7248_v7  ;;  %v326_v17 = vld [vmem:[%s11047_s2 + $0x30] sm:$0xff]  ;;  %s7140_s12 = sshll.u32 %s11181_s25, 9  ;;  %s7141_s19 = sshll.u32 %s11181_s25, 2 }
  0x13   : > { %3274 = vst.msk [vmem:[#allocation2 + $0x78] sm:$0xff] %vm3257_vm0, %v7872_v2  ;;  %3275 = vst.msk [vmem:[#allocation2 + $0x80] sm:$0xff] %vm3257_vm0, %v7872_v2  ;;  %v7252_v16 = vpack.c.bf16 %v332_v14, %v328_v13  ;;  %v337_v18 = vld [vmem:[%s11047_s2 + $0x88] sm:$0xff]  ;;  %7251 = vmatprep.subr.bf16.mxu0 %v7250_v11  ;;  %7279 = vmatprep.subr.bf16.mxu1 %v7278_v12  ;;  %v7280_v20 = vpack.c.bf16 %v326_v17, %v322_v15  ;;  %v331_v22 = vld [vmem:[%s11047_s2 + $0x58] sm:$0xff]  ;;  %s311_s21 = scalar_lea.vmem %s11052_s7, %s7141_s19 }
  0x14   : > { %3277 = vst.msk [vmem:[#allocation2 + $0x90] sm:$0xff] %vm3257_vm0, %v7872_v2  ;;  %3278 = vst.msk [vmem:[#allocation2 + $0x98] sm:$0xff] %vm3257_vm0, %v7872_v2  ;;  %v341_v19 = vld [vmem:[%s11047_s2 + $0xa8] sm:$0xff]  ;;  %v335_v23 = vld [vmem:[%s11047_s2 + $0x78] sm:$0xff] }
  0x15   : > { %3280 = vst.msk [vmem:[#allocation2 + $0xa8] sm:$0xff] %vm3257_vm0, %v7872_v2  ;;  %3281 = vst.msk [vmem:[#allocation2 + $0xb0] sm:$0xff] %vm3257_vm0, %v7872_v2  ;;  %v7254_v21 = vpack.c.bf16 %v341_v19, %v337_v18  ;;  %v336_v24 = vld [vmem:[%s11047_s2 + $0x80] sm:$0xff]  ;;  %v3315_v26 = vld [vmem:[%s8099_s14 + $0x10] sm:$0xff]  ;;  %v7282_v28 = vpack.c.bf16 %v335_v23, %v331_v22  ;;  %7281 = vmatpush1.bf16.msra.mxu1 %v7280_v20 }
  0x16   : > { %3283 = vst.msk [vmem:[#allocation2 + $0xc0] sm:$0xff] %vm3257_vm0, %v7872_v2  ;;  %3284 = vst.msk [vmem:[#allocation2 + $0xc8] sm:$0xff] %vm3257_vm0, %v7872_v2  ;;  %v3313_v25 = vld [vmem:[%s8099_s14] sm:$0xff]  ;;  %v3314_v27 = vld [vmem:[%s8099_s14 + $0x8] sm:$0xff]  ;;  %7253 = vmatpush1.bf16.msra.mxu0 %v7252_v16 }
  0x17   : > { %3286 = vst.msk [vmem:[#allocation2 + $0xd8] sm:$0xff] %vm3257_vm0, %v7872_v2  ;;  %3287 = vst.msk [vmem:[#allocation2 + $0xe0] sm:$0xff] %vm3257_vm0, %v7872_v2  ;;  %v3316_v29 = vld [vmem:[%s8099_s14 + $0x18] sm:$0xff]  ;;  %v3317_v30 = vld [vmem:[%s8099_s14 + $0x20] sm:$0xff]  ;;  %7283 = vmatprep.subr.bf16.mxu1 %v7282_v28  ;;  %7255 = vmatprep.subr.bf16.mxu0 %v7254_v21 }
  0x18   : > { %3289 = vst.msk [vmem:[#allocation2 + $0xf0] sm:$0xff] %vm3257_vm0, %v7872_v2  ;;  %3290 = vst.msk [vmem:[#allocation2 + $0xf8] sm:$0xff] %vm3257_vm0, %v7872_v2  ;;  %v3318_v31 = vld [vmem:[%s8099_s14 + $0x28] sm:$0xff]  ;;  %v3319_v32 = vld [vmem:[%s8099_s14 + $0x30] sm:$0xff] }
  0x19   : > { %3292 = vst.msk [vmem:[#allocation2 + $0x108] sm:$0xff] %vm3257_vm0, %v7872_v2  ;;  %3293 = vst.msk [vmem:[#allocation2 + $0x110] sm:$0xff] %vm3257_vm0, %v7872_v2  ;;  %v340_v33 = vld [vmem:[%s11047_s2 + $0xa0] sm:$0xff]  ;;  %v330_v35 = vld [vmem:[%s11047_s2 + $0x50] sm:$0xff] }
  0x1a   : > { %3295 = vst.msk [vmem:[#allocation2 + $0x120] sm:$0xff] %vm3257_vm0, %v7872_v2  ;;  %3296 = vst.msk [vmem:[#allocation2 + $0x128] sm:$0xff] %vm3257_vm0, %v7872_v2  ;;  %v7256_v34 = vpack.c.bf16 %v340_v33, %v336_v24  ;;  %v334_v36 = vld [vmem:[%s11047_s2 + $0x70] sm:$0xff]  ;;  %v3410_v37 = vld [vmem:[#allocation2 + $0x1] sm:$0xff] }
  0x1b   : > { %3298 = vst.msk [vmem:[#allocation2 + $0x138] sm:$0xff] %vm3257_vm0, %v7872_v2  ;;  %3299 = vst.msk [vmem:[#allocation2 + $0x140] sm:$0xff] %vm3257_vm0, %v7872_v2  ;;  %v7284_v38 = vpack.c.bf16 %v334_v36, %v330_v35  ;;  %v3320_v39 = vld [vmem:[%s8099_s14 + $0x38] sm:$0xff]  ;;  %v345_v40 = vld [vmem:[%s11047_s2 + $0xc8] sm:$0xff] }
  0x1c   : > { %3301 = vst.msk [vmem:[#allocation2 + $0x150] sm:$0xff] %vm3257_vm0, %v7872_v2  ;;  %3302 = vst.msk [vmem:[#allocation2 + $0x158] sm:$0xff] %vm3257_vm0, %v7872_v2  ;;  %v349_v41 = vld [vmem:[%s11047_s2 + $0xe8] sm:$0xff]  ;;  %v339_v43 = vld [vmem:[%s11047_s2 + $0x98] sm:$0xff]  ;;  %7257 = vmatpush1.bf16.msra.mxu0 %v7256_v34 }
  0x1d   : > { %3304 = vst.msk [vmem:[#allocation2 + $0x168] sm:$0xff] %vm3257_vm0, %v7872_v2  ;;  %3305 = vst.msk [vmem:[#allocation2 + $0x170] sm:$0xff] %vm3257_vm0, %v7872_v2  ;;  %v7258_v42 = vpack.c.bf16 %v349_v41, %v345_v40  ;;  %v343_v44 = vld [vmem:[%s11047_s2 + $0xb8] sm:$0xff]  ;;  %v3321_v45 = vld [vmem:[%s8099_s14 + $0x40] sm:$0xff]  ;;  %7285 = vmatpush1.bf16.msra.mxu1 %v7284_v38 }
  0x1e   : > { %3307 = vst.msk [vmem:[#allocation2 + $0x180] sm:$0xff] %vm3257_vm0, %v7872_v2  ;;  %3308 = vst.msk [vmem:[#allocation2 + $0x188] sm:$0xff] %vm3257_vm0, %v7872_v2  ;;  %v7286_v46 = vpack.c.bf16 %v343_v44, %v339_v43  ;;  %v344_v47 = vld [vmem:[%s11047_s2 + $0xc0] sm:$0xff]  ;;  %v338_v49 = vld [vmem:[%s11047_s2 + $0x90] sm:$0xff] }
  0x1f   : > { %3310 = vst.msk [vmem:[#allocation2 + $0x198] sm:$0xff] %vm3257_vm0, %v7872_v2  ;;  %3311 = vst.msk [vmem:[#allocation2 + $0x1a0] sm:$0xff] %vm3257_vm0, %v7872_v2  ;;  %v348_v48 = vld [vmem:[%s11047_s2 + $0xe0] sm:$0xff]  ;;  %7259 = vmatprep.subr.bf16.mxu0 %v7258_v42  ;;  %v342_v52 = vld [vmem:[%s11047_s2 + $0xb0] sm:$0xff] }
  0x20   : > { %3261 = vst.msk [vmem:[#allocation2 + $0x10] sm:$0x3] %vm3260_vm1, %v7872_v2  ;;  %3264 = vst.msk [vmem:[#allocation2 + $0x28] sm:$0x3] %vm3260_vm1, %v7872_v2  ;;  %v7260_v51 = vpack.c.bf16 %v348_v48, %v344_v47  ;;  %v3322_v53 = vld [vmem:[%s8099_s14 + $0x48] sm:$0xff]  ;;  %7287 = vmatprep.subr.bf16.mxu1 %v7286_v46  ;;  %v7288_v57 = vpack.c.bf16 %v342_v52, %v338_v49  ;;  %v347_v11 = vld [vmem:[%s11047_s2 + $0xd8] sm:$0xff] }
  0x21   : > { %3267 = vst.msk [vmem:[#allocation2 + $0x40] sm:$0x3] %vm3260_vm1, %v7872_v2  ;;  %3270 = vst.msk [vmem:[#allocation2 + $0x58] sm:$0x3] %vm3260_vm1, %v7872_v2  ;;  %v353_v3 = vld [vmem:[%s11047_s2 + $0x108] sm:$0xff]  ;;  %v351_v12 = vld [vmem:[%s11047_s2 + $0xf8] sm:$0xff] }
  0x22   : > { %3273 = vst.msk [vmem:[#allocation2 + $0x70] sm:$0x3] %vm3260_vm1, %v7872_v2  ;;  %3276 = vst.msk [vmem:[#allocation2 + $0x88] sm:$0x3] %vm3260_vm1, %v7872_v2  ;;  %7261 = vmatpush1.bf16.msra.mxu0 %v7260_v51  ;;  %7289 = vmatpush1.bf16.msra.mxu1 %v7288_v57  ;;  %v357_v9 = vld [vmem:[%s11047_s2 + $0x128] sm:$0xff]  ;;  %v3323_v13 = vld [vmem:[%s8099_s14 + $0x50] sm:$0xff]  ;;  %v7290_v18 = vpack.c.bf16 %v351_v12, %v347_v11 }
  0x23   : > { %3279 = vst.msk [vmem:[#allocation2 + $0xa0] sm:$0x3] %vm3260_vm1, %v7872_v2  ;;  %3282 = vst.msk [vmem:[#allocation2 + $0xb8] sm:$0x3] %vm3260_vm1, %v7872_v2  ;;  %v7262_v10 = vpack.c.bf16 %v357_v9, %v353_v3  ;;  %v352_v19 = vld [vmem:[%s11047_s2 + $0x100] sm:$0xff]  ;;  %v346_v21 = vld [vmem:[%s11047_s2 + $0xd0] sm:$0xff] }
  0x24   : > { %3285 = vst.msk [vmem:[#allocation2 + $0xd0] sm:$0x3] %vm3260_vm1, %v7872_v2  ;;  %3288 = vst.msk [vmem:[#allocation2 + $0xe8] sm:$0x3] %vm3260_vm1, %v7872_v2  ;;  %v356_v20 = vld [vmem:[%s11047_s2 + $0x120] sm:$0xff]  ;;  %v350_v22 = vld [vmem:[%s11047_s2 + $0xf0] sm:$0xff]  ;;  %7291 = vmatprep.subr.bf16.mxu1 %v7290_v18 }
  0x25   : > { %3291 = vst.msk [vmem:[#allocation2 + $0x100] sm:$0x3] %vm3260_vm1, %v7872_v2  ;;  %3294 = vst.msk [vmem:[#allocation2 + $0x118] sm:$0x3] %vm3260_vm1, %v7872_v2  ;;  %7263 = vmatprep.subr.bf16.mxu0 %v7262_v10  ;;  %v7264_v23 = vpack.c.bf16 %v356_v20, %v352_v19  ;;  %v7292_v24 = vpack.c.bf16 %v350_v22, %v346_v21  ;;  %v359_v33 = vld [vmem:[%s11047_s2 + $0x138] sm:$0xff]  ;;  %v3325_v38 = vld [vmem:[%s8099_s14 + $0x60] sm:$0xff] }
  0x26   : > { %3297 = vst.msk [vmem:[#allocation2 + $0x130] sm:$0x3] %vm3260_vm1, %v7872_v2  ;;  %3300 = vst.msk [vmem:[#allocation2 + $0x148] sm:$0x3] %vm3260_vm1, %v7872_v2  ;;  %v364_v40 = vld [vmem:[%s11047_s2 + $0x160] sm:$0xff]  ;;  %v354_v41 = vld [vmem:[%s11047_s2 + $0x110] sm:$0xff] }
  0x27   : > { %3303 = vst.msk [vmem:[#allocation2 + $0x160] sm:$0x3] %vm3260_vm1, %v7872_v2  ;;  %3306 = vst.msk [vmem:[#allocation2 + $0x178] sm:$0x3] %vm3260_vm1, %v7872_v2  ;;  %v3411_v50 = vld [vmem:[#allocation2 + $0x9] sm:$0xff]  ;;  %7265 = vmatpush1.bf16.msra.mxu0 %v7264_v23  ;;  %7293 = vmatpush1.bf16.msra.mxu1 %v7292_v24  ;;  %v363_v47 = vld [vmem:[%s11047_s2 + $0x158] sm:$0xff] }
  0x28   : > { %3309 = vst.msk [vmem:[#allocation2 + $0x190] sm:$0x3] %vm3260_vm1, %v7872_v2  ;;  %3312 = vst.msk [vmem:[#allocation2 + $0x1a8] sm:$0x3] %vm3260_vm1, %v7872_v2  ;;  %v358_v42 = vld [vmem:[%s11047_s2 + $0x130] sm:$0xff]  ;;  %v373_v46 = vld [vmem:[%s11047_s2 + $0x1a8] sm:$0xff] }
  0x29   : > { %3346 = vst.msk [vmem:[#allocation2 + $0x19] sm:$0xff] %vm3257_vm0, %v3313_v25  ;;  %3348 = vst.msk [vmem:[#allocation2 + $0x31] sm:$0xff] %vm3257_vm0, %v3315_v26  ;;  %v3324_v25 = vld [vmem:[%s8099_s14 + $0x58] sm:$0xff]  ;;  %v361_v26 = vld [vmem:[%s11047_s2 + $0x148] sm:$0xff]  ;;  %v7296_v44 = vpack.c.bf16 %v358_v42, %v354_v41 }
  0x2a   : > { %3347 = vst.msk [vmem:[#allocation2 + $0x21] sm:$0xff] %vm3257_vm0, %v3314_v27  ;;  %3349 = vst.msk [vmem:[#allocation2 + $0x39] sm:$0xff] %vm3257_vm0, %v3316_v29  ;;  %v367_v51 = vld [vmem:[%s11047_s2 + $0x178] sm:$0xff]  ;;  %v368_v57 = vld [vmem:[%s11047_s2 + $0x180] sm:$0xff] }
  0x2b   : > { %3350 = vst.msk [vmem:[#allocation2 + $0x49] sm:$0xff] %vm3257_vm0, %v3317_v30  ;;  %3351 = vst.msk [vmem:[#allocation2 + $0x51] sm:$0xff] %vm3257_vm0, %v3318_v31  ;;  %v365_v31 = vld [vmem:[%s11047_s2 + $0x168] sm:$0xff]  ;;  %v3327_v12 = vld [vmem:[%s8099_s14 + $0x70] sm:$0xff] }
  0x2c   : > { %3352 = vst.msk [vmem:[#allocation2 + $0x61] sm:$0xff] %vm3257_vm0, %v3319_v32  ;;  %3353 = vst.msk [vmem:[#allocation2 + $0x69] sm:$0xff] %vm3257_vm0, %v3320_v39  ;;  %v355_v32 = vld [vmem:[%s11047_s2 + $0x118] sm:$0xff]  ;;  %v7266_v36 = vpack.c.bf16 %v365_v31, %v361_v26  ;;  %v360_v39 = vld [vmem:[%s11047_s2 + $0x140] sm:$0xff] }
  0x2d   : > { %3354 = vst.msk [vmem:[#allocation2 + $0x79] sm:$0xff] %vm3257_vm0, %v3321_v45  ;;  %3355 = vst.msk [vmem:[#allocation2 + $0x81] sm:$0xff] %vm3257_vm0, %v3322_v53  ;;  %v7268_v43 = vpack.c.bf16 %v364_v40, %v360_v39  ;;  %v369_v45 = vld [vmem:[%s11047_s2 + $0x188] sm:$0xff]  ;;  %v379_v18 = vld [vmem:[%s11047_s2 + $0x1d8] sm:$0xff] }
  0x2e   : > { %3356 = vst.msk [vmem:[#allocation2 + $0x91] sm:$0xff] %vm3257_vm0, %v3323_v13  ;;  %3357 = vst.msk [vmem:[#allocation2 + $0x99] sm:$0xff] %vm3257_vm0, %v3324_v25  ;;  %7267 = vmatprep.subr.bf16.mxu0 %v7266_v36  ;;  %v376_v13 = vld [vmem:[%s11047_s2 + $0x1c0] sm:$0xff]  ;;  %v383_v20 = vld [vmem:[%s11047_s2 + $0x1f8] sm:$0xff] }
  0x2f   : > { %3358 = vst.msk [vmem:[#allocation2 + $0xa9] sm:$0xff] %vm3257_vm0, %v3325_v38  ;;  %7269 = vmatpush1.bf16.msra.mxu0 %v7268_v43  ;;  %3360 = vst.msk [vmem:[#allocation2 + $0xc1] sm:$0xff] %vm3257_vm0, %v3327_v12  ;;  %v3328_v21 = vld [vmem:[%s8099_s14 + $0x78] sm:$0xff]  ;;  %v7306_v26 = vpack.c.bf16 %v383_v20, %v379_v18  ;;  %v312_v31 = vld [vmem:[%s8290_s18] sm:$0xff] }
  0x30   : > { %v3474_v54 = vld [vmem:[#allocation2 + $0x18] sm:$0xff]  ;;  %v3476_v56 = vld [vmem:[#allocation2 + $0x30] sm:$0xff]  ;;  %3361 = vst.msk [vmem:[#allocation2 + $0xc9] sm:$0xff] %vm3257_vm0, %v3328_v21  ;;  %v4307_v42 = vld [vmem:[%s11049_s4] sm:$0xff] }
  0x31   : > { %v3412_v55 = vld [vmem:[#allocation2 + $0x19] sm:$0xff]  ;;  %v7539_v58 = vpack.i.bf16 %v3410_v37, %v3474_v54  ;;  %v3413_v61 = vld [vmem:[#allocation2 + $0x21] sm:$0xff]  ;;  %v3414_v1 = vld [vmem:[#allocation2 + $0x31] sm:$0xff]  ;;  %v7294_v37 = vpack.c.bf16 %v359_v33, %v355_v32 }
  0x32   : > { %v7549_v59 = vpack.i.bf16 %v3412_v55, %v3476_v56  ;;  %v3475_v60 = vld [vmem:[#allocation2 + $0x20] sm:$0xff]  ;;  %v3477_v62 = vld [vmem:[#allocation2 + $0x38] sm:$0xff]  ;;  %v3478_v4 = vld [vmem:[#allocation2 + $0x48] sm:$0xff]  ;;  %v7298_v55 = vpack.c.bf16 %v367_v51, %v363_v47 }
  0x33   : > { %7540 = vrot.lane.b32.xlu0 %v7539_v58, %s7873_s23  ;;  %v7544_v63 = vpack.i.bf16 %v3411_v50, %v3475_v60  ;;  %v7554_v0 = vpack.i.bf16 %v3413_v61, %v3477_v62  ;;  %v3415_v5 = vld [vmem:[#allocation2 + $0x39] sm:$0xff]  ;;  %v3479_v6 = vld [vmem:[#allocation2 + $0x50] sm:$0xff]  ;;  %v7559_v14 = vpack.i.bf16 %v3414_v1, %v3478_v4  ;;  %v3481_v17 = vld [vmem:[#allocation2 + $0x68] sm:$0xff]  ;;  %7295 = vmatprep.subr.bf16.mxu1 %v7294_v37 }
  0x34   : > { %7550 = vrot.lane.b32.xlu1 %v7549_v59, %s7873_s23  ;;  %v3416_v7 = vld [vmem:[#allocation2 + $0x49] sm:$0xff]  ;;  %v3480_v8 = vld [vmem:[#allocation2 + $0x60] sm:$0xff]  ;;  %v7564_v15 = vpack.i.bf16 %v3415_v5, %v3479_v6  ;;  %v3417_v16 = vld [vmem:[#allocation2 + $0x51] sm:$0xff]  ;;  %v7270_v50 = vpack.c.bf16 %v373_v46, %v369_v45  ;;  %7297 = vmatpush1.bf16.msra.mxu1 %v7296_v44 }
  0x35   : > { %v7569_v27 = vpack.i.bf16 %v3416_v7, %v3480_v8  ;;  %v3418_v28 = vld [vmem:[#allocation2 + $0x61] sm:$0xff]  ;;  %v3482_v29 = vld [vmem:[#allocation2 + $0x78] sm:$0xff]  ;;  %v3419_v30 = vld [vmem:[#allocation2 + $0x69] sm:$0xff]  ;;  %v7574_v34 = vpack.i.bf16 %v3417_v16, %v3481_v17  ;;  %7299 = vmatprep.subr.bf16.mxu1 %v7298_v55 }
  0x36   : > { %v3483_v35 = vld [vmem:[#allocation2 + $0x80] sm:$0xff]  ;;  %v7579_v52 = vpack.i.bf16 %v3418_v28, %v3482_v29  ;;  %v3484_v54 = vld [vmem:[#allocation2 + $0x90] sm:$0xff]  ;;  %v3326_v56 = vld [vmem:[%s8099_s14 + $0x68] sm:$0xff]  ;;  %7271 = vmatprep.subr.bf16.mxu0 %v7270_v50 }
  0x37   : > { %7545 = vrot.lane.b32.xlu0 %v7544_v63, %s7873_s23  ;;  %v3420_v48 = vld [vmem:[#allocation2 + $0x79] sm:$0xff]  ;;  %v3421_v49 = vld [vmem:[#allocation2 + $0x81] sm:$0xff]  ;;  %v7584_v53 = vpack.i.bf16 %v3419_v30, %v3483_v35  ;;  %3359 = vst.msk [vmem:[#allocation2 + $0xb1] sm:$0xff] %vm3257_vm0, %v3326_v56  ;;  %v362_v59 = vld [vmem:[%s11047_s2 + $0x150] sm:$0xff] }
  0x38   : > { %7555 = vrot.lane.b32.xlu1 %v7554_v0, %s7873_s23  ;;  %v372_v58 = vld [vmem:[%s11047_s2 + $0x1a0] sm:$0xff]  ;;  %v366_v60 = vld [vmem:[%s11047_s2 + $0x170] sm:$0xff]  ;;  %v3485_v61 = vld [vmem:[#allocation2 + $0x98] sm:$0xff]  ;;  %v7589_v1 = vpack.i.bf16 %v3420_v48, %v3484_v54 }
  0x39   : > { %v7272_v62 = vpack.c.bf16 %v372_v58, %v368_v57  ;;  %v7300_v63 = vpack.c.bf16 %v366_v60, %v362_v59  ;;  %v377_v0 = vld [vmem:[%s11047_s2 + $0x1c8] sm:$0xff]  ;;  %v3546_v3 = vld [vmem:[#allocation2 + $0x7a] sm:$0xff]  ;;  %v7594_v7 = vpack.i.bf16 %v3421_v49, %v3485_v61  ;;  %v3611_v9 = vld [vmem:[#allocation2 + $0x91] sm:$0xff] }
  0x3a   : > { %v381_v4 = vld [vmem:[%s11047_s2 + $0x1e8] sm:$0xff]  ;;  %v371_v5 = vld [vmem:[%s11047_s2 + $0x198] sm:$0xff]  ;;  %v374_v17 = vld [vmem:[%s11047_s2 + $0x1b0] sm:$0xff]  ;;  %v7604_v23 = vpack.i.bf16 %v3611_v9, %v3546_v3 }
  0x3b   : > { %7560 = vrot.lane.b32.xlu0 %v7559_v14, %s7873_s23  ;;  %v375_v6 = vld [vmem:[%s11047_s2 + $0x1b8] sm:$0xff]  ;;  %v3486_v8 = vld [vmem:[#allocation2 + $0xa8] sm:$0xff]  ;;  %v7274_v10 = vpack.c.bf16 %v381_v4, %v377_v0  ;;  %7273 = vmatpush1.bf16.msra.mxu0 %v7272_v62  ;;  %v380_v14 = vld [vmem:[%s11047_s2 + $0x1e0] sm:$0xff] }
  0x3c   : > { %7565 = vrot.lane.b32.xlu1 %v7564_v15, %s7873_s23  ;;  %v7302_v11 = vpack.c.bf16 %v375_v6, %v371_v5  ;;  %7301 = vmatpush1.bf16.msra.mxu1 %v7300_v63  ;;  %v370_v15 = vld [vmem:[%s11047_s2 + $0x190] sm:$0xff]  ;;  %v7276_v16 = vpack.c.bf16 %v380_v14, %v376_v13  ;;  %v7599_v22 = vpack.i.bf16 %v3486_v8, %v3611_v9  ;;  %v3612_v24 = vld [vmem:[#allocation2 + $0x99] sm:$0xff]  ;;  %v3547_v25 = vld [vmem:[#allocation2 + $0x82] sm:$0xff] }
  0x3d   : > { %7275 = vmatprep.subr.bf16.mxu0 %v7274_v10  ;;  %v7304_v19 = vpack.c.bf16 %v374_v17, %v370_v15  ;;  %v382_v29 = vld [vmem:[%s11047_s2 + $0x1f0] sm:$0xff]  ;;  %v3329_v30 = vld [vmem:[%s8099_s14 + $0x80] sm:$0xff]  ;;  %v3330_v33 = vld [vmem:[%s8099_s14 + $0x88] sm:$0xff]  ;;  %v7614_v38 = vpack.i.bf16 %v3612_v24, %v3547_v25 }
  0x3e   : > { %7303 = vmatprep.subr.bf16.mxu1 %v7302_v11  ;;  %v3487_v28 = vld [vmem:[#allocation2 + $0xb0] sm:$0xff]  ;;  %3362 = vst.msk [vmem:[#allocation2 + $0xd9] sm:$0xff] %vm3257_vm0, %v3329_v30  ;;  %3363 = vst.msk [vmem:[#allocation2 + $0xe1] sm:$0xff] %vm3257_vm0, %v3330_v33  ;;  %v3332_v36 = vld [vmem:[%s8099_s14 + $0x98] sm:$0xff] }
  0x3f   : > { %7570 = vrot.lane.b32.xlu0 %v7569_v27, %s7873_s23  ;;  %v378_v27 = vld [vmem:[%s11047_s2 + $0x1d0] sm:$0xff]  ;;  %7277 = vmatpush1.bf16.msra.mxu0 %v7276_v16  ;;  %v7609_v37 = vpack.i.bf16 %v3487_v28, %v3612_v24  ;;  %v3488_v39 = vld [vmem:[#allocation2 + $0xc0] sm:$0xff]  ;;  %3365 = vst.msk [vmem:[#allocation2 + $0xf9] sm:$0xff] %vm3257_vm0, %v3332_v36  ;;  %v4308_v43 = vld [vmem:[%s11049_s4 + $0x8] sm:$0xff] }
  0x40   : > { %7575 = vrot.lane.b32.xlu1 %v7574_v34, %s7873_s23  ;;  %7305 = vmatpush1.bf16.msra.mxu1 %v7304_v19  ;;  %v7308_v32 = vpack.c.bf16 %v382_v29, %v378_v27  ;;  %v7874_v34 = vmov 0.0|0.0   ;;  %v3331_v35 = vld [vmem:[%s8099_s14 + $0x90] sm:$0xff]  ;;  %v3333_v44 = vld [vmem:[%s8099_s14 + $0xa0] sm:$0xff]  ;;  %v313_v45 = vld [vmem:[%s8290_s18 + $0x8] sm:$0xff]  ;;  %v7311_v47 = vpack.c.bf16 %v4308_v43, %v4307_v42 }
  0x41   : > { %7307 = vmatprep.subr.bf16.mxu1 %v7306_v26  ;;  %7310 = vmatprep.subr.bf16.mxu0 %v7874_v34  ;;  %v3613_v40 = vld [vmem:[#allocation2 + $0xa9] sm:$0xff]  ;;  %v3548_v41 = vld [vmem:[#allocation2 + $0x92] sm:$0xff]  ;;  %3364 = vst.msk [vmem:[#allocation2 + $0xf1] sm:$0xff] %vm3257_vm0, %v3331_v35  ;;  %3366 = vst.msk [vmem:[#allocation2 + $0x109] sm:$0xff] %vm3257_vm0, %v3333_v44 }
  0x42   : > { %471 = vmatmul.mubr.f32.vlgmr.msra.gmra.mrb[0].mxu0 %v312_v31  ;;  %v3334_v46 = vld [vmem:[%s8099_s14 + $0xa8] sm:$0xff]  ;;  %v7619_v48 = vpack.i.bf16 %v3488_v39, %v3613_v40  ;;  %v7624_v49 = vpack.i.bf16 %v3613_v40, %v3548_v41  ;;  %v4309_v50 = vld [vmem:[%s11049_s4 + $0x10] sm:$0xff]  ;;  %v4310_v51 = vld [vmem:[%s11049_s4 + $0x18] sm:$0xff] }
  0x43   : > { %7580 = vrot.lane.b32.xlu0 %v7579_v52, %s7873_s23  ;;  %476 = vmatprep.mubr.f32.mxu0 %v7872_v2  ;;  %3367 = vst.msk [vmem:[#allocation2 + $0x111] sm:$0xff] %vm3257_vm0, %v3334_v46  ;;  %v3489_v52 = vld [vmem:[#allocation2 + $0xc8] sm:$0xff]  ;;  %v3549_v54 = vld [vmem:[#allocation2 + $0x9a] sm:$0xff]  ;;  %v314_v55 = vld [vmem:[%s8290_s18 + $0x10] sm:$0xff]  ;;  %v7314_v56 = vpack.c.bf16 %v4310_v51, %v4309_v50 }
  0x44   : > { %7585 = vrot.lane.b32.xlu1 %v7584_v53, %s7873_s23  ;;  %7309 = vmatpush1.bf16.msra.mxu1 %v7308_v32  ;;  %v3614_v53 = vld [vmem:[#allocation2 + $0xb1] sm:$0xff]  ;;  %v4311_v57 = vld [vmem:[%s11049_s4 + $0x20] sm:$0xff]  ;;  %v4312_v60 = vld [vmem:[%s11049_s4 + $0x28] sm:$0xff] }
  0x45   : > { %7422 = vmatprep.subr.bf16.mxu1 %v7874_v34  ;;  %7312 = vmatpush1.bf16.msra.mxu0 %v7311_v47  ;;  %v7629_v58 = vpack.i.bf16 %v3489_v52, %v3614_v53  ;;  %v7634_v59 = vpack.i.bf16 %v3614_v53, %v3549_v54  ;;  %v3335_v61 = vld [vmem:[%s8099_s14 + $0xb0] sm:$0xff]  ;;  %v3490_v62 = vld [vmem:[#allocation2 + $0xd8] sm:$0xff]  ;;  %v3615_v63 = vld [vmem:[#allocation2 + $0xc1] sm:$0xff]  ;;  %v7317_v3 = vpack.c.bf16 %v4312_v60, %v4311_v57 }
  0x46   : > { %477 = vmatmul.mubr.f32.gmra.mrb[2].mxu0 %v313_v45  ;;  %v3550_v0 = vld [vmem:[#allocation2 + $0xaa] sm:$0xff]  ;;  %3368 = vst.msk [vmem:[#allocation2 + $0x121] sm:$0xff] %vm3257_vm0, %v3335_v61  ;;  %7313 = vmatprep.subr.bf16.mxu0 %v7874_v34  ;;  %v3336_v4 = vld [vmem:[%s8099_s14 + $0xb8] sm:$0xff]  ;;  %v7639_v5 = vpack.i.bf16 %v3490_v62, %v3615_v63  ;;  %v3491_v10 = vld [vmem:[#allocation2 + $0xe0] sm:$0xff] }
  0x47   : > { %7590 = vrot.lane.b32.xlu0 %v7589_v1, %s7873_s23  ;;  %584 = vmatmul.mubr.f32.vlgmr.msra.gmra.mrb[0].mxu1 %v312_v31  ;;  %v315_v1 = vld [vmem:[%s8290_s18 + $0x18] sm:$0xff]  ;;  %v7644_v6 = vpack.i.bf16 %v3615_v63, %v3550_v0  ;;  %v4313_v8 = vld [vmem:[%s11049_s4 + $0x30] sm:$0xff]  ;;  %3369 = vst.msk [vmem:[#allocation2 + $0x129] sm:$0xff] %vm3257_vm0, %v3336_v4  ;;  %v3337_v12 = vld [vmem:[%s8099_s14 + $0xc0] sm:$0xff] }
  0x48   : > { %7595 = vrot.lane.b32.xlu1 %v7594_v7, %s7873_s23  ;;  %589 = vmatprep.mubr.f32.mxu1 %v7872_v2  ;;  %v3551_v7 = vld [vmem:[#allocation2 + $0xb2] sm:$0xff]  ;;  %v3616_v11 = vld [vmem:[#allocation2 + $0xc9] sm:$0xff]  ;;  %3370 = vst.msk [vmem:[#allocation2 + $0x139] sm:$0xff] %vm3257_vm0, %v3337_v12  ;;  %v316_v16 = vld [vmem:[%s8290_s18 + $0x20] sm:$0xff] }
  0x49   : > { %482 = vmatprep.mubr.f32.mxu0 %v7872_v2  ;;  %7315 = vmatpush1.bf16.msra.mxu0 %v7314_v56  ;;  %v4314_v9 = vld [vmem:[%s11049_s4 + $0x38] sm:$0xff]  ;;  %v3338_v13 = vld [vmem:[%s8099_s14 + $0xc8] sm:$0xff]  ;;  %v4315_v17 = vld [vmem:[%s11049_s4 + $0x40] sm:$0xff]  ;;  %v7649_v18 = vpack.i.bf16 %v3491_v10, %v3616_v11  ;;  %v7654_v19 = vpack.i.bf16 %v3616_v11, %v3551_v7 }
  0x4a   : > { %483 = vmatmul.mubr.f32.gmra.mrb[4].mxu0 %v314_v55  ;;  %7316 = vmatprep.subr.bf16.mxu0 %v7874_v34  ;;  %v3552_v14 = vld [vmem:[#allocation2 + $0xc2] sm:$0xff]  ;;  %v7320_v15 = vpack.c.bf16 %v4314_v9, %v4313_v8  ;;  %3371 = vst.msk [vmem:[#allocation2 + $0x141] sm:$0xff] %vm3257_vm0, %v3338_v13  ;;  %v3617_v20 = vld [vmem:[#allocation2 + $0xd9] sm:$0xff]  ;;  %v4317_v28 = vld [vmem:[%s11049_s4 + $0x50] sm:$0xff] }
  0x4b   : > { %7600 = vrot.lane.b32.xlu0 %v7599_v22, %s7873_s23  ;;  %590 = vmatmul.mubr.f32.gmra.mrb[2].mxu1 %v313_v45  ;;  %v4316_v21 = vld [vmem:[%s11049_s4 + $0x48] sm:$0xff]  ;;  %v3339_v22 = vld [vmem:[%s8099_s14 + $0xd0] sm:$0xff]  ;;  %v4339_v24 = vld [vmem:[%s11049_s4 + $0x100] sm:$0xff]  ;;  %v7664_v33 = vpack.i.bf16 %v3617_v20, %v3552_v14 }
  0x4c   : > { %7605 = vrot.lane.b32.xlu1 %v7604_v23, %s7873_s23  ;;  %595 = vmatprep.mubr.f32.mxu1 %v7872_v2  ;;  %v3492_v23 = vld [vmem:[#allocation2 + $0xf0] sm:$0xff]  ;;  %3372 = vst.msk [vmem:[#allocation2 + $0x151] sm:$0xff] %vm3257_vm0, %v3339_v22  ;;  %v4340_v25 = vld [vmem:[%s11049_s4 + $0x108] sm:$0xff]  ;;  %v3340_v26 = vld [vmem:[%s8099_s14 + $0xd8] sm:$0xff]  ;;  %v7323_v27 = vpack.c.bf16 %v4316_v21, %v4315_v17 }
  0x4d   : > { %488 = vmatprep.mubr.f32.mxu0 %v7872_v2  ;;  %7318 = vmatpush1.bf16.msra.mxu0 %v7317_v3  ;;  %v4318_v29 = vld [vmem:[%s11049_s4 + $0x58] sm:$0xff]  ;;  %v317_v30 = vld [vmem:[%s8290_s18 + $0x28] sm:$0xff]  ;;  %v8396_v31 = vpack.c.bf16 %v4340_v25, %v4339_v24  ;;  %3373 = vst.msk [vmem:[#allocation2 + $0x159] sm:$0xff] %vm3257_vm0, %v3340_v26  ;;  %v7659_v32 = vpack.i.bf16 %v3492_v23, %v3617_v20  ;;  %v4341_v35 = vld [vmem:[%s11049_s4 + $0x110] sm:$0xff] }
  0x4e   : > { %489 = vmatmul.mubr.f32.gmra.mrb[6].mxu0 %v315_v1  ;;  %7319 = vmatprep.subr.bf16.mxu0 %v7874_v34  ;;  %v4342_v36 = vld [vmem:[%s11049_s4 + $0x118] sm:$0xff]  ;;  %v3553_v39 = vld [vmem:[#allocation2 + $0xca] sm:$0xff]  ;;  %v7326_v40 = vpack.c.bf16 %v4318_v29, %v4317_v28  ;;  %v3341_v42 = vld [vmem:[%s8099_s14 + $0xe0] sm:$0xff] }
  0x4f   : > { %7610 = vrot.lane.b32.xlu0 %v7609_v37, %s7873_s23  ;;  %596 = vmatmul.mubr.f32.gmra.mrb[4].mxu1 %v314_v55  ;;  %v3493_v37 = vld [vmem:[#allocation2 + $0xf8] sm:$0xff]  ;;  %v8410_v41 = vpack.c.bf16 %v4342_v36, %v4341_v35  ;;  %v4319_v46 = vld [vmem:[%s11049_s4 + $0x60] sm:$0xff]  ;;  %v4320_v47 = vld [vmem:[%s11049_s4 + $0x68] sm:$0xff]  ;;  %3374 = vst.msk [vmem:[#allocation2 + $0x169] sm:$0xff] %vm3257_vm0, %v3341_v42 }
  0x50   : > { %7615 = vrot.lane.b32.xlu1 %v7614_v38, %s7873_s23  ;;  %601 = vmatprep.mubr.f32.mxu1 %v7872_v2  ;;  %v3618_v38 = vld [vmem:[#allocation2 + $0xe1] sm:$0xff]  ;;  %v318_v51 = vld [vmem:[%s8290_s18 + $0x30] sm:$0xff]  ;;  %v7329_v54 = vpack.c.bf16 %v4320_v47, %v4319_v46  ;;  %v3620_v57 = vld [vmem:[#allocation2 + $0xf9] sm:$0xff] }
  0x51   : > { %494 = vmatprep.mubr.f32.mxu0 %v7872_v2  ;;  %7321 = vmatpush1.bf16.msra.mxu0 %v7320_v15  ;;  %v7669_v43 = vpack.i.bf16 %v3493_v37, %v3618_v38  ;;  %v7674_v44 = vpack.i.bf16 %v3618_v38, %v3553_v39  ;;  %v3554_v45 = vld [vmem:[#allocation2 + $0xda] sm:$0xff]  ;;  %v3342_v50 = vld [vmem:[%s8099_s14 + $0xe8] sm:$0xff]  ;;  %v3495_v60 = vld [vmem:[#allocation2 + $0x110] sm:$0xff] }
  0x52   : > { %495 = vmatmul.mubr.f32.gmra.mrb[8].mxu0 %v316_v16  ;;  %7322 = vmatprep.subr.bf16.mxu0 %v7874_v34  ;;  %v4343_v52 = vld [vmem:[%s11049_s4 + $0x120] sm:$0xff]  ;;  %v4344_v53 = vld [vmem:[%s11049_s4 + $0x128] sm:$0xff]  ;;  %3375 = vst.msk [vmem:[#allocation2 + $0x171] sm:$0xff] %vm3257_vm0, %v3342_v50  ;;  %v3343_v63 = vld [vmem:[%s8099_s14 + $0xf0] sm:$0xff] }
  0x53   : > { %7620 = vrot.lane.b32.xlu0 %v7619_v48, %s7873_s23  ;;  %602 = vmatmul.mubr.f32.gmra.mrb[6].mxu1 %v315_v1  ;;  %v3494_v48 = vld [vmem:[#allocation2 + $0x108] sm:$0xff]  ;;  %v8444_v62 = vpack.c.bf16 %v4344_v53, %v4343_v52  ;;  %3376 = vst.msk [vmem:[#allocation2 + $0x181] sm:$0xff] %vm3257_vm0, %v3343_v63  ;;  %v3344_v0 = vld [vmem:[%s8099_s14 + $0xf8] sm:$0xff]  ;;  %v4345_v3 = vld [vmem:[%s11049_s4 + $0x130] sm:$0xff]  ;;  %s9311_s14 = scalar_lea.vmem %s11051_s6, %s7140_s12 }
  0x54   : > { %7625 = vrot.lane.b32.xlu1 %v7624_v49, %s7873_s23  ;;  %607 = vmatprep.mubr.f32.mxu1 %v7872_v2  ;;  %v3619_v49 = vld [vmem:[#allocation2 + $0xf1] sm:$0xff]  ;;  %v3555_v61 = vld [vmem:[#allocation2 + $0xe2] sm:$0xff]  ;;  %3377 = vst.msk [vmem:[#allocation2 + $0x189] sm:$0xff] %vm3257_vm0, %v3344_v0  ;;  %v3557_v22 = vld [vmem:[#allocation2 + $0xfa] sm:$0xff] }
  0x55   : > { %500 = vmatprep.mubr.f32.mxu0 %v7872_v2  ;;  %7324 = vmatpush1.bf16.msra.mxu0 %v7323_v27  ;;  %v7679_v55 = vpack.i.bf16 %v3494_v48, %v3619_v49  ;;  %v7684_v56 = vpack.i.bf16 %v3619_v49, %v3554_v45  ;;  %v4346_v4 = vld [vmem:[%s11049_s4 + $0x138] sm:$0xff]  ;;  %v4323_v7 = vld [vmem:[%s11049_s4 + $0x80] sm:$0xff]  ;;  %v4324_v8 = vld [vmem:[%s11049_s4 + $0x88] sm:$0xff] }
  0x56   : > { %501 = vmatmul.mubr.f32.gmra.mrb[10].mxu0 %v317_v30  ;;  %7438 = vmatpush1.bf16.msra.mxu1 %v8396_v31  ;;  %v3496_v9 = vld [vmem:[#allocation2 + $0x120] sm:$0xff]  ;;  %v3621_v10 = vld [vmem:[#allocation2 + $0x109] sm:$0xff]  ;;  %v3556_v11 = vld [vmem:[#allocation2 + $0xf2] sm:$0xff]  ;;  %v8471_v13 = vpack.c.bf16 %v4346_v4, %v4345_v3  ;;  %v7335_v14 = vpack.c.bf16 %v4324_v8, %v4323_v7 }
  0x57   : > { %7630 = vrot.lane.b32.xlu0 %v7629_v58, %s7873_s23  ;;  %608 = vmatmul.mubr.f32.gmra.mrb[8].mxu1 %v316_v16  ;;  %v4321_v58 = vld [vmem:[%s11049_s4 + $0x70] sm:$0xff]  ;;  %v319_v12 = vld [vmem:[%s8290_s18 + $0x38] sm:$0xff]  ;;  %v4347_v15 = vld [vmem:[%s11049_s4 + $0x140] sm:$0xff]  ;;  %v7699_v17 = vpack.i.bf16 %v3496_v9, %v3621_v10 }
  0x58   : > { %7635 = vrot.lane.b32.xlu1 %v7634_v59, %s7873_s23  ;;  %613 = vmatprep.mubr.f32.mxu1 %v7872_v2  ;;  %v4322_v59 = vld [vmem:[%s11049_s4 + $0x78] sm:$0xff]  ;;  %v4348_v16 = vld [vmem:[%s11049_s4 + $0x148] sm:$0xff]  ;;  %v4349_v25 = vld [vmem:[%s11049_s4 + $0x150] sm:$0xff] }
  0x59   : > { %7325 = vmatprep.subr.bf16.mxu0 %v7874_v34  ;;  %506 = vmatprep.mubr.f32.mxu0 %v7872_v2  ;;  %v7332_v1 = vpack.c.bf16 %v4322_v59, %v4321_v58  ;;  %v3497_v20 = vld [vmem:[#allocation2 + $0x128] sm:$0xff]  ;;  %v3622_v21 = vld [vmem:[#allocation2 + $0x111] sm:$0xff]  ;;  %v8490_v23 = vpack.c.bf16 %v4348_v16, %v4347_v15  ;;  %v4327_v29 = vld [vmem:[%s11049_s4 + $0xa0] sm:$0xff] }
  0x5a   : > { %7423 = vmatprep.subr.bf16.mxu1 %v7874_v34  ;;  %7327 = vmatpush1.bf16.msra.mxu0 %v7326_v40  ;;  %v4350_v26 = vld [vmem:[%s11049_s4 + $0x158] sm:$0xff]  ;;  %v7709_v27 = vpack.i.bf16 %v3497_v20, %v3622_v21  ;;  %v7714_v28 = vpack.i.bf16 %v3622_v21, %v3557_v22  ;;  %v3558_v35 = vld [vmem:[#allocation2 + $0x10a] sm:$0xff]  ;;  %v4351_v38 = vld [vmem:[%s11049_s4 + $0x160] sm:$0xff] }
  0x5b   : > { %7640 = vrot.lane.b32.xlu0 %v7639_v5, %s7873_s23  ;;  %614 = vmatmul.mubr.f32.gmra.mrb[10].mxu1 %v317_v30  ;;  %v7689_v5 = vpack.i.bf16 %v3495_v60, %v3620_v57  ;;  %v4328_v30 = vld [vmem:[%s11049_s4 + $0xa8] sm:$0xff]  ;;  %v8509_v36 = vpack.c.bf16 %v4350_v26, %v4349_v25  ;;  %v3499_v45 = vld [vmem:[#allocation2 + $0x140] sm:$0xff]  ;;  %v3559_v47 = vld [vmem:[#allocation2 + $0x112] sm:$0xff] }
  0x5c   : > { %7645 = vrot.lane.b32.xlu1 %v7644_v6, %s7873_s23  ;;  %7439 = vmatpush1.bf16.msra.mxu1 %v8410_v41  ;;  %v7694_v6 = vpack.i.bf16 %v3620_v57, %v3555_v61  ;;  %v7341_v37 = vpack.c.bf16 %v4328_v30, %v4327_v29  ;;  %v4352_v39 = vld [vmem:[%s11049_s4 + $0x168] sm:$0xff]  ;;  %v4353_v50 = vld [vmem:[%s11049_s4 + $0x170] sm:$0xff]  ;;  %v3625_v57 = vld [vmem:[#allocation2 + $0x139] sm:$0xff] }
  0x5d   : > { %7328 = vmatprep.subr.bf16.mxu0 %v7874_v34  ;;  %507 = vmatmul.mubr.f32.gmra.mrb[12].mxu0 %v318_v51  ;;  %v3624_v46 = vld [vmem:[#allocation2 + $0x129] sm:$0xff]  ;;  %v8528_v48 = vpack.c.bf16 %v4352_v39, %v4351_v38  ;;  %v4355_v61 = vld [vmem:[%s11049_s4 + $0x180] sm:$0xff]  ;;  %v4334_v4 = vld [vmem:[%s11049_s4 + $0xd8] sm:$0xff] }
  0x5e   : > { %619 = vmatprep.mubr.f32.mxu1 %v7872_v2  ;;  %7424 = vmatprep.subr.bf16.mxu1 %v7874_v34  ;;  %v7729_v52 = vpack.i.bf16 %v3499_v45, %v3624_v46  ;;  %v7734_v53 = vpack.i.bf16 %v3624_v46, %v3559_v47  ;;  %v3560_v58 = vld [vmem:[#allocation2 + $0x122] sm:$0xff]  ;;  %v4333_v3 = vld [vmem:[%s11049_s4 + $0xd0] sm:$0xff]  ;;  %v3628_v29 = vld [vmem:[#allocation2 + $0x159] sm:$0xff] }
  0x5f   : > { %7650 = vrot.lane.b32.xlu0 %v7649_v18, %s7873_s23  ;;  %7330 = vmatpush1.bf16.msra.mxu0 %v7329_v54  ;;  %v7704_v18 = vpack.i.bf16 %v3621_v10, %v3556_v11  ;;  %v4331_v54 = vld [vmem:[%s11049_s4 + $0xc0] sm:$0xff]  ;;  %v4356_v63 = vld [vmem:[%s11049_s4 + $0x188] sm:$0xff]  ;;  %v7350_v9 = vpack.c.bf16 %v4334_v4, %v4333_v3  ;;  %v4357_v10 = vld [vmem:[%s11049_s4 + $0x190] sm:$0xff] }
  0x60   : > { %7655 = vrot.lane.b32.xlu1 %v7654_v19, %s7873_s23  ;;  %620 = vmatmul.mubr.f32.gmra.mrb[12].mxu1 %v318_v51  ;;  %v4325_v19 = vld [vmem:[%s11049_s4 + $0x90] sm:$0xff]  ;;  %v4354_v51 = vld [vmem:[%s11049_s4 + $0x178] sm:$0xff]  ;;  %v8566_v8 = vpack.c.bf16 %v4356_v63, %v4355_v61  ;;  %v4335_v15 = vld [vmem:[%s11049_s4 + $0xe0] sm:$0xff] }
  0x61   : > { %7331 = vmatprep.subr.bf16.mxu0 %v7874_v34  ;;  %7440 = vmatpush1.bf16.msra.mxu1 %v8444_v62  ;;  %v8547_v59 = vpack.c.bf16 %v4354_v51, %v4353_v50  ;;  %v3561_v7 = vld [vmem:[#allocation2 + $0x12a] sm:$0xff]  ;;  %v4358_v11 = vld [vmem:[%s11049_s4 + $0x198] sm:$0xff]  ;;  %v4359_v21 = vld [vmem:[%s11049_s4 + $0x1a0] sm:$0xff] }
  0x62   : > { %512 = vmatprep.mubr.f32.mxu0 %v7872_v2  ;;  %7425 = vmatprep.subr.bf16.mxu1 %v7874_v34  ;;  %v4336_v16 = vld [vmem:[%s11049_s4 + $0xe8] sm:$0xff]  ;;  %v4337_v26 = vld [vmem:[%s11049_s4 + $0xf0] sm:$0xff]  ;;  %v4363_v45 = vld [vmem:[%s11049_s4 + $0x1c0] sm:$0xff] }
  0x63   : > { %7660 = vrot.lane.b32.xlu0 %v7659_v32, %s7873_s23  ;;  %7333 = vmatpush1.bf16.msra.mxu0 %v7332_v1  ;;  %v3498_v32 = vld [vmem:[#allocation2 + $0x138] sm:$0xff]  ;;  %v7744_v1 = vpack.i.bf16 %v3625_v57, %v3560_v58  ;;  %v7353_v20 = vpack.c.bf16 %v4336_v16, %v4335_v15  ;;  %v4360_v22 = vld [vmem:[%s11049_s4 + $0x1a8] sm:$0xff] }
  0x64   : > { %7665 = vrot.lane.b32.xlu1 %v7664_v33, %s7873_s23  ;;  %625 = vmatprep.mubr.f32.mxu1 %v7872_v2  ;;  %v4326_v2 = vld [vmem:[%s11049_s4 + $0x98] sm:$0xff]  ;;  %v3623_v33 = vld [vmem:[#allocation2 + $0x121] sm:$0xff]  ;;  %v3566_v58 = vld [vmem:[#allocation2 + $0x16a] sm:$0xff] }
  0x65   : > { %7334 = vmatprep.subr.bf16.mxu0 %v7874_v34  ;;  %513 = vmatmul.mubr.f32.gmra.mrb[14].mxu0 %v319_v12  ;;  %v7338_v24 = vpack.c.bf16 %v4326_v2, %v4325_v19  ;;  %v7719_v40 = vpack.i.bf16 %v3498_v32, %v3623_v33  ;;  %v7724_v42 = vpack.i.bf16 %v3623_v33, %v3558_v35  ;;  %v3562_v19 = vld [vmem:[#allocation2 + $0x13a] sm:$0xff]  ;;  %v3563_v30 = vld [vmem:[#allocation2 + $0x142] sm:$0xff]  ;;  %v4361_v35 = vld [vmem:[%s11049_s4 + $0x1b0] sm:$0xff] }
  0x66   : > { %7441 = vmatpush1.bf16.msra.mxu1 %v8471_v13  ;;  %v8585_v2 = vpack.c.bf16 %v4358_v11, %v4357_v10  ;;  %v8604_v32 = vpack.c.bf16 %v4360_v22, %v4359_v21  ;;  %v7774_v39 = vpack.i.bf16 %v3628_v29, %v3563_v30  ;;  %v4364_v46 = vld [vmem:[%s11049_s4 + $0x1c8] sm:$0xff]  ;;  %v3630_v51 = vld [vmem:[#allocation2 + $0x171] sm:$0xff]  ;;  %v8641_v61 = vld [vmem:[#allocation2 + $0x1a] sm:$0xff] }
  0x67   : > { %7670 = vrot.lane.b32.xlu0 %v7669_v43, %s7873_s23  ;;  %7336 = vmatpush1.bf16.msra.mxu0 %v7335_v14  ;;  %v4329_v43 = vld [vmem:[%s11049_s4 + $0xb0] sm:$0xff]  ;;  %v3505_v50 = vld [vmem:[#allocation2 + $0x188] sm:$0xff]  ;;  %v3604_v10 = vld [vmem:[#allocation2 + $0x39] sm:$0xff] }
  0x68   : > { %7675 = vrot.lane.b32.xlu1 %v7674_v44, %s7873_s23  ;;  %7426 = vmatprep.subr.bf16.mxu1 %v7874_v34  ;;  %v4330_v44 = vld [vmem:[%s11049_s4 + $0xb8] sm:$0xff]  ;;  %v4368_v3 = vld [vmem:[%s11049_s4 + $0x1e8] sm:$0xff] }
  0x69   : > { %7337 = vmatprep.subr.bf16.mxu0 %v7874_v34  ;;  %626 = vmatmul.mubr.f32.gmra.mrb[14].mxu1 %v319_v12  ;;  %v7344_v49 = vpack.c.bf16 %v4330_v44, %v4329_v43  ;;  %v3564_v43 = vld [vmem:[#allocation2 + $0x152] sm:$0xff]  ;;  %v3605_v22 = vld [vmem:[#allocation2 + $0x49] sm:$0xff]  ;;  %v8688_v30 = vld [vmem:[#allocation2 + $0x3a] sm:$0xff] }
  0x6a   : > { %7442 = vmatpush1.bf16.msra.mxu1 %v8490_v23  ;;  %v3603_v63 = vld [vmem:[#allocation2 + $0x31] sm:$0xff]  ;;  %v3633_v16 = vld [vmem:[#allocation2 + $0x199] sm:$0xff] }
  0x6b   : > { %7680 = vrot.lane.b32.xlu0 %v7679_v55, %s7873_s23  ;;  %7339 = vmatpush1.bf16.msra.mxu0 %v7338_v24  ;;  %v4332_v55 = vld [vmem:[%s11049_s4 + $0xc8] sm:$0xff]  ;;  %v8677_v21 = vld [vmem:[#allocation2 + $0x32] sm:$0xff] }
  0x6c   : > { %7685 = vrot.lane.b32.xlu1 %v7684_v56, %s7873_s23  ;;  %7427 = vmatprep.subr.bf16.mxu1 %v7874_v34  ;;  %v3500_v56 = vld [vmem:[#allocation2 + $0x150] sm:$0xff]  ;;  %v7347_v60 = vpack.c.bf16 %v4332_v55, %v4331_v54  ;;  %v4366_v55 = vld [vmem:[%s11049_s4 + $0x1d8] sm:$0xff] }
  0x6d   : > { %7340 = vmatprep.subr.bf16.mxu0 %v7874_v34  ;;  %v7739_v0 = vpack.i.bf16 %v3500_v56, %v3625_v57  ;;  %v4365_v54 = vld [vmem:[%s11049_s4 + $0x1d0] sm:$0xff]  ;;  %v7789_v56 = vpack.i.bf16 %v3505_v50, %v3630_v51 }
  0x6e   : > { %7443 = vmatpush1.bf16.msra.mxu1 %v8509_v36  ;;  %v3608_v50 = vld [vmem:[#allocation2 + $0x69] sm:$0xff] }
  0x6f   : > { %7690 = vrot.lane.b32.xlu0 %v7689_v5, %s7873_s23  ;;  %7342 = vmatpush1.bf16.msra.mxu0 %v7341_v37  ;;  %v3501_v5 = vld [vmem:[#allocation2 + $0x158] sm:$0xff] }
  0x70   : > { %7695 = vrot.lane.b32.xlu1 %v7694_v6, %s7873_s23  ;;  %7428 = vmatprep.subr.bf16.mxu1 %v7874_v34  ;;  %v3626_v6 = vld [vmem:[#allocation2 + $0x141] sm:$0xff]  ;;  %v4362_v37 = vld [vmem:[%s11049_s4 + $0x1b8] sm:$0xff] }
  0x71   : > { %7343 = vmatprep.subr.bf16.mxu0 %v7874_v34  ;;  %v7749_v12 = vpack.i.bf16 %v3501_v5, %v3626_v6  ;;  %v7754_v14 = vpack.i.bf16 %v3626_v6, %v3561_v7  ;;  %v8617_v44 = vpack.c.bf16 %v4362_v37, %v4361_v35  ;;  %v3567_v5 = vld [vmem:[#allocation2 + $0x172] sm:$0xff]  ;;  %v7804_v6 = vpack.i.bf16 %v8641_v61, %v3603_v63  ;;  %v3632_v7 = vld [vmem:[#allocation2 + $0x189] sm:$0xff] }
  0x72   : > { %7444 = vmatpush1.bf16.msra.mxu1 %v8528_v48  ;;  %v7809_v15 = vpack.i.bf16 %v3567_v5, %v3632_v7  ;;  %v8707_v5 = vld [vmem:[#allocation2 + $0x6a] sm:$0xff] }
  0x73   : > { %7700 = vrot.lane.b32.xlu0 %v7699_v17, %s7873_s23  ;;  %7345 = vmatpush1.bf16.msra.mxu0 %v7344_v49  ;;  %v3502_v17 = vld [vmem:[#allocation2 + $0x168] sm:$0xff] }
  0x74   : > { %7705 = vrot.lane.b32.xlu1 %v7704_v18, %s7873_s23  ;;  %7429 = vmatprep.subr.bf16.mxu1 %v7874_v34  ;;  %v3627_v18 = vld [vmem:[#allocation2 + $0x151] sm:$0xff] }
  0x75   : > { %7346 = vmatprep.subr.bf16.mxu0 %v7874_v34  ;;  %v7759_v24 = vpack.i.bf16 %v3502_v17, %v3627_v18  ;;  %v7764_v25 = vpack.i.bf16 %v3627_v18, %v3562_v19  ;;  %v4371_v18 = vld [vmem:[%s11049_s4 + $0x200] sm:$0xff]  ;;  %v4372_v19 = vld [vmem:[%s11049_s4 + $0x208] sm:$0xff] }
  0x76   : > { %7445 = vmatpush1.bf16.msra.mxu1 %v8547_v59 }
  0x77   : > { %7710 = vrot.lane.b32.xlu0 %v7709_v27, %s7873_s23  ;;  %7348 = vmatpush1.bf16.msra.mxu0 %v7347_v60  ;;  %v4338_v27 = vld [vmem:[%s11049_s4 + $0xf8] sm:$0xff]  ;;  %v3631_v60 = vld [vmem:[#allocation2 + $0x181] sm:$0xff] }
  0x78   : > { %7715 = vrot.lane.b32.xlu1 %v7714_v28, %s7873_s23  ;;  %7430 = vmatprep.subr.bf16.mxu1 %v7874_v34  ;;  %v3503_v28 = vld [vmem:[#allocation2 + $0x170] sm:$0xff]  ;;  %v7356_v33 = vpack.c.bf16 %v4338_v27, %v4337_v26  ;;  %v7799_v4 = vpack.i.bf16 %v3566_v58, %v3631_v60  ;;  %v3379_v60 = vld [vmem:[#allocation2 + $0x8] sm:$0xff] }
  0x79   : > { %7349 = vmatprep.subr.bf16.mxu0 %v7874_v34  ;;  %v7769_v38 = vpack.i.bf16 %v3503_v28, %v3628_v29  ;;  %v3569_v27 = vld [vmem:[#allocation2 + $0x18a] sm:$0xff]  ;;  %v7824_v28 = vpack.i.bf16 %v8677_v21, %v3605_v22  ;;  %v3634_v29 = vld [vmem:[#allocation2 + $0x1a1] sm:$0xff] }
  0x7a   : > { %7446 = vmatpush1.bf16.msra.mxu1 %v8566_v8  ;;  %v7829_v35 = vpack.i.bf16 %v3569_v27, %v3634_v29  ;;  %v3443_v58 = vld [vmem:[#allocation2 + $0xa] sm:$0xff] }
  0x7b   : > { %7720 = vrot.lane.b32.xlu0 %v7719_v40, %s7873_s23  ;;  %7351 = vmatpush1.bf16.msra.mxu0 %v7350_v9  ;;  %v3504_v40 = vld [vmem:[#allocation2 + $0x180] sm:$0xff] }
  0x7c   : > { %7725 = vrot.lane.b32.xlu1 %v7724_v42, %s7873_s23  ;;  %7431 = vmatprep.subr.bf16.mxu1 %v7874_v34  ;;  %v3629_v42 = vld [vmem:[#allocation2 + $0x169] sm:$0xff] }
  0x7d   : > { %7352 = vmatprep.subr.bf16.mxu0 %v7874_v34  ;;  %v7779_v47 = vpack.i.bf16 %v3504_v40, %v3629_v42  ;;  %v7784_v49 = vpack.i.bf16 %v3629_v42, %v3564_v43  ;;  %v8656_v9 = vld [vmem:[#allocation2 + $0x22] sm:$0xff] }
  0x7e   : > { %7447 = vmatpush1.bf16.msra.mxu1 %v8585_v2  ;;  %v7814_v17 = vpack.i.bf16 %v8656_v9, %v3604_v10  ;;  %v3442_v43 = vld [vmem:[#allocation2 + $0x2] sm:$0xff] }
  0x7f   : > { %7730 = vrot.lane.b32.xlu0 %v7729_v52, %s7873_s23  ;;  %7354 = vmatpush1.bf16.msra.mxu0 %v7353_v20  ;;  %v3565_v52 = vld [vmem:[#allocation2 + $0x15a] sm:$0xff]  ;;  %v3568_v20 = vld [vmem:[#allocation2 + $0x182] sm:$0xff] }
  0x80   : > { %7735 = vrot.lane.b32.xlu1 %v7734_v53, %s7873_s23  ;;  %7432 = vmatprep.subr.bf16.mxu1 %v7874_v34  ;;  %v8630_v53 = vpack.c.bf16 %v4364_v46, %v4363_v45  ;;  %v7794_v57 = vpack.i.bf16 %v3630_v51, %v3565_v52  ;;  %v7819_v26 = vpack.i.bf16 %v3568_v20, %v3633_v16  ;;  %v3378_v45 = vld [vmem:[#allocation2] sm:$0xff] }
  0x81   : > { %7355 = vmatprep.subr.bf16.mxu0 %v7874_v34  ;;  %v8716_v16 = vld [vmem:[#allocation2 + $0x79] sm:$0xff] }
  0x82   : > { %7448 = vmatpush1.bf16.msra.mxu1 %v8604_v32 }
  0x83   : > { %7740 = vrot.lane.b32.xlu0 %v7739_v0, %s7873_s23  ;;  %7357 = vmatpush1.bf16.msra.mxu0 %v7356_v33  ;;  %v8644_v0 = vpack.c.bf16 %v4366_v55, %v4365_v54  ;;  %v3606_v33 = vld [vmem:[#allocation2 + $0x51] sm:$0xff] }
  0x84   : > { %7745 = vrot.lane.b32.xlu1 %v7744_v1, %s7873_s23  ;;  %7433 = vmatprep.subr.bf16.mxu1 %v7874_v34  ;;  %v4367_v1 = vld [vmem:[%s11049_s4 + $0x1e0] sm:$0xff]  ;;  %v7834_v37 = vpack.i.bf16 %v8688_v30, %v3606_v33 }
  0x85   : > { %7358 = vmatprep.subr.bf16.mxu0 %v7874_v34  ;;  %v8659_v11 = vpack.c.bf16 %v4368_v3, %v4367_v1 }
  0x86   : > { %7449 = vmatpush1.bf16.msra.mxu1 %v8617_v44 }
  0x87   : > { %7750 = vrot.lane.b32.xlu0 %v7749_v12, %s7873_s23  ;;  %7434 = vmatprep.subr.bf16.mxu1 %v7874_v34  ;;  %v4369_v12 = vld [vmem:[%s11049_s4 + $0x1f0] sm:$0xff] }
  0x88   : > { %7755 = vrot.lane.b32.xlu1 %v7754_v14, %s7873_s23  ;;  %v4370_v14 = vld [vmem:[%s11049_s4 + $0x1f8] sm:$0xff] }
  0x8a   : > { %7450 = vmatpush1.bf16.msra.mxu1 %v8630_v53 }
  0x8b   : > { %7760 = vrot.lane.b32.xlu0 %v7759_v24, %s7873_s23  ;;  %7435 = vmatprep.subr.bf16.mxu1 %v7874_v34  ;;  %v8680_v24 = vpack.c.bf16 %v4370_v14, %v4369_v12 }
  0x8c   : > { %7765 = vrot.lane.b32.xlu1 %v7764_v25, %s7873_s23  ;;  %v8683_v25 = vpack.c.bf16 %v4372_v19, %v4371_v18 }
  0x8e   : > { %7451 = vmatpush1.bf16.msra.mxu1 %v8644_v0 }
  0x8f   : > { %7770 = vrot.lane.b32.xlu0 %v7769_v38, %s7873_s23  ;;  %7436 = vmatprep.subr.bf16.mxu1 %v7874_v34  ;;  %v8695_v38 = vld [vmem:[#allocation2 + $0x4a] sm:$0xff] }
  0x90   : > { %7775 = vrot.lane.b32.xlu1 %v7774_v39, %s7873_s23  ;;  %v3607_v39 = vld [vmem:[#allocation2 + $0x61] sm:$0xff] }
  0x91   : > { %v7839_v51 = vpack.i.bf16 %v8695_v38, %v3607_v39  ;;  %v3382_v39 = vld [vmem:[#allocation2 + $0x30] sm:$0xff] }
  0x92   : > { %7452 = vmatpush1.bf16.msra.mxu1 %v8659_v11 }
  0x93   : > { %7780 = vrot.lane.b32.xlu0 %v7779_v47, %s7873_s23  ;;  %7437 = vmatprep.subr.bf16.mxu1 %v7874_v34 }
  0x94   : > { %7785 = vrot.lane.b32.xlu1 %v7784_v49, %s7873_s23  ;;  %v8697_v49 = vld [vmem:[#allocation2 + $0x52] sm:$0xff] }
  0x95   : > { %v7844_v63 = vpack.i.bf16 %v8697_v49, %v3608_v50 }
  0x96   : > { %7453 = vmatpush1.bf16.msra.mxu1 %v8680_v24 }
  0x97   : > { %7790 = vrot.lane.b32.xlu0 %v7789_v56, %s7873_s23  ;;  %7407 = vmatprep.subr.bf16.mxu1 %v8683_v25 }
  0x98   : > { %7795 = vrot.lane.b32.xlu1 %v7794_v57, %s7873_s23 }
  0x9b   : > { %7800 = vrot.lane.b32.xlu0 %v7799_v4, %s7873_s23  ;;  %v8705_v4 = vld [vmem:[#allocation2 + $0x62] sm:$0xff] }
  0x9c   : > { %7805 = vrot.lane.b32.xlu1 %v7804_v6, %s7873_s23  ;;  %v7849_v19 = vpack.i.bf16 %v8705_v4, %v8716_v16 }
  0x9f   : > { %7810 = vrot.lane.b32.xlu0 %v7809_v15, %s7873_s23  ;;  %v3380_v15 = vld [vmem:[#allocation2 + $0x18] sm:$0xff] }
  0xa0   : > { %7815 = vrot.lane.b32.xlu1 %v7814_v17, %s7873_s23  ;;  %v8718_v17 = vld [vmem:[#allocation2 + $0x81] sm:$0xff] }
  0xa1   : > { %v7854_v20 = vpack.i.bf16 %v8707_v5, %v8718_v17 }
  0xa3   : > { %7820 = vrot.lane.b32.xlu0 %v7819_v26, %s7873_s23 }
  0xa4   : > { %7825 = vrot.lane.b32.xlu1 %v7824_v28, %s7873_s23  ;;  %v3381_v28 = vld [vmem:[#allocation2 + $0x20] sm:$0xff] }
  0xa5   : > { %v7541_v40 = vpop.permute.xlu0 %7540 }
  0xa6   : > { %v7551_v42 = vpop.permute.xlu1 %7550  ;;  %v7543_v46 = vunpack.i.h.bf16 %v7541_v40  ;;  %v7542_v47 = vunpack.i.l.bf16 %v7541_v40 }
  0xa7   : > { %7830 = vrot.lane.b32.xlu0 %v7829_v35, %s7873_s23  ;;  %v7552_v52 = vunpack.i.l.bf16 %v7551_v42  ;;  %v7553_v6 = vunpack.i.h.bf16 %v7551_v42 }
  0xa8   : > { %7835 = vrot.lane.b32.xlu1 %v7834_v37, %s7873_s23  ;;  %v4211_v54 = vsel %vm3257_vm0, %v3442_v43, %v7542_v47  ;;  %v4179_v55 = vsel %vm3257_vm0, %v3378_v45, %v7543_v46  ;;  %v3383_v47 = vld [vmem:[#allocation2 + $0x38] sm:$0xff] }
  0xa9   : > { %v7546_v56 = vpop.permute.xlu0 %7545  ;;  %4546 = vmatprep.mubr.f32.mxu0 %v4211_v54  ;;  %v4213_v14 = vsel %vm3257_vm0, %v8641_v61, %v7552_v52  ;;  %v4181_v22 = vsel %vm3257_vm0, %v3380_v15, %v7553_v6  ;;  %v8787_v15 = vld [vmem:[#allocation2 + $0x98] sm:$0xff] }
  0xaa   : > { %v7556_v57 = vpop.permute.xlu1 %7555  ;;  %v7548_v1 = vunpack.i.h.bf16 %v7546_v56  ;;  %v7547_v3 = vunpack.i.l.bf16 %v7546_v56  ;;  %4547 = vmatmul.mubr.f32.vlgmr.msra.gmra.mrb[16].mxu0 %v4179_v55 }
  0xab   : > { %7360 = vmatpush1.bf16.msra.mxu0 %v8396_v31  ;;  %7840 = vrot.lane.b32.xlu0 %v7839_v51, %s7873_s23  ;;  %v7557_v7 = vunpack.i.l.bf16 %v7556_v57  ;;  %v7558_v61 = vunpack.i.h.bf16 %v7556_v57  ;;  %v8762_v57 = vld [vmem:[#allocation2 + $0x90] sm:$0xff] }
  0xac   : > { %v4212_v10 = vsel %vm3257_vm0, %v3443_v58, %v7547_v3  ;;  %v4180_v12 = vsel %vm3257_vm0, %v3379_v60, %v7548_v1  ;;  %7361 = vmatprep.subr.bf16.mxu0 %v7874_v34  ;;  %7845 = vrot.lane.b32.xlu1 %v7844_v63, %s7873_s23 }
  0xad   : > { %v7561_v18 = vpop.permute.xlu0 %7560  ;;  %4551 = vmatprep.mubr.f32.mxu0 %v4212_v10  ;;  %v4214_v27 = vsel %vm3257_vm0, %v8656_v9, %v7557_v7  ;;  %v4182_v37 = vsel %vm3257_vm0, %v3381_v28, %v7558_v61  ;;  %v3385_v7 = vld [vmem:[#allocation2 + $0x50] sm:$0xff] }
  0xae   : > { %v7566_v31 = vpop.permute.xlu1 %7565  ;;  %4552 = vmatmul.mubr.f32.gmra.mrb[18].mxu0 %v4180_v12  ;;  %v7562_v26 = vunpack.i.l.bf16 %v7561_v18  ;;  %v7563_v35 = vunpack.i.h.bf16 %v7561_v18  ;;  %v4373_v10 = vld [vmem:[%s11049_s4 + $0x210] sm:$0xff] }
  0xaf   : > { %4556 = vmatprep.mubr.f32.mxu0 %v4213_v14  ;;  %7363 = vmatpush1.bf16.msra.mxu0 %v8410_v41  ;;  %v7567_v41 = vunpack.i.l.bf16 %v7566_v31  ;;  %v7568_v43 = vunpack.i.h.bf16 %v7566_v31 }
  0xb0   : > { %7364 = vmatprep.subr.bf16.mxu0 %v7874_v34  ;;  %7850 = vrot.lane.b32.xlu0 %v7849_v19, %s7873_s23  ;;  %v4215_v9 = vsel %vm3257_vm0, %v8677_v21, %v7562_v26  ;;  %v4183_v45 = vsel %vm3257_vm0, %v3382_v39, %v7563_v35 }
  0xb1   : > { %v7571_v29 = vpop.permute.xlu0 %7570  ;;  %7855 = vrot.lane.b32.xlu1 %v7854_v20, %s7873_s23  ;;  %v4184_v52 = vsel %vm3257_vm0, %v3383_v47, %v7568_v43  ;;  %v4376_v43 = vld [vmem:[%s11049_s4 + $0x228] sm:$0xff]  ;;  %v3517_v47 = vld [vmem:[#allocation2 + $0x99] sm:$0xff] }
  0xb2   : > { %v8730_v33 = vpop.permute.xlu1 %7575  ;;  %4557 = vmatmul.mubr.f32.gmra.mrb[20].mxu0 %v4181_v22  ;;  %v7572_v46 = vunpack.i.l.bf16 %v7571_v29  ;;  %v7573_v51 = vunpack.i.h.bf16 %v7571_v29 }
  0xb3   : > { %4561 = vmatprep.mubr.f32.mxu0 %v4214_v27  ;;  %7366 = vmatpush1.bf16.msra.mxu0 %v8444_v62  ;;  %v4216_v62 = vsel %vm3257_vm0, %v8688_v30, %v7567_v41  ;;  %v3384_v30 = vld [vmem:[#allocation2 + $0x48] sm:$0xff]  ;;  %v3386_v27 = vld [vmem:[#allocation2 + $0x60] sm:$0xff] }
  0xb4   : > { %7367 = vmatprep.subr.bf16.mxu0 %v7874_v34  ;;  %v4217_v54 = vsel %vm3257_vm0, %v8695_v38, %v7572_v46  ;;  %v4185_v63 = vsel %vm3257_vm0, %v3384_v30, %v7573_v51 }
  0xb5   : > { %v8739_v40 = vpop.permute.xlu0 %7580 }
  0xb6   : > { %v8741_v42 = vpop.permute.xlu1 %7585  ;;  %4562 = vmatmul.mubr.f32.gmra.mrb[22].mxu0 %v4182_v37  ;;  %v7582_v38 = vunpack.i.l.bf16 %v8739_v40  ;;  %v7583_v18 = vunpack.i.h.bf16 %v8739_v40  ;;  %v3387_v40 = vld [vmem:[#allocation2 + $0x68] sm:$0xff] }
  0xb7   : > { %4566 = vmatprep.mubr.f32.mxu0 %v4215_v9  ;;  %7369 = vmatpush1.bf16.msra.mxu0 %v8471_v13  ;;  %v7577_v13 = vunpack.i.l.bf16 %v8730_v33  ;;  %v7587_v20 = vunpack.i.l.bf16 %v8741_v42 }
  0xb8   : > { %7370 = vmatprep.subr.bf16.mxu0 %v7874_v34  ;;  %v4219_v26 = vsel %vm3257_vm0, %v8705_v4, %v7582_v38  ;;  %v7588_v4 = vunpack.i.h.bf16 %v8741_v42  ;;  %v4375_v42 = vld [vmem:[%s11049_s4 + $0x220] sm:$0xff] }
  0xb9   : > { %v8748_v21 = vpop.permute.xlu0 %7590  ;;  %v4218_v6 = vsel %vm3257_vm0, %v8697_v49, %v7577_v13  ;;  %v4220_v39 = vsel %vm3257_vm0, %v8707_v5, %v7587_v20  ;;  %v3452_v5 = vld [vmem:[#allocation2 + $0x7a] sm:$0xff] }
  0xba   : > { %v8750_v50 = vpop.permute.xlu1 %7595  ;;  %4567 = vmatmul.mubr.f32.gmra.mrb[24].mxu0 %v4183_v45  ;;  %v7592_v37 = vunpack.i.l.bf16 %v8748_v21  ;;  %v4188_v13 = vsel %vm3257_vm0, %v3387_v40, %v7588_v4  ;;  %v4378_v20 = vld [vmem:[%s11049_s4 + $0x238] sm:$0xff] }
  0xbb   : > { %4571 = vmatprep.mubr.f32.mxu0 %v4216_v62  ;;  %7372 = vmatpush1.bf16.msra.mxu0 %v8490_v23  ;;  %v7578_v23 = vunpack.i.h.bf16 %v8730_v33  ;;  %v3516_v33 = vld [vmem:[#allocation2 + $0x91] sm:$0xff]  ;;  %v7597_v30 = vunpack.i.l.bf16 %v8750_v50 }
  0xbc   : > { %7373 = vmatprep.subr.bf16.mxu0 %v7874_v34  ;;  %v8830_v62 = vld [vmem:[#allocation2 + $0xb0] sm:$0xff]  ;;  %v8887_v40 = vld [vmem:[#allocation2 + $0xd8] sm:$0xff] }
  0xbd   : > { %v8758_v55 = vpop.permute.xlu0 %7600  ;;  %v4186_v31 = vsel %vm3257_vm0, %v3385_v7, %v7578_v23  ;;  %v4221_v23 = vsel %vm3257_vm0, %v3452_v5, %v7592_v37 }
  0xbe   : > { %v8760_v56 = vpop.permute.xlu1 %7605  ;;  %v7602_v58 = vunpack.i.l.bf16 %v8758_v55  ;;  %4572 = vmatmul.mubr.f32.gmra.mrb[26].mxu0 %v4184_v52  ;;  %v7593_v52 = vunpack.i.h.bf16 %v8748_v21 }
  0xbf   : > { %v7607_v60 = vunpack.i.l.bf16 %v8760_v56  ;;  %4576 = vmatprep.mubr.f32.mxu0 %v4217_v54  ;;  %7375 = vmatpush1.bf16.msra.mxu0 %v8509_v36  ;;  %v4374_v36 = vld [vmem:[%s11049_s4 + $0x218] sm:$0xff]  ;;  %v7414_v54 = vpack.c.bf16 %v4376_v43, %v4375_v42  ;;  %v3520_v42 = vld [vmem:[#allocation2 + $0xc1] sm:$0xff] }
  0xc0   : > { %v4283_v1 = vsel %vm3257_vm0, %v8762_v57, %v7602_v58  ;;  %7376 = vmatprep.subr.bf16.mxu0 %v7874_v34  ;;  %v7410_v19 = vpack.c.bf16 %v4374_v36, %v4373_v10  ;;  %v7598_v36 = vunpack.i.h.bf16 %v8750_v50  ;;  %v4377_v50 = vld [vmem:[%s11049_s4 + $0x230] sm:$0xff]  ;;  %v3455_v43 = vld [vmem:[#allocation2 + $0x9a] sm:$0xff] }
  0xc1   : > { %v4251_v3 = vsel %vm3257_vm0, %v8716_v16, %v7607_v60  ;;  %v8783_v12 = vpop.permute.xlu0 %7610  ;;  %4811 = vmatprep.mubr.f32.mxu1 %v4283_v1  ;;  %v8847_v1 = vld [vmem:[#allocation2 + $0xc0] sm:$0xff]  ;;  %v7418_v4 = vpack.c.bf16 %v4378_v20, %v4377_v50 }
  0xc2   : > { %v8785_v14 = vpop.permute.xlu1 %7615  ;;  %v7612_v49 = vunpack.i.l.bf16 %v8783_v12  ;;  %4577 = vmatmul.mubr.f32.gmra.mrb[28].mxu0 %v4185_v63  ;;  %4812 = vmatmul.mubr.f32.vlgmr.msra.gmra.mrb[16].mxu1 %v4251_v3  ;;  %v3388_v63 = vld [vmem:[#allocation2 + $0x78] sm:$0xff]  ;;  %v3518_v3 = vld [vmem:[#allocation2 + $0xa9] sm:$0xff] }
  0xc3   : > { %v7617_v16 = vunpack.i.l.bf16 %v8785_v14  ;;  %4581 = vmatprep.mubr.f32.mxu0 %v4218_v6  ;;  %7409 = vmatpush3.bf16.msra.mxu1 %v8683_v25  ;;  %v8806_v25 = vld [vmem:[#allocation2 + $0xa8] sm:$0xff]  ;;  %v7618_v5 = vunpack.i.h.bf16 %v8785_v14 }
  0xc4   : > { %v4284_v61 = vsel %vm3257_vm0, %v8787_v15, %v7612_v49  ;;  %7378 = vmatpush1.bf16.msra.mxu0 %v8528_v48  ;;  %v4187_v48 = vsel %vm3257_vm0, %v3386_v27, %v7583_v18  ;;  %7411 = vmatprep.subr.bf16.mxu1 %v7410_v19  ;;  %v3453_v6 = vld [vmem:[#allocation2 + $0x82] sm:$0xff]  ;;  %v7603_v49 = vunpack.i.h.bf16 %v8758_v55  ;;  %v3454_v27 = vld [vmem:[#allocation2 + $0x92] sm:$0xff] }
  0xc5   : > { %v4252_v22 = vsel %vm3257_vm0, %v8718_v17, %v7617_v16  ;;  %v8802_v28 = vpop.permute.xlu0 %7620  ;;  %4816 = vmatprep.mubr.f32.mxu1 %v4284_v61  ;;  %7379 = vmatprep.subr.bf16.mxu0 %v7874_v34 }
  0xc6   : > { %v8804_v29 = vpop.permute.xlu1 %7625  ;;  %v7622_v35 = vunpack.i.l.bf16 %v8802_v28  ;;  %4582 = vmatmul.mubr.f32.gmra.mrb[30].mxu0 %v4186_v31  ;;  %4817 = vmatmul.mubr.f32.gmra.mrb[18].mxu1 %v4252_v22  ;;  %v4222_v31 = vsel %vm3257_vm0, %v3453_v6, %v7597_v30  ;;  %v8870_v22 = vld [vmem:[#allocation2 + $0xc8] sm:$0xff]  ;;  %v8905_v30 = vld [vmem:[#allocation2 + $0xe0] sm:$0xff] }
  0xc7   : > { %v7627_v17 = vunpack.i.l.bf16 %v8804_v29  ;;  %4586 = vmatprep.mubr.f32.mxu0 %v4219_v26  ;;  %7413 = vmatpush3.bf16.msra.mxu1 %v7410_v19  ;;  %v3389_v19 = vld [vmem:[#allocation2 + $0x80] sm:$0xff]  ;;  %v3519_v26 = vld [vmem:[#allocation2 + $0xb1] sm:$0xff] }
  0xc8   : > { %v4285_v41 = vsel %vm3257_vm0, %v8806_v25, %v7622_v35  ;;  %7381 = vmatpush1.bf16.msra.mxu0 %v8547_v59  ;;  %7415 = vmatprep.subr.bf16.mxu1 %v7414_v54  ;;  %v7608_v35 = vunpack.i.h.bf16 %v8760_v56 }
  0xc9   : > { %v4253_v9 = vsel %vm3257_vm0, %v3516_v33, %v7627_v17  ;;  %v8826_v45 = vpop.permute.xlu0 %7630  ;;  %4821 = vmatprep.mubr.f32.mxu1 %v4285_v41  ;;  %7382 = vmatprep.subr.bf16.mxu0 %v7874_v34  ;;  %v4190_v17 = vsel %vm3257_vm0, %v3389_v19, %v7598_v36  ;;  %v8923_v36 = vld [vmem:[#allocation2 + $0xf0] sm:$0xff] }
  0xca   : > { %v8828_v46 = vpop.permute.xlu1 %7635  ;;  %v7632_v59 = vunpack.i.l.bf16 %v8826_v45  ;;  %4587 = vmatmul.mubr.f32.gmra.mrb[32].mxu0 %v4187_v48  ;;  %4822 = vmatmul.mubr.f32.gmra.mrb[20].mxu1 %v4253_v9  ;;  %v7613_v48 = vunpack.i.h.bf16 %v8783_v12  ;;  %v4223_v9 = vsel %vm3257_vm0, %v3454_v27, %v7603_v49  ;;  %v3523_v27 = vld [vmem:[#allocation2 + $0xe1] sm:$0xff] }
  0xcb   : > { %v7637_v51 = vunpack.i.l.bf16 %v8828_v46  ;;  %4591 = vmatprep.mubr.f32.mxu0 %v4220_v39  ;;  %7417 = vmatpush3.bf16.msra.mxu1 %v7414_v54 }
  0xcc   : > { %v4286_v58 = vsel %vm3257_vm0, %v8830_v62, %v7632_v59  ;;  %7384 = vmatpush1.bf16.msra.mxu0 %v8566_v8  ;;  %v4189_v8 = vsel %vm3257_vm0, %v3388_v63, %v7593_v52  ;;  %7419 = vmatprep.subr.bf16.mxu1 %v7418_v4  ;;  %v7623_v59 = vunpack.i.h.bf16 %v8802_v28  ;;  %v7633_v63 = vunpack.i.h.bf16 %v8826_v45 }
  0xcd   : > { %v4254_v60 = vsel %vm3257_vm0, %v3517_v47, %v7637_v51  ;;  %v8843_v38 = vpop.permute.xlu0 %7640  ;;  %4826 = vmatprep.mubr.f32.mxu1 %v4286_v58  ;;  %7385 = vmatprep.subr.bf16.mxu0 %v7874_v34  ;;  %v3456_v58 = vld [vmem:[#allocation2 + $0xaa] sm:$0xff] }
  0xce   : > { %v8845_v21 = vpop.permute.xlu1 %7645  ;;  %v7642_v7 = vunpack.i.l.bf16 %v8843_v38  ;;  %4592 = vmatmul.mubr.f32.gmra.mrb[34].mxu0 %v4188_v13  ;;  %4827 = vmatmul.mubr.f32.gmra.mrb[22].mxu1 %v4254_v60  ;;  %v4224_v13 = vsel %vm3257_vm0, %v3455_v43, %v7613_v48 }
  0xcf   : > { %v7647_v10 = vunpack.i.l.bf16 %v8845_v21  ;;  %4596 = vmatprep.mubr.f32.mxu0 %v4221_v23  ;;  %v7628_v23 = vunpack.i.h.bf16 %v8804_v29  ;;  %7421 = vmatpush3.bf16.msra.mxu1 %v7418_v4 }
  0xd0   : > { %v4287_v16 = vsel %vm3257_vm0, %v8847_v1, %v7642_v7  ;;  %7387 = vmatpush1.bf16.msra.mxu0 %v8585_v2  ;;  %v4225_v7 = vsel %vm3257_vm0, %v3456_v58, %v7623_v59 }
  0xd1   : > { %v4255_v18 = vsel %vm3257_vm0, %v3518_v3, %v7647_v10  ;;  %v8866_v61 = vpop.permute.xlu0 %7650  ;;  %4831 = vmatprep.mubr.f32.mxu1 %v4287_v16  ;;  %7388 = vmatprep.subr.bf16.mxu0 %v7874_v34  ;;  %v7638_v16 = vunpack.i.h.bf16 %v8828_v46  ;;  %v8941_v46 = vld [vmem:[#allocation2 + $0xf8] sm:$0xff] }
  0xd2   : > { %v8868_v55 = vpop.permute.xlu1 %7655  ;;  %v7652_v2 = vunpack.i.l.bf16 %v8866_v61  ;;  %4597 = vmatmul.mubr.f32.gmra.mrb[36].mxu0 %v4189_v8  ;;  %4832 = vmatmul.mubr.f32.gmra.mrb[24].mxu1 %v4255_v18  ;;  %v3457_v8 = vld [vmem:[#allocation2 + $0xb2] sm:$0xff]  ;;  %v7643_v18 = vunpack.i.h.bf16 %v8843_v38 }
  0xd3   : > { %v7657_v33 = vunpack.i.l.bf16 %v8868_v55  ;;  %4601 = vmatprep.mubr.f32.mxu0 %v4222_v31  ;;  %v4226_v50 = vsel %vm3257_vm0, %v3457_v8, %v7633_v63  ;;  %v7658_v43 = vunpack.i.h.bf16 %v8868_v55  ;;  %v8977_v55 = vld [vmem:[#allocation2 + $0x110] sm:$0xff]  ;;  %v8993_v63 = vld [vmem:[#allocation2 + $0x120] sm:$0xff] }
  0xd4   : > { %v4288_v37 = vsel %vm3257_vm0, %v8870_v22, %v7652_v2  ;;  %7390 = vmatpush1.bf16.msra.mxu0 %v8604_v32  ;;  %v4191_v32 = vsel %vm3257_vm0, %v8762_v57, %v7608_v35  ;;  %v3521_v57 = vld [vmem:[#allocation2 + $0xc9] sm:$0xff]  ;;  %v7653_v35 = vunpack.i.h.bf16 %v8866_v61 }
  0xd5   : > { %v4256_v41 = vsel %vm3257_vm0, %v3519_v26, %v7657_v33  ;;  %v8883_v39 = vpop.permute.xlu0 %7660  ;;  %4836 = vmatprep.mubr.f32.mxu1 %v4288_v37  ;;  %7391 = vmatprep.subr.bf16.mxu0 %v7874_v34  ;;  %v7648_v33 = vunpack.i.h.bf16 %v8845_v21  ;;  %v8959_v21 = vld [vmem:[#allocation2 + $0x108] sm:$0xff] }
  0xd6   : > { %v8885_v56 = vpop.permute.xlu1 %7665  ;;  %v7662_v12 = vunpack.i.l.bf16 %v8883_v39  ;;  %4602 = vmatmul.mubr.f32.gmra.mrb[38].mxu0 %v4190_v17  ;;  %4837 = vmatmul.mubr.f32.gmra.mrb[26].mxu1 %v4256_v41 }
  0xd7   : > { %v7667_v47 = vunpack.i.l.bf16 %v8885_v56  ;;  %4606 = vmatprep.mubr.f32.mxu0 %v4223_v9  ;;  %v3524_v9 = vld [vmem:[#allocation2 + $0xf1] sm:$0xff] }
  0xd8   : > { %v4289_v51 = vsel %vm3257_vm0, %v8887_v40, %v7662_v12  ;;  %7393 = vmatpush1.bf16.msra.mxu0 %v8617_v44  ;;  %v4192_v44 = vsel %vm3257_vm0, %v8787_v15, %v7618_v5  ;;  %v3522_v15 = vld [vmem:[#allocation2 + $0xd9] sm:$0xff]  ;;  %v7663_v12 = vunpack.i.h.bf16 %v8883_v39 }
  0xd9   : > { %v4257_v52 = vsel %vm3257_vm0, %v3520_v42, %v7667_v47  ;;  %v8901_v54 = vpop.permute.xlu0 %7670  ;;  %4841 = vmatprep.mubr.f32.mxu1 %v4289_v51  ;;  %7394 = vmatprep.subr.bf16.mxu0 %v7874_v34  ;;  %v3525_v51 = vld [vmem:[#allocation2 + $0xf9] sm:$0xff] }
  0xda   : > { %v8903_v14 = vpop.permute.xlu1 %7675  ;;  %v7672_v28 = vunpack.i.l.bf16 %v8901_v54  ;;  %4607 = vmatmul.mubr.f32.gmra.mrb[40].mxu0 %v4191_v32  ;;  %4842 = vmatmul.mubr.f32.gmra.mrb[28].mxu1 %v4257_v52 }
  0xdb   : > { %v7677_v60 = vunpack.i.l.bf16 %v8903_v14  ;;  %4611 = vmatprep.mubr.f32.mxu0 %v4224_v13  ;;  %v7668_v13 = vunpack.i.h.bf16 %v8885_v56  ;;  %v3526_v56 = vld [vmem:[#allocation2 + $0x109] sm:$0xff] }
  0xdc   : > { %v4290_v3 = vsel %vm3257_vm0, %v8905_v30, %v7672_v28  ;;  %7396 = vmatpush1.bf16.msra.mxu0 %v8630_v53  ;;  %v4193_v53 = vsel %vm3257_vm0, %v8806_v25, %v7628_v23  ;;  %v3458_v25 = vld [vmem:[#allocation2 + $0xc2] sm:$0xff] }
  0xdd   : > { %v4258_v6 = vsel %vm3257_vm0, %v3521_v57, %v7677_v60  ;;  %v8919_v10 = vpop.permute.xlu0 %7680  ;;  %4846 = vmatprep.mubr.f32.mxu1 %v4290_v3  ;;  %7397 = vmatprep.subr.bf16.mxu0 %v7874_v34  ;;  %v4227_v48 = vsel %vm3257_vm0, %v3458_v25, %v7643_v18  ;;  %v7673_v57 = vunpack.i.h.bf16 %v8901_v54  ;;  %v3461_v3 = vld [vmem:[#allocation2 + $0xe2] sm:$0xff] }
  0xde   : > { %v8921_v29 = vpop.permute.xlu1 %7685  ;;  %v7682_v45 = vunpack.i.l.bf16 %v8919_v10  ;;  %4612 = vmatmul.mubr.f32.gmra.mrb[42].mxu0 %v4192_v44  ;;  %4847 = vmatmul.mubr.f32.gmra.mrb[30].mxu1 %v4258_v6  ;;  %v7678_v6 = vunpack.i.h.bf16 %v8903_v14  ;;  %v9009_v18 = vld [vmem:[#allocation2 + $0x128] sm:$0xff]  ;;  %v3527_v14 = vld [vmem:[#allocation2 + $0x111] sm:$0xff] }
  0xdf   : > { %v7687_v49 = vunpack.i.l.bf16 %v8921_v29  ;;  %4616 = vmatprep.mubr.f32.mxu0 %v4225_v7  ;;  %v4197_v7 = vsel %vm3257_vm0, %v8887_v40, %v7668_v13 }
  0xe0   : > { %v4291_v31 = vsel %vm3257_vm0, %v8923_v36, %v7682_v45  ;;  %7399 = vmatpush1.bf16.msra.mxu0 %v8644_v0  ;;  %v4194_v0 = vsel %vm3257_vm0, %v8830_v62, %v7638_v16  ;;  %v3459_v62 = vld [vmem:[#allocation2 + $0xca] sm:$0xff] }
  0xe1   : > { %v4259_v19 = vsel %vm3257_vm0, %v3522_v15, %v7687_v49  ;;  %v8937_v20 = vpop.permute.xlu0 %7690  ;;  %4851 = vmatprep.mubr.f32.mxu1 %v4291_v31  ;;  %7400 = vmatprep.subr.bf16.mxu0 %v7874_v34  ;;  %v7683_v15 = vunpack.i.h.bf16 %v8919_v10  ;;  %v4230_v49 = vsel %vm3257_vm0, %v3461_v3, %v7673_v57  ;;  %v3462_v31 = vld [vmem:[#allocation2 + $0xf2] sm:$0xff] }
  0xe2   : > { %v8939_v26 = vpop.permute.xlu1 %7695  ;;  %v7692_v38 = vunpack.i.l.bf16 %v8937_v20  ;;  %4617 = vmatmul.mubr.f32.gmra.mrb[44].mxu0 %v4193_v53  ;;  %4852 = vmatmul.mubr.f32.gmra.mrb[32].mxu1 %v4259_v19  ;;  %v7688_v19 = vunpack.i.h.bf16 %v8921_v29  ;;  %v3528_v29 = vld [vmem:[#allocation2 + $0x121] sm:$0xff]  ;;  %v9057_v57 = vld [vmem:[#allocation2 + $0x150] sm:$0xff] }
  0xe3   : > { %v7697_v2 = vunpack.i.l.bf16 %v8939_v26  ;;  %4621 = vmatprep.mubr.f32.mxu0 %v4226_v50  ;;  %v4198_v50 = vsel %vm3257_vm0, %v8905_v30, %v7678_v6 }
  0xe4   : > { %v4292_v17 = vsel %vm3257_vm0, %v8941_v46, %v7692_v38  ;;  %7402 = vmatpush1.bf16.msra.mxu0 %v8659_v11  ;;  %v4195_v11 = vsel %vm3257_vm0, %v8847_v1, %v7648_v33  ;;  %v3460_v1 = vld [vmem:[#allocation2 + $0xda] sm:$0xff] }
  0xe5   : > { %v4260_v4 = vsel %vm3257_vm0, %v3523_v27, %v7697_v2  ;;  %v8955_v37 = vpop.permute.xlu0 %7700  ;;  %4856 = vmatprep.mubr.f32.mxu1 %v4292_v17  ;;  %7403 = vmatprep.subr.bf16.mxu0 %v7874_v34  ;;  %v4228_v34 = vsel %vm3257_vm0, %v3459_v62, %v7653_v35  ;;  %v4229_v60 = vsel %vm3257_vm0, %v3460_v1, %v7663_v12  ;;  %v7693_v27 = vunpack.i.h.bf16 %v8937_v20  ;;  %v9025_v35 = vld [vmem:[#allocation2 + $0x138] sm:$0xff]  ;;  %v9041_v12 = vld [vmem:[#allocation2 + $0x140] sm:$0xff] }
  0xe6   : > { %v8957_v41 = vpop.permute.xlu1 %7705  ;;  %v7702_v61 = vunpack.i.l.bf16 %v8955_v37  ;;  %4622 = vmatmul.mubr.f32.gmra.mrb[46].mxu0 %v4194_v0  ;;  %4857 = vmatmul.mubr.f32.gmra.mrb[34].mxu1 %v4260_v4  ;;  %v4231_v2 = vsel %vm3257_vm0, %v3462_v31, %v7683_v15  ;;  %v3463_v17 = vld [vmem:[#allocation2 + $0xfa] sm:$0xff]  ;;  %v7698_v4 = vunpack.i.h.bf16 %v8939_v26  ;;  %v3529_v26 = vld [vmem:[#allocation2 + $0x129] sm:$0xff] }
  0xe7   : > { %v7707_v42 = vunpack.i.l.bf16 %v8957_v41  ;;  %4626 = vmatprep.mubr.f32.mxu0 %v4227_v48  ;;  %v4199_v48 = vsel %vm3257_vm0, %v8923_v36, %v7688_v19  ;;  %v9073_v15 = vld [vmem:[#allocation2 + $0x158] sm:$0xff] }
  0xe8   : > { %v4293_v47 = vsel %vm3257_vm0, %v8959_v21, %v7702_v61  ;;  %7405 = vmatpush1.bf16.msra.mxu0 %v8680_v24  ;;  %v4196_v24 = vsel %vm3257_vm0, %v8870_v22, %v7658_v43 }
  0xe9   : > { %v4261_v5 = vsel %vm3257_vm0, %v3524_v9, %v7707_v42  ;;  %v8973_v32 = vpop.permute.xlu0 %7710  ;;  %4861 = vmatprep.mubr.f32.mxu1 %v4293_v47  ;;  %v7703_v9 = vunpack.i.h.bf16 %v8955_v37  ;;  %v4232_v42 = vsel %vm3257_vm0, %v3463_v17, %v7693_v27  ;;  %v3464_v47 = vld [vmem:[#allocation2 + $0x10a] sm:$0xff] }
  0xea   : > { %v8975_v59 = vpop.permute.xlu1 %7715  ;;  %v7712_v39 = vunpack.i.l.bf16 %v8973_v32  ;;  %4627 = vmatmul.mubr.f32.gmra.mrb[48].mxu0 %v4195_v11  ;;  %4862 = vmatmul.mubr.f32.gmra.mrb[36].mxu1 %v4261_v5  ;;  %v7708_v5 = vunpack.i.h.bf16 %v8957_v41  ;;  %v3530_v41 = vld [vmem:[#allocation2 + $0x139] sm:$0xff]  ;;  %v9089_v27 = vld [vmem:[#allocation2 + $0x168] sm:$0xff] }
  0xeb   : > { %v7717_v52 = vunpack.i.l.bf16 %v8975_v59  ;;  %4631 = vmatprep.mubr.f32.mxu0 %v4228_v34  ;;  %v4200_v34 = vsel %vm3257_vm0, %v8941_v46, %v7698_v4 }
  0xec   : > { %v4294_v58 = vsel %vm3257_vm0, %v8977_v55, %v7712_v39 }
  0xed   : > { %v4262_v28 = vsel %vm3257_vm0, %v3525_v51, %v7717_v52  ;;  %v8989_v23 = vpop.permute.xlu0 %7720  ;;  %4866 = vmatprep.mubr.f32.mxu1 %v4294_v58  ;;  %v7713_v51 = vunpack.i.h.bf16 %v8973_v32  ;;  %v4233_v52 = vsel %vm3257_vm0, %v3464_v47, %v7703_v9  ;;  %v3465_v58 = vld [vmem:[#allocation2 + $0x112] sm:$0xff] }
  0xee   : > { %v8991_v44 = vpop.permute.xlu1 %7725  ;;  %v7722_v22 = vunpack.i.l.bf16 %v8989_v23  ;;  %4632 = vmatmul.mubr.f32.gmra.mrb[50].mxu0 %v4196_v24  ;;  %4867 = vmatmul.mubr.f32.gmra.mrb[38].mxu1 %v4262_v28  ;;  %v7718_v28 = vunpack.i.h.bf16 %v8975_v59  ;;  %v3531_v59 = vld [vmem:[#allocation2 + $0x141] sm:$0xff]  ;;  %v9105_v9 = vld [vmem:[#allocation2 + $0x170] sm:$0xff] }
  0xef   : > { %v7727_v54 = vunpack.i.l.bf16 %v8991_v44  ;;  %4636 = vmatprep.mubr.f32.mxu0 %v4229_v60  ;;  %v4201_v60 = vsel %vm3257_vm0, %v8959_v21, %v7708_v5 }
  0xf0   : > { %v4295_v8 = vsel %vm3257_vm0, %v8993_v63, %v7722_v22 }
  0xf1   : > { %v4263_v45 = vsel %vm3257_vm0, %v3526_v56, %v7727_v54  ;;  %v9005_v16 = vpop.permute.xlu0 %7730  ;;  %4871 = vmatprep.mubr.f32.mxu1 %v4295_v8  ;;  %v7723_v56 = vunpack.i.h.bf16 %v8989_v23  ;;  %v4234_v54 = vsel %vm3257_vm0, %v3465_v58, %v7713_v51  ;;  %v3466_v8 = vld [vmem:[#allocation2 + $0x122] sm:$0xff] }
  0xf2   : > { %v9007_v53 = vpop.permute.xlu1 %7735  ;;  %v7732_v40 = vunpack.i.l.bf16 %v9005_v16  ;;  %4637 = vmatmul.mubr.f32.gmra.mrb[52].mxu0 %v4197_v7  ;;  %4872 = vmatmul.mubr.f32.gmra.mrb[40].mxu1 %v4263_v45  ;;  %v7728_v45 = vunpack.i.h.bf16 %v8991_v44  ;;  %v3532_v44 = vld [vmem:[#allocation2 + $0x151] sm:$0xff]  ;;  %v3599_v51 = vld [vmem:[#allocation2 + $0x180] sm:$0xff] }
  0xf3   : > { %v7737_v10 = vunpack.i.l.bf16 %v9007_v53  ;;  %4641 = vmatprep.mubr.f32.mxu0 %v4230_v49  ;;  %v4202_v49 = vsel %vm3257_vm0, %v8977_v55, %v7718_v28  ;;  %v7876_v28 = vmov 1983009808  }
  0xf4   : > { %v4296_v25 = vsel %vm3257_vm0, %v9009_v18, %v7732_v40 }
  0xf5   : > { %v4264_v38 = vsel %vm3257_vm0, %v3527_v14, %v7737_v10  ;;  %v9021_v33 = vpop.permute.xlu0 %7740  ;;  %4876 = vmatprep.mubr.f32.mxu1 %v4296_v25  ;;  %v7733_v14 = vunpack.i.h.bf16 %v9005_v16  ;;  %v4235_v10 = vsel %vm3257_vm0, %v3466_v8, %v7723_v56  ;;  %v3467_v25 = vld [vmem:[#allocation2 + $0x12a] sm:$0xff] }
  0xf6   : > { %v9023_v0 = vpop.permute.xlu1 %7745  ;;  %v7742_v30 = vunpack.i.l.bf16 %v9021_v33  ;;  %4642 = vmatmul.mubr.f32.gmra.mrb[54].mxu0 %v4198_v50  ;;  %4877 = vmatmul.mubr.f32.gmra.mrb[42].mxu1 %v4264_v38  ;;  %v7738_v38 = vunpack.i.h.bf16 %v9007_v53  ;;  %v3533_v53 = vld [vmem:[#allocation2 + $0x159] sm:$0xff]  ;;  %v3600_v8 = vld [vmem:[#allocation2 + $0x188] sm:$0xff] }
  0xf7   : > { %v7747_v20 = vunpack.i.l.bf16 %v9023_v0  ;;  %4646 = vmatprep.mubr.f32.mxu0 %v4231_v2  ;;  %v4203_v2 = vsel %vm3257_vm0, %v8993_v63, %v7728_v45 }
  0xf8   : > { %v4297_v62 = vsel %vm3257_vm0, %v9025_v35, %v7742_v30 }
  0xf9   : > { %v4265_v61 = vsel %vm3257_vm0, %v3528_v29, %v7747_v20  ;;  %v9037_v43 = vpop.permute.xlu0 %7750  ;;  %4881 = vmatprep.mubr.f32.mxu1 %v4297_v62  ;;  %v7743_v29 = vunpack.i.h.bf16 %v9021_v33  ;;  %v4236_v20 = vsel %vm3257_vm0, %v3467_v25, %v7733_v14  ;;  %v3468_v62 = vld [vmem:[#allocation2 + $0x13a] sm:$0xff] }
  0xfa   : > { %v9039_v11 = vpop.permute.xlu1 %7755  ;;  %v7752_v36 = vunpack.i.l.bf16 %v9037_v43  ;;  %4647 = vmatmul.mubr.f32.gmra.mrb[56].mxu0 %v4199_v48  ;;  %4882 = vmatmul.mubr.f32.gmra.mrb[44].mxu1 %v4265_v61  ;;  %v386_v61 = vlaneseq  ;;  %v7753_v47 = vunpack.i.h.bf16 %v9037_v43 }
  0xfb   : > { %v7757_v37 = vunpack.i.l.bf16 %v9039_v11  ;;  %4651 = vmatprep.mubr.f32.mxu0 %v4232_v42  ;;  %v7748_v42 = vunpack.i.h.bf16 %v9023_v0  ;;  %v4237_v5 = vsel %vm3257_vm0, %v3468_v62, %v7743_v29 }
  0xfc   : > { %v4298_v1 = vsel %vm3257_vm0, %v9041_v12, %v7752_v36  ;;  %v387_v0 = vshrl.u32 %v386_v61, 7 }
  0xfd   : > { %v4266_v39 = vsel %vm3257_vm0, %v3529_v26, %v7757_v37  ;;  %v9053_v13 = vpop.permute.xlu0 %7760  ;;  %4886 = vmatprep.mubr.f32.mxu1 %v4298_v1  ;;  %v4204_v26 = vsel %vm3257_vm0, %v9009_v18, %v7738_v38  ;;  %v3534_v1 = vld [vmem:[#allocation2 + $0x169] sm:$0xff]  ;;  %v7875_v18 = vmov 1966171168  }
  0xfe   : > { %v9055_v24 = vpop.permute.xlu1 %7765  ;;  %v7762_v46 = vunpack.i.l.bf16 %v9053_v13  ;;  %4652 = vmatmul.mubr.f32.gmra.mrb[58].mxu0 %v4200_v34  ;;  %4887 = vmatmul.mubr.f32.gmra.mrb[46].mxu1 %v4266_v39  ;;  %v3469_v39 = vld [vmem:[#allocation2 + $0x142] sm:$0xff]  ;;  %v642_v43 = vunpack.c.l.s4 %v7875_v18  ;;  %v7763_v56 = vunpack.i.h.bf16 %v9053_v13  ;;  %v9128_v45 = vsub.s32 0, %v387_v0 }
  0xff   : > { %v7767_v32 = vunpack.i.l.bf16 %v9055_v24  ;;  %4656 = vmatprep.mubr.f32.mxu0 %v4233_v52  ;;  %v384_v13 = vld [vmem:[%s11048_s3] sm:$0xf] }
 0x100   : > { %v4299_v3 = vsel %vm3257_vm0, %v9057_v57, %v7762_v46  ;;  %v7758_v46 = vunpack.i.h.bf16 %v9039_v11  ;;  %v9142_v62 = vrot.slane %v384_v13, %v9128_v45 }
 0x101   : > { %v4267_v22 = vsel %vm3257_vm0, %v3530_v41, %v7767_v32  ;;  %v9069_v6 = vpop.permute.xlu0 %7770  ;;  %4891 = vmatprep.mubr.f32.mxu1 %v4299_v3  ;;  %v4205_v32 = vsel %vm3257_vm0, %v9025_v35, %v7748_v42  ;;  %v392_v35 = vsub.s32 1, %v387_v0 }
 0x102   : > { %v9071_v7 = vpop.permute.xlu1 %7775  ;;  %v7772_v21 = vunpack.i.l.bf16 %v9069_v6  ;;  %4657 = vmatmul.mubr.f32.gmra.mrb[60].mxu0 %v4201_v60  ;;  %4892 = vmatmul.mubr.f32.gmra.mrb[48].mxu1 %v4267_v22  ;;  %v5320_v60 = vunpack.c.l.s4 %v7876_v28 }
 0x103   : > { %v7777_v23 = vunpack.i.l.bf16 %v9071_v7  ;;  %4661 = vmatprep.mubr.f32.mxu0 %v4234_v54  ;;  %v4238_v54 = vsel %vm3257_vm0, %v3469_v39, %v7753_v47 }
 0x104   : > { %v4300_v31 = vsel %vm3257_vm0, %v9073_v15, %v7772_v21  ;;  %v3535_v21 = vld [vmem:[#allocation2 + $0x171] sm:$0xff]  ;;  %v5321_v25 = vunpack.c.0.s8 %v5320_v60 }
 0x105   : > { %v4268_v40 = vsel %vm3257_vm0, %v3531_v59, %v7777_v23  ;;  %v9085_v19 = vpop.permute.xlu0 %7780  ;;  %4896 = vmatprep.mubr.f32.mxu1 %v4300_v31  ;;  %v3470_v23 = vld [vmem:[#allocation2 + $0x152] sm:$0xff]  ;;  %v643_v31 = vunpack.c.0.s8 %v642_v43 }
 0x106   : > { %v9087_v50 = vpop.permute.xlu1 %7785  ;;  %v7782_v55 = vunpack.i.l.bf16 %v9085_v19  ;;  %4662 = vmatmul.mubr.f32.gmra.mrb[62].mxu0 %v4202_v49  ;;  %4897 = vmatmul.mubr.f32.gmra.mrb[50].mxu1 %v4268_v40  ;;  %v396_v40 = vsub.s32 2, %v387_v0  ;;  %v4239_v29 = vsel %vm3257_vm0, %v3470_v23, %v7763_v56  ;;  %v9155_v47 = vsub.s32 %v5321_v25, %v387_v0  ;;  %v3635_v56 = vld [vmem:[#allocation2 + $0x32] sm:$0xff]  ;;  %v3507_v23 = vld [vmem:[#allocation2 + $0x21] sm:$0xff] }
 0x107   : > { %v7787_v16 = vunpack.i.l.bf16 %v9087_v50  ;;  %4666 = vmatprep.mubr.f32.mxu0 %v4235_v10  ;;  %v7768_v10 = vunpack.i.h.bf16 %v9055_v24  ;;  %v3536_v24 = vld [vmem:[#allocation2 + $0x181] sm:$0xff] }
 0x108   : > { %v4301_v17 = vsel %vm3257_vm0, %v9089_v27, %v7782_v55  ;;  %v400_v55 = vsub.s32 3, %v387_v0  ;;  %v9150_v42 = vrot.slane %v384_v13, %v396_v40 }
 0x109   : > { %v4269_v30 = vsel %vm3257_vm0, %v3532_v44, %v7787_v16  ;;  %v9101_v4 = vpop.permute.xlu0 %7790  ;;  %4901 = vmatprep.mubr.f32.mxu1 %v4301_v17  ;;  %v4206_v44 = vsel %vm3257_vm0, %v9041_v12, %v7758_v46  ;;  %v7773_v16 = vunpack.i.h.bf16 %v9069_v6  ;;  %v7778_v17 = vunpack.i.h.bf16 %v9071_v7 }
 0x10a   : > { %v9103_v48 = vpop.permute.xlu1 %7795  ;;  %v7792_v63 = vunpack.i.l.bf16 %v9101_v4  ;;  %4667 = vmatmul.mubr.f32.gmra.mrb[64].mxu0 %v4203_v2  ;;  %4902 = vmatmul.mubr.f32.gmra.mrb[52].mxu1 %v4269_v30  ;;  %v9144_v12 = vrot.slane %v384_v13, %v392_v35  ;;  %v7783_v7 = vunpack.i.h.bf16 %v9085_v19  ;;  %v7793_v39 = vunpack.i.h.bf16 %v9101_v4 }
 0x10b   : > { %v7797_v33 = vunpack.i.l.bf16 %v9103_v48  ;;  %4671 = vmatprep.mubr.f32.mxu0 %v4236_v20  ;;  %v3601_v20 = vld [vmem:[#allocation2 + $0x198] sm:$0xff]  ;;  %v7798_v19 = vunpack.i.h.bf16 %v9103_v48  ;;  %v3571_v48 = vld [vmem:[#allocation2 + $0x30] sm:$0xff] }
 0x10c   : > { %v4302_v36 = vsel %vm3257_vm0, %v9105_v9, %v7792_v63 }
 0x10d   : > { %v4270_v37 = vsel %vm3257_vm0, %v3533_v53, %v7797_v33  ;;  %v7801_v34 = vpop.permute.xlu0 %7800  ;;  %4906 = vmatprep.mubr.f32.mxu1 %v4302_v36  ;;  %v3471_v53 = vld [vmem:[#allocation2 + $0x15a] sm:$0xff]  ;;  %v9148_v33 = vsub.s32 %v643_v31, %v387_v0  ;;  %v9157_v36 = vrot.slane %v384_v13, %v400_v55  ;;  %v4208_v0 = vsel %vm3257_vm0, %v9073_v15, %v7778_v17 }
 0x10e   : > { %v9117_v52 = vpop.permute.xlu1 %7805  ;;  %v7803_v41 = vunpack.i.h.bf16 %v7801_v34  ;;  %v7802_v58 = vunpack.i.l.bf16 %v7801_v34  ;;  %4672 = vmatmul.mubr.f32.gmra.mrb[66].mxu0 %v4204_v26  ;;  %4907 = vmatmul.mubr.f32.gmra.mrb[54].mxu1 %v4270_v37  ;;  %v4207_v26 = vsel %vm3257_vm0, %v9057_v57, %v7768_v10  ;;  %v7788_v37 = vunpack.i.h.bf16 %v9087_v50  ;;  %v3602_v57 = vld [vmem:[#allocation2 + $0x1a0] sm:$0xff] }
 0x10f   : > { %4676 = vmatprep.mubr.f32.mxu0 %v4237_v5  ;;  %v7807_v50 = vunpack.i.l.bf16 %v9117_v52  ;;  %v7808_v28 = vunpack.i.h.bf16 %v9117_v52  ;;  %v4210_v13 = vsel %vm3257_vm0, %v9105_v9, %v7798_v19 }
 0x110   : > { %v4303_v3 = vsel %vm3257_vm0, %v3599_v51, %v7802_v58  ;;  %v4271_v22 = vsel %vm3257_vm0, %v3534_v1, %v7803_v41  ;;  %v4240_v51 = vsel %vm3257_vm0, %v3471_v53, %v7773_v16  ;;  %v3472_v1 = vld [vmem:[#allocation2 + $0x16a] sm:$0xff]  ;;  %v4209_v52 = vsel %vm3257_vm0, %v9089_v27, %v7788_v37 }
 0x111   : > { %v7811_v59 = vpop.permute.xlu0 %7810  ;;  %4911 = vmatprep.mubr.f32.mxu1 %v4303_v3  ;;  %v3537_v58 = vld [vmem:[#allocation2 + $0x189] sm:$0xff]  ;;  %v4241_v60 = vsel %vm3257_vm0, %v3472_v1, %v7783_v7  ;;  %v3506_v3 = vld [vmem:[#allocation2 + $0x19] sm:$0xff]  ;;  %v9182_v31 = vsel %vm3257_vm0, %v3571_v48, %v7807_v50  ;;  %v3511_v37 = vld [vmem:[#allocation2 + $0x51] sm:$0xff] }
 0x112   : > { %v9126_v11 = vpop.permute.xlu1 %7815  ;;  %v7813_v49 = vunpack.i.h.bf16 %v7811_v59  ;;  %v7812_v14 = vunpack.i.l.bf16 %v7811_v59  ;;  %4677 = vmatmul.mubr.f32.gmra.mrb[68].mxu0 %v4205_v32  ;;  %4912 = vmatmul.mubr.f32.gmra.mrb[56].mxu1 %v4271_v22  ;;  %v3473_v32 = vld [vmem:[#allocation2 + $0x172] sm:$0xff]  ;;  %v9185_v27 = vsel %vm3257_vm0, %v3506_v3, %v7808_v28  ;;  %v3576_v53 = vld [vmem:[#allocation2 + $0x68] sm:$0xff] }
 0x113   : > { %4681 = vmatprep.mubr.f32.mxu0 %v4238_v54  ;;  %v7817_v4 = vunpack.i.l.bf16 %v9126_v11  ;;  %v7818_v15 = vunpack.i.h.bf16 %v9126_v11  ;;  %v3572_v59 = vld [vmem:[#allocation2 + $0x38] sm:$0xff]  ;;  %v4242_v11 = vsel %vm3257_vm0, %v3473_v32, %v7793_v39 }
 0x114   : > { %v4304_v38 = vsel %vm3257_vm0, %v3600_v8, %v7812_v14  ;;  %v4272_v2 = vsel %vm3257_vm0, %v3535_v21, %v7813_v49  ;;  %v3573_v49 = vld [vmem:[#allocation2 + $0x48] sm:$0xff]  ;;  %v3508_v14 = vld [vmem:[#allocation2 + $0x31] sm:$0xff]  ;;  %v7859_v39 = vld [vmem:[#allocation2 + $0x3a] sm:$0xff] }
 0x115   : > { %v7821_v30 = vpop.permute.xlu0 %7820  ;;  %4916 = vmatprep.mubr.f32.mxu1 %v4304_v38  ;;  %v9188_v25 = vsel %vm3257_vm0, %v3572_v59, %v7817_v4  ;;  %v3509_v38 = vld [vmem:[#allocation2 + $0x39] sm:$0xff]  ;;  %v472_v9 = vpop.f32.mrb[0].mxu0  ;;  %v9192_v17 = vsel %vm3257_vm0, %v3507_v23, %v7818_v15 }
 0x116   : > { %v9146_v61 = vpop.permute.xlu1 %7825  ;;  %v7823_v6 = vunpack.i.h.bf16 %v7821_v30  ;;  %v7822_v63 = vunpack.i.l.bf16 %v7821_v30  ;;  %4682 = vmatmul.mubr.f32.gmra.mrb[70].mxu0 %v4206_v44  ;;  %4917 = vmatmul.mubr.f32.gmra.mrb[58].mxu1 %v4272_v2  ;;  %v3574_v44 = vld [vmem:[#allocation2 + $0x50] sm:$0xff]  ;;  %v3575_v2 = vld [vmem:[#allocation2 + $0x60] sm:$0xff] }
 0x117   : > { %4686 = vmatprep.mubr.f32.mxu0 %v4239_v29  ;;  %v7828_v22 = vunpack.i.h.bf16 %v9146_v61  ;;  %v7827_v54 = vunpack.i.l.bf16 %v9146_v61  ;;  %v3510_v29 = vld [vmem:[#allocation2 + $0x49] sm:$0xff]  ;;  %v473_v61 = vadd.f32 %v472_v9, %v9142_v62 }
 0x118   : > { %v4305_v5 = vsel %vm3257_vm0, %v3601_v20, %v7822_v63  ;;  %v4273_v34 = vsel %vm3257_vm0, %v3536_v24, %v7823_v6  ;;  %v474_v6 = vpop.f32.mrb[1].mxu0 }
 0x119   : > { %v7831_v41 = vpop.permute.xlu0 %7830  ;;  %4921 = vmatprep.mubr.f32.mxu1 %v4305_v5  ;;  %v9195_v30 = vsel %vm3257_vm0, %v3573_v49, %v7827_v54  ;;  %v9198_v20 = vsel %vm3257_vm0, %v3508_v14, %v7828_v22  ;;  %v475_v5 = vadd.f32 %v474_v6, %v9144_v12  ;;  %v640_v19 = vcombine.high %v473_v61, %v473_v61  ;;  %v7862_v14 = vld [vmem:[#allocation2 + $0x62] sm:$0xff] }
 0x11a   : > { %v7836_v18 = vpop.permute.xlu1 %7835  ;;  %v7833_v43 = vunpack.i.h.bf16 %v7831_v41  ;;  %v7832_v46 = vunpack.i.l.bf16 %v7831_v41  ;;  %4687 = vmatmul.mubr.f32.gmra.mrb[72].mxu0 %v4207_v26  ;;  %4922 = vmatmul.mubr.f32.gmra.mrb[60].mxu1 %v4273_v34  ;;  %v647_v41 = vrot.slane %v473_v61, %v9148_v33 }
 0x11b   : > { %4691 = vmatprep.mubr.f32.mxu0 %v4240_v51  ;;  %v7837_v35 = vunpack.i.l.bf16 %v7836_v18  ;;  %v7838_v40 = vunpack.i.h.bf16 %v7836_v18  ;;  %v1111_v50 = vrot.slane %v475_v5, %v9148_v33  ;;  %v585_v18 = vpop.f32.mrb[0].mxu1  ;;  %v654_v32 = vrot.slane %v640_v19, %v9148_v33 }
 0x11c   : > { %v4306_v8 = vsel %vm3257_vm0, %v3602_v57, %v7832_v46  ;;  %v4274_v21 = vsel %vm3257_vm0, %v3537_v58, %v7833_v43  ;;  %v1104_v58 = vcombine.high %v475_v5, %v475_v5  ;;  %v9221_v43 = vpop.f32.mrb[2].mxu0  ;;  %v655_v28 = vcombine.high %v647_v41, %v647_v41 }
 0x11d   : > { %4926 = vmatprep.mubr.f32.mxu1 %v4306_v8  ;;  %v7841_v10 = vpop.permute.xlu0 %7840  ;;  %v9202_v63 = vsel %vm3257_vm0, %v3574_v44, %v7837_v35  ;;  %v9206_v34 = vsel %vm3257_vm0, %v3509_v38, %v7838_v40  ;;  %v9228_v4 = vrot.slane %v647_v41, %v9148_v33  ;;  %v9231_v48 = vadd.f32 %v585_v18, %v9150_v42  ;;  %v7861_v8 = vld [vmem:[#allocation2 + $0x52] sm:$0xff]  ;;  %v3642_v18 = vld [vmem:[#allocation2 + $0x82] sm:$0xff] }
 0x11e   : > { %4692 = vmatmul.mubr.f32.gmra.mrb[74].mxu0 %v4208_v0  ;;  %4927 = vmatmul.mubr.f32.gmra.mrb[62].mxu1 %v4274_v21  ;;  %v7843_v55 = vunpack.i.h.bf16 %v7841_v10  ;;  %v7842_v16 = vunpack.i.l.bf16 %v7841_v10  ;;  %v7846_v24 = vpop.permute.xlu1 %7845  ;;  %v7860_v0 = vld [vmem:[#allocation2 + $0x4a] sm:$0xff]  ;;  %v1118_v15 = vrot.slane %v1104_v58, %v9148_v33  ;;  %v1119_v3 = vcombine.high %v1111_v50, %v1111_v50 }
 0x11f   : > { %4696 = vmatprep.mubr.f32.mxu0 %v4241_v60  ;;  %7198 = vmatprep.mubr.msk.f32.mxu1 %vm3257_vm0, %v3635_v56  ;;  %v7848_v7 = vunpack.i.h.bf16 %v7846_v24  ;;  %v7847_v26 = vunpack.i.l.bf16 %v7846_v24  ;;  %v587_v60 = vpop.f32.mrb[1].mxu1  ;;  %v9233_v56 = vpop.f32.mrb[3].mxu0  ;;  %v1127_v22 = vrot.slane %v1111_v50, %v9148_v33  ;;  %v656_v21 = vcombine.high %v654_v32, %v654_v32 }
 0x120   : > { %v9209_v51 = vsel %vm3257_vm0, %v3575_v2, %v7842_v16  ;;  %v9212_v1 = vsel %vm3257_vm0, %v3510_v29, %v7843_v55  ;;  %v9238_v54 = vadd.f32 %v587_v60, %v9157_v36  ;;  %v677_v23 = vrot.slane %v655_v28, %v9148_v33  ;;  %v9253_v10 = vpop.f32.mrb[2].mxu1  ;;  %v9255_v44 = vpop.f32.mrb[4].mxu0 }
 0x121   : > { %v9217_v57 = vsel %vm3257_vm0, %v3576_v53, %v7847_v26  ;;  %v9224_v46 = vsel %vm3257_vm0, %v3511_v37, %v7848_v7  ;;  %v1134_v40 = vrot.slane %v1118_v15, %v9148_v33  ;;  %v684_v16 = vrot.slane %v656_v21, %v9148_v33  ;;  %v9260_v29 = vpop.f32.mrb[3].mxu1  ;;  %v9262_v9 = vpop.f32.mrb[5].mxu0  ;;  %v3641_v7 = vld [vmem:[#allocation2 + $0x7a] sm:$0xff]  ;;  %v7863_v37 = vld [vmem:[#allocation2 + $0x6a] sm:$0xff] }
 0x122   : > { %4697 = vmatmul.mubr.f32.gmra.mrb[76].mxu0 %v4209_v52  ;;  %7199 = vmatmul.mubr.msk.f32.vlgmr.msra.gmra.mrb[64].mxu1 %vm3257_vm0, %v7859_v39  ;;  %v9240_v59 = vpop.permute.xlu0 %7850  ;;  %v670_v52 = vrot.slane %v654_v32, %v9148_v33  ;;  %v687_v2 = vcombine.high %v677_v23, %v677_v23  ;;  %v1149_v53 = vcombine.high %v1127_v22, %v1127_v22  ;;  %v9274_v32 = vpop.f32.mrb[4].mxu1 }
 0x123   : > { %4701 = vmatprep.mubr.f32.mxu0 %v4242_v11  ;;  %7201 = vmatprep.mubr.msk.f32.mxu1 %vm3257_vm0, %v7860_v0  ;;  %v7853_v35 = vunpack.i.h.bf16 %v9240_v59  ;;  %v9246_v49 = vpop.permute.xlu1 %7855  ;;  %v685_v11 = vcombine.high %v9228_v4, %v9228_v4  ;;  %v7852_v55 = vunpack.i.l.bf16 %v9240_v59  ;;  %v1150_v61 = vcombine.high %v1134_v40, %v1134_v40 }
 0x124   : > { %v686_v38 = vcombine.high %v670_v52, %v670_v52  ;;  %v1499_v6 = vrot.slane %v1127_v22, %v9128_v45  ;;  %v688_v26 = vcombine.high %v684_v16, %v684_v16  ;;  %v7858_v19 = vunpack.i.h.bf16 %v9246_v49  ;;  %v3643_v22 = vld [vmem:[#allocation2 + $0x92] sm:$0xff] }
 0x125   : > { %v1507_v0 = vrot.slane %v1149_v53, %v9128_v45  ;;  %v1515_v58 = vrot.slane %v1134_v40, %v9128_v45  ;;  %v1523_v60 = vrot.slane %v1150_v61, %v9128_v45 }
 0x126   : > { %4702 = vmatmul.mubr.f32.gmra.mrb[78].mxu0 %v4210_v13  ;;  %7202 = vmatmul.mubr.msk.f32.gmra.mrb[66].mxu1 %vm3257_vm0, %v7861_v8  ;;  %v1120_v13 = vcombine.high %v1118_v15, %v1118_v15  ;;  %v1817_v15 = vsel %vm1816_vm2, %v9228_v4, %v1499_v6  ;;  %v9284_v8 = vpop.f32.mrb[5].mxu1 }
 0x127   : > { %4771 = vmatprep.mubr.f32.mxu0 %v9182_v31  ;;  %7204 = vmatprep.mubr.msk.f32.mxu1 %vm3257_vm0, %v7862_v14  ;;  %v1141_v31 = vrot.slane %v1119_v3, %v9148_v33  ;;  %v1819_v14 = vsel %vm1816_vm2, %v685_v11, %v1507_v0  ;;  %v1823_v4 = vsel %vm1816_vm2, %v686_v38, %v1523_v60 }
 0x128   : > { %v1148_v24 = vrot.slane %v1120_v13, %v9148_v33  ;;  %v1821_v13 = vsel %vm1816_vm2, %v670_v52, %v1515_v58  ;;  %v3131_v61 = vmax.f32 %v1819_v14, 0.0  ;;  %v9299_v52 = vpop.f32.mrb[6].mxu1  ;;  %v3135_v38 = vmax.f32 %v1823_v4, 0.0 }
 0x129   : > { %v1151_v5 = vcombine.high %v1141_v31, %v1141_v31  ;;  %v1503_v39 = vrot.slane %v1141_v31, %v9128_v45  ;;  %v3133_v11 = vmax.f32 %v1821_v13, 0.0  ;;  %v3646_v13 = vld [vmem:[#allocation2 + $0xb2] sm:$0xff] }
 0x12a   : > { %4772 = vmatmul.mubr.f32.vlgmr.msra.gmra.mrb[16].mxu0 %v9185_v27  ;;  %7205 = vmatmul.mubr.msk.f32.gmra.mrb[68].mxu1 %vm3257_vm0, %v7863_v37  ;;  %v1152_v41 = vcombine.high %v1148_v24, %v1148_v24  ;;  %v1519_v50 = vrot.slane %v1148_v24, %v9128_v45  ;;  %v9276_v27 = vpop.f32.mrb[6].mxu0  ;;  %v3644_v37 = vld [vmem:[#allocation2 + $0x9a] sm:$0xff] }
 0x12b   : > { %4776 = vmatprep.mubr.f32.mxu0 %v9188_v25  ;;  %v1511_v28 = vrot.slane %v1151_v5, %v9128_v45  ;;  %v1818_v3 = vsel %vm1816_vm2, %v677_v23, %v1503_v39  ;;  %7207 = vmatprep.mubr.msk.f32.mxu1 %vm3257_vm0, %v3641_v7  ;;  %v9286_v25 = vpop.f32.mrb[7].mxu0  ;;  %v3129_v23 = vmax.f32 %v1817_v15, 0.0  ;;  %v9301_v5 = vpop.f32.mrb[7].mxu1  ;;  %v6035_v60 = vmul.f32 %v3133_v11, %v3133_v11 }
 0x12c   : > { %v1527_v21 = vrot.slane %v1152_v41, %v9128_v45  ;;  %v1822_v40 = vsel %vm1816_vm2, %v684_v16, %v1519_v50  ;;  %v3130_v24 = vmax.f32 %v1818_v3, 0.0  ;;  %v6033_v41 = vmul.f32 %v3131_v61, %v3131_v61 }
 0x12d   : > { %v1820_v31 = vsel %vm1816_vm2, %v687_v2, %v1511_v28  ;;  %v3134_v16 = vmax.f32 %v1822_v40, 0.0  ;;  %v6031_v39 = vmul.f32 %v3129_v23, %v3129_v23  ;;  %v6037_v3 = vmul.f32 %v3135_v38, %v3135_v38 }
 0x12e   : > { %4777 = vmatmul.mubr.f32.gmra.mrb[18].mxu0 %v9192_v17  ;;  %7208 = vmatmul.mubr.msk.f32.gmra.mrb[70].mxu1 %vm3257_vm0, %v3642_v18  ;;  %v1824_v53 = vsel %vm1816_vm2, %v688_v26, %v1527_v21  ;;  %v3132_v6 = vmax.f32 %v1820_v31, 0.0  ;;  %v5317_v7 = vcombine.low %v3129_v23, %v3130_v24  ;;  %v6032_v26 = vmul.f32 %v3130_v24, %v3130_v24  ;;  %v3645_v18 = vld [vmem:[#allocation2 + $0xaa] sm:$0xff] }
 0x12f   : > { %4781 = vmatprep.mubr.f32.mxu0 %v9195_v30  ;;  %7210 = vmatprep.mubr.msk.f32.mxu1 %vm3257_vm0, %v3643_v22  ;;  %v3136_v2 = vmax.f32 %v1824_v53, 0.0  ;;  %v5334_v58 = vcombine.low %v3133_v11, %v3134_v16  ;;  %v6036_v15 = vmul.f32 %v3134_v16, %v3134_v16  ;;  %v1889_v23 = vcombine.high %v9231_v48, %v9231_v48 }
 0x130   : > { %v5318_v17 = vcombine.low %v3131_v61, %v3132_v6  ;;  %v5325_v0 = vrot.slane %v5317_v7, %v9155_v47  ;;  %v6034_v50 = vmul.f32 %v3132_v6, %v3132_v6  ;;  %v1896_v6 = vrot.slane %v9231_v48, %v9148_v33 }
 0x131   : > { %v5335_v30 = vcombine.low %v3135_v38, %v3136_v2  ;;  %v5342_v22 = vrot.slane %v5334_v58, %v9155_v47  ;;  %v6038_v14 = vmul.f32 %v3136_v2, %v3136_v2  ;;  %v6304_v4 = vcombine.low %v6035_v60, %v6036_v15 }
 0x132   : > { %4782 = vmatmul.mubr.f32.gmra.mrb[20].mxu0 %v9198_v20  ;;  %v5332_v28 = vrot.slane %v5318_v17, %v9155_v47  ;;  %7211 = vmatmul.mubr.msk.f32.gmra.mrb[72].mxu1 %vm3257_vm0, %v3644_v37  ;;  %v6287_v20 = vcombine.low %v6031_v39, %v6032_v26  ;;  %v6288_v31 = vcombine.low %v6033_v41, %v6034_v50  ;;  %v3648_v17 = vld [vmem:[#allocation2 + $0xca] sm:$0xff] }
 0x133   : > { %v5349_v21 = vrot.slane %v5335_v30, %v9155_v47  ;;  %4786 = vmatprep.mubr.f32.mxu0 %v9202_v63  ;;  %7213 = vmatprep.mubr.msk.f32.mxu1 %vm3257_vm0, %v3645_v18  ;;  %v6305_v61 = vcombine.low %v6037_v3, %v6038_v14  ;;  %v3647_v63 = vld [vmem:[#allocation2 + $0xc2] sm:$0xff]  ;;  %v6312_v16 = vrot.slane %v6304_v4, %v9155_v47 }
 0x134   : > { %v5333_v40 = vcombine.low %v5325_v0, %v5332_v28  ;;  %v6295_v53 = vrot.slane %v6287_v20, %v9155_v47  ;;  %v6302_v11 = vrot.slane %v6288_v31, %v9155_v47  ;;  %v1903_v38 = vrot.slane %v1889_v23, %v9148_v33  ;;  %v3649_v28 = vld [vmem:[#allocation2 + $0xda] sm:$0xff]  ;;  %v3651_v23 = vld [vmem:[#allocation2 + $0xf2] sm:$0xff] }
 0x135   : > { %v5350_v24 = vcombine.low %v5342_v22, %v5349_v21  ;;  %v2353_v2 = vcombine.high %v9238_v54, %v9238_v54  ;;  %v6319_v48 = vrot.slane %v6305_v61, %v9155_v47  ;;  %v1904_v37 = vcombine.high %v1896_v6, %v1896_v6 }
 0x136   : > { %4787 = vmatmul.mubr.f32.gmra.mrb[22].mxu0 %v9206_v34  ;;  %5893 = vst [vmem:[%s9311_s14] sm:$0xff] %v5333_v40  ;;  %7214 = vmatmul.mubr.msk.f32.gmra.mrb[74].mxu1 %vm3257_vm0, %v3646_v13  ;;  %v1912_v34 = vrot.slane %v1896_v6, %v9148_v33  ;;  %v6303_v39 = vcombine.low %v6295_v53, %v6302_v11 }
 0x137   : > { %5894 = vst [vmem:[%s9311_s14 + $0x10] sm:$0xff] %v5350_v24  ;;  %v9331_v7 = vadd.f32 %v5350_v24, %v5333_v40  ;;  %4791 = vmatprep.mubr.f32.mxu0 %v9209_v51  ;;  %v1905_v26 = vcombine.high %v1903_v38, %v1903_v38  ;;  %v1919_v41 = vrot.slane %v1903_v38, %v9148_v33 }
 0x138   : > { %v2360_v0 = vrot.slane %v9238_v54, %v9148_v33  ;;  %7216 = vmatprep.mubr.msk.f32.mxu1 %vm3257_vm0, %v3647_v63  ;;  %v6320_v58 = vcombine.low %v6312_v16, %v6319_v48  ;;  %v1926_v30 = vrot.slane %v1904_v37, %v9148_v33  ;;  %v1934_v50 = vcombine.high %v1912_v34, %v1912_v34  ;;  %v9346_v54 = vpop.f32.mrb[8].mxu0 }
 0x139   : > { %v2367_v18 = vrot.slane %v2353_v2, %v9148_v33  ;;  %v1933_v51 = vrot.slane %v1905_v26, %v9148_v33  ;;  %v1935_v60 = vcombine.high %v1919_v41, %v1919_v41  ;;  %v9359_v6 = vadd.f32 %v9221_v43, %v9142_v62  ;;  %v3652_v43 = vld [vmem:[#allocation2 + $0xfa] sm:$0xff] }
 0x13a   : > { %4792 = vmatmul.mubr.f32.gmra.mrb[24].mxu0 %v9212_v1  ;;  %v2368_v15 = vcombine.high %v2360_v0, %v2360_v0  ;;  %v2376_v3 = vrot.slane %v2360_v0, %v9148_v33  ;;  %7217 = vmatmul.mubr.msk.f32.gmra.mrb[76].mxu1 %vm3257_vm0, %v3648_v17  ;;  %v9348_v22 = vadd.f32 %v6320_v58, %v6303_v39  ;;  %v3650_v1 = vld [vmem:[#allocation2 + $0xe2] sm:$0xff] }
 0x13b   : > { %v1936_v21 = vcombine.high %v1926_v30, %v1926_v30  ;;  %v2369_v14 = vcombine.high %v2367_v18, %v2367_v18  ;;  %v2383_v20 = vrot.slane %v2367_v18, %v9148_v33  ;;  %4796 = vmatprep.mubr.f32.mxu0 %v9217_v57  ;;  %v1937_v13 = vcombine.high %v1933_v51, %v1933_v51 }
 0x13c   : > { %v2390_v40 = vrot.slane %v2368_v15, %v9148_v33  ;;  %v2398_v31 = vcombine.high %v2376_v3, %v2376_v3  ;;  %v2748_v4 = vrot.slane %v2376_v3, %v9128_v45  ;;  %7219 = vmatprep.mubr.msk.f32.mxu1 %vm3257_vm0, %v3649_v28 }
 0x13d   : > { %v2397_v24 = vrot.slane %v2369_v14, %v9148_v33  ;;  %v2399_v53 = vcombine.high %v2383_v20, %v2383_v20  ;;  %v2764_v61 = vrot.slane %v2383_v20, %v9128_v45 }
 0x13e   : > { %4797 = vmatmul.mubr.f32.gmra.mrb[26].mxu0 %v9224_v46  ;;  %v2400_v57 = vcombine.high %v2390_v40, %v2390_v40  ;;  %v2752_v63 = vrot.slane %v2390_v40, %v9128_v45  ;;  %v2756_v11 = vrot.slane %v2398_v31, %v9128_v45  ;;  %v3065_v16 = vsel %vm1816_vm2, %v1912_v34, %v2748_v4  ;;  %v3653_v34 = vld [vmem:[#allocation2 + $0x10a] sm:$0xff]  ;;  %v3654_v40 = vld [vmem:[#allocation2 + $0x112] sm:$0xff]  ;;  %v9380_v31 = vpop.f32.mrb[9].mxu0 }
 0x13f   : > { %7220 = vmatmul.mubr.msk.f32.gmra.mrb[78].mxu1 %vm3257_vm0, %v3650_v1  ;;  %v2401_v38 = vcombine.high %v2397_v24, %v2397_v24  ;;  %v2768_v2 = vrot.slane %v2397_v24, %v9128_v45  ;;  %v2772_v48 = vrot.slane %v2399_v53, %v9128_v45  ;;  %v3069_v37 = vsel %vm1816_vm2, %v1919_v41, %v2764_v61 }
 0x140   : > { %7222 = vmatprep.mubr.msk.f32.mxu1 %vm3257_vm0, %v3651_v23  ;;  %v2760_v46 = vrot.slane %v2400_v57, %v9128_v45  ;;  %v3066_v17 = vsel %vm1816_vm2, %v1926_v30, %v2752_v63  ;;  %v3067_v39 = vsel %vm1816_vm2, %v1934_v50, %v2756_v11  ;;  %v3137_v26 = vmax.f32 %v3065_v16, 0.0 }
 0x141   : > { %v2776_v0 = vrot.slane %v2401_v38, %v9128_v45  ;;  %v3070_v58 = vsel %vm1816_vm2, %v1933_v51, %v2768_v2  ;;  %v3071_v18 = vsel %vm1816_vm2, %v1935_v60, %v2772_v48  ;;  %v3138_v28 = vmax.f32 %v3066_v17, 0.0 }
 0x142   : > { %v3068_v41 = vsel %vm1816_vm2, %v1936_v21, %v2760_v46  ;;  %v3139_v15 = vmax.f32 %v3067_v39, 0.0  ;;  %v3141_v3 = vmax.f32 %v3069_v37, 0.0  ;;  %v3142_v14 = vmax.f32 %v3070_v58, 0.0  ;;  %v3655_v21 = vld [vmem:[#allocation2 + $0x122] sm:$0xff] }
 0x143   : > { %7223 = vmatmul.mubr.msk.f32.gmra.mrb[80].mxu1 %vm3257_vm0, %v3652_v43  ;;  %v3072_v30 = vsel %vm1816_vm2, %v1937_v13, %v2776_v0  ;;  %v3140_v20 = vmax.f32 %v3068_v41, 0.0  ;;  %v3143_v50 = vmax.f32 %v3071_v18, 0.0  ;;  %v5351_v1 = vcombine.low %v3137_v26, %v3138_v28  ;;  %v3656_v43 = vld [vmem:[#allocation2 + $0x12a] sm:$0xff] }
 0x144   : > { %7225 = vmatprep.mubr.msk.f32.mxu1 %vm3257_vm0, %v3653_v34  ;;  %v3144_v51 = vmax.f32 %v3072_v30, 0.0  ;;  %v5368_v60 = vcombine.low %v3141_v3, %v3142_v14  ;;  %v6039_v4 = vmul.f32 %v3137_v26, %v3137_v26  ;;  %v6040_v23 = vmul.f32 %v3138_v28, %v3138_v28 }
 0x145   : > { %v5352_v24 = vcombine.low %v3139_v15, %v3140_v20  ;;  %v5359_v53 = vrot.slane %v5351_v1, %v9155_v47  ;;  %v6041_v61 = vmul.f32 %v3139_v15, %v3139_v15  ;;  %v6042_v57 = vmul.f32 %v3140_v20, %v3140_v20 }
 0x146   : > { %v5369_v63 = vcombine.low %v3143_v50, %v3144_v51  ;;  %v5376_v13 = vrot.slane %v5368_v60, %v9155_v47  ;;  %v6043_v11 = vmul.f32 %v3141_v3, %v3141_v3  ;;  %v6044_v16 = vmul.f32 %v3142_v14, %v3142_v14  ;;  %v3657_v60 = vld [vmem:[#allocation2 + $0x13a] sm:$0xff] }
 0x147   : > { %7226 = vmatmul.mubr.msk.f32.gmra.mrb[82].mxu1 %vm3257_vm0, %v3654_v40  ;;  %v5366_v38 = vrot.slane %v5352_v24, %v9155_v47  ;;  %v6045_v2 = vmul.f32 %v3143_v50, %v3143_v50  ;;  %v6046_v48 = vmul.f32 %v3144_v51, %v3144_v51  ;;  %v6321_v37 = vcombine.low %v6039_v4, %v6040_v23 }
 0x148   : > { %7228 = vmatprep.mubr.msk.f32.mxu1 %vm3257_vm0, %v3655_v21  ;;  %v5383_v46 = vrot.slane %v5369_v63, %v9155_v47  ;;  %v6322_v17 = vcombine.low %v6041_v61, %v6042_v57  ;;  %v6338_v39 = vcombine.low %v6043_v11, %v6044_v16  ;;  %v689_v26 = vcombine.high %v9359_v6, %v9359_v6  ;;  %v9418_v16 = vpop.f32.mrb[8].mxu1 }
 0x149   : > { %v5367_v34 = vcombine.low %v5359_v53, %v5366_v38  ;;  %v6329_v0 = vrot.slane %v6321_v37, %v9155_v47  ;;  %v6339_v58 = vcombine.low %v6045_v2, %v6046_v48  ;;  %v696_v18 = vrot.slane %v9359_v6, %v9148_v33 }
 0x14a   : > { %v5384_v28 = vcombine.low %v5376_v13, %v5383_v46  ;;  %v6336_v41 = vrot.slane %v6322_v17, %v9155_v47  ;;  %v6346_v15 = vrot.slane %v6338_v39, %v9155_v47  ;;  %v703_v3 = vrot.slane %v689_v26, %v9148_v33 }
 0x14b   : > { %7229 = vmatmul.mubr.msk.f32.gmra.mrb[84].mxu1 %vm3257_vm0, %v3656_v43  ;;  %5895 = vst [vmem:[%s9311_s14 + $0x20] sm:$0xff] %v5367_v34  ;;  %v5958_v14 = vadd.f32 %v9331_v7, %v5367_v34  ;;  %v6353_v30 = vrot.slane %v6339_v58, %v9155_v47  ;;  %v704_v20 = vcombine.high %v696_v18, %v696_v18 }
 0x14c   : > { %v712_v50 = vrot.slane %v696_v18, %v9148_v33  ;;  %5896 = vst [vmem:[%s9311_s14 + $0x30] sm:$0xff] %v5384_v28  ;;  %v6337_v1 = vcombine.low %v6329_v0, %v6336_v41  ;;  %v705_v6 = vcombine.high %v703_v3, %v703_v3  ;;  %v719_v40 = vrot.slane %v703_v3, %v9148_v33 }
 0x14d   : > { %v481_v51 = vadd.f32 %v9233_v56, %v9144_v12  ;;  %v6354_v4 = vcombine.low %v6346_v15, %v6353_v30  ;;  %v726_v23 = vrot.slane %v704_v20, %v9148_v33  ;;  %v9406_v24 = vadd.f32 %v5958_v14, %v5384_v28  ;;  %7231 = vmatprep.mubr.msk.f32.mxu1 %vm3257_vm0, %v3657_v60 }
 0x14e   : > { %v734_v21 = vcombine.high %v712_v50, %v712_v50  ;;  %v6864_v7 = vadd.f32 %v9348_v22, %v6337_v1  ;;  %v733_v53 = vrot.slane %v705_v6, %v9148_v33  ;;  %v735_v61 = vcombine.high %v719_v40, %v719_v40  ;;  %v3658_v1 = vld [vmem:[#allocation2 + $0x142] sm:$0xff] }
 0x14f   : > { %v1153_v57 = vcombine.high %v481_v51, %v481_v51  ;;  %v736_v63 = vcombine.high %v726_v23, %v726_v23  ;;  %v1160_v13 = vrot.slane %v481_v51, %v9148_v33  ;;  %v592_v56 = vadd.f32 %v9253_v10, %v9150_v42  ;;  %7232 = vmatmul.mubr.msk.f32.gmra.mrb[86].mxu1 %vm3257_vm0, %v3658_v1 }
 0x150   : > { %v9416_v11 = vadd.f32 %v9260_v29, %v9157_v36  ;;  %v737_v38 = vcombine.high %v733_v53, %v733_v53  ;;  %v9421_v22 = vadd.f32 %v6864_v7, %v6354_v4  ;;  %v9425_v48 = vadd.f32 %v9255_v44, %v9142_v62 }
 0x151   : > { %v1167_v2 = vrot.slane %v1153_v57, %v9148_v33  ;;  %v1168_v37 = vcombine.high %v1160_v13, %v1160_v13  ;;  %v1176_v43 = vrot.slane %v1160_v13, %v9148_v33  ;;  %v1938_v46 = vcombine.high %v592_v56, %v592_v56 }
 0x152   : > { %v9429_v10 = vrot.slane %v592_v56, %v9148_v33  ;;  %v2402_v39 = vcombine.high %v9416_v11, %v9416_v11  ;;  %v9436_v26 = vrot.slane %v9416_v11, %v9148_v33 }
 0x153   : > { %v1169_v29 = vcombine.high %v1167_v2, %v1167_v2  ;;  %v1183_v17 = vrot.slane %v1167_v2, %v9148_v33  ;;  %v1190_v44 = vrot.slane %v1168_v37, %v9148_v33  ;;  %v1198_v34 = vcombine.high %v1176_v43, %v1176_v43 }
 0x154   : > { %v1531_v0 = vrot.slane %v1176_v43, %v9128_v45  ;;  %v9441_v58 = vrot.slane %v1938_v46, %v9148_v33  ;;  %v1953_v15 = vcombine.high %v9429_v10, %v9429_v10  ;;  %v9460_v46 = vpop.f32.mrb[9].mxu1 }
 0x155   : > { %v1197_v18 = vrot.slane %v1169_v29, %v9148_v33  ;;  %v1199_v28 = vcombine.high %v1183_v17, %v1183_v17  ;;  %v1547_v41 = vrot.slane %v1183_v17, %v9128_v45  ;;  %v1200_v3 = vcombine.high %v1190_v44, %v1190_v44 }
 0x156   : > { %v1535_v14 = vrot.slane %v1190_v44, %v9128_v45  ;;  %v1539_v30 = vrot.slane %v1198_v34, %v9128_v45  ;;  %v1825_v20 = vsel %vm1816_vm2, %v712_v50, %v1531_v0 }
 0x157   : > { %v1201_v6 = vcombine.high %v1197_v18, %v1197_v18  ;;  %v1551_v51 = vrot.slane %v1197_v18, %v9128_v45  ;;  %v1555_v60 = vrot.slane %v1199_v28, %v9128_v45  ;;  %v1829_v4 = vsel %vm1816_vm2, %v719_v40, %v1547_v41 }
 0x158   : > { %v1543_v7 = vrot.slane %v1200_v3, %v9128_v45  ;;  %v1826_v57 = vsel %vm1816_vm2, %v726_v23, %v1535_v14  ;;  %v1827_v13 = vsel %vm1816_vm2, %v734_v21, %v1539_v30  ;;  %v3145_v56 = vmax.f32 %v1825_v20, 0.0 }
 0x159   : > { %v1559_v2 = vrot.slane %v1201_v6, %v9128_v45  ;;  %v1830_v50 = vsel %vm1816_vm2, %v733_v53, %v1551_v51  ;;  %v1831_v37 = vsel %vm1816_vm2, %v735_v61, %v1555_v60  ;;  %v3146_v43 = vmax.f32 %v1826_v57, 0.0 }
 0x15a   : > { %v1828_v40 = vsel %vm1816_vm2, %v736_v63, %v1543_v7  ;;  %v3147_v29 = vmax.f32 %v1827_v13, 0.0  ;;  %v3149_v17 = vmax.f32 %v1829_v4, 0.0  ;;  %v3150_v44 = vmax.f32 %v1830_v50, 0.0 }
 0x15b   : > { %v1832_v34 = vsel %vm1816_vm2, %v737_v38, %v1559_v2  ;;  %v3148_v23 = vmax.f32 %v1828_v40, 0.0  ;;  %v3151_v0 = vmax.f32 %v1831_v37, 0.0  ;;  %v5385_v21 = vcombine.low %v3145_v56, %v3146_v43 }
 0x15c   : > { %v3152_v18 = vmax.f32 %v1832_v34, 0.0  ;;  %v5402_v28 = vcombine.low %v3149_v17, %v3150_v44  ;;  %v6047_v41 = vmul.f32 %v3145_v56, %v3145_v56  ;;  %v6048_v3 = vmul.f32 %v3146_v43, %v3146_v43  ;;  %v3659_v34 = vld [vmem:[#allocation2 + $0x152] sm:$0xff] }
 0x15d   : > { %v5386_v53 = vcombine.low %v3147_v29, %v3148_v23  ;;  %v5393_v61 = vrot.slane %v5385_v21, %v9155_v47  ;;  %v6049_v14 = vmul.f32 %v3147_v29, %v3147_v29  ;;  %v6050_v30 = vmul.f32 %v3148_v23, %v3148_v23  ;;  %7234 = vmatprep.mubr.msk.f32.mxu1 %vm3257_vm0, %v3659_v34 }
 0x15e   : > { %v5403_v20 = vcombine.low %v3151_v0, %v3152_v18  ;;  %v5410_v63 = vrot.slane %v5402_v28, %v9155_v47  ;;  %v6051_v1 = vmul.f32 %v3149_v17, %v3149_v17  ;;  %v6052_v6 = vmul.f32 %v3150_v44, %v3150_v44 }
 0x15f   : > { %v5400_v51 = vrot.slane %v5386_v53, %v9155_v47  ;;  %v6053_v38 = vmul.f32 %v3151_v0, %v3151_v0  ;;  %v6054_v60 = vmul.f32 %v3152_v18, %v3152_v18  ;;  %v6355_v4 = vcombine.low %v6047_v41, %v6048_v3 }
 0x160   : > { %v5417_v7 = vrot.slane %v5403_v20, %v9155_v47  ;;  %v6356_v57 = vcombine.low %v6049_v14, %v6050_v30  ;;  %v6372_v13 = vcombine.low %v6051_v1, %v6052_v6  ;;  %v1954_v56 = vcombine.high %v9441_v58, %v9441_v58 }
 0x161   : > { %v5401_v2 = vcombine.low %v5393_v61, %v5400_v51  ;;  %v6363_v50 = vrot.slane %v6355_v4, %v9155_v47  ;;  %v6373_v37 = vcombine.low %v6053_v38, %v6054_v60  ;;  %v1961_v43 = vrot.slane %v9429_v10, %v9148_v33 }
 0x162   : > { %v5418_v40 = vcombine.low %v5410_v63, %v5417_v7  ;;  %v6370_v29 = vrot.slane %v6356_v57, %v9155_v47  ;;  %v6380_v17 = vrot.slane %v6372_v13, %v9155_v47  ;;  %v1968_v44 = vrot.slane %v9441_v58, %v9148_v33 }
 0x163   : > { %5897 = vst [vmem:[%s9311_s14 + $0x40] sm:$0xff] %v5401_v2  ;;  %v5960_v23 = vadd.f32 %v9406_v24, %v5401_v2  ;;  %v6387_v0 = vrot.slane %v6373_v37, %v9155_v47  ;;  %v1975_v21 = vrot.slane %v1953_v15, %v9148_v33  ;;  %v1982_v18 = vrot.slane %v1954_v56, %v9148_v33  ;;  %v9490_v15 = vpop.f32.mrb[10].mxu0 }
 0x164   : > { %5898 = vst [vmem:[%s9311_s14 + $0x50] sm:$0xff] %v5418_v40  ;;  %v6371_v10 = vcombine.low %v6363_v50, %v6370_v29  ;;  %v1983_v28 = vcombine.high %v1961_v43, %v1961_v43  ;;  %v1984_v41 = vcombine.high %v1968_v44, %v1968_v44  ;;  %v2416_v58 = vrot.slane %v2402_v39, %v9148_v33 }
 0x165   : > { %v6388_v3 = vcombine.low %v6380_v17, %v6387_v0  ;;  %v1985_v53 = vcombine.high %v1975_v21, %v1975_v21  ;;  %v1986_v24 = vcombine.high %v1982_v18, %v1982_v18  ;;  %v2417_v61 = vcombine.high %v9436_v26, %v9436_v26  ;;  %v3660_v17 = vld [vmem:[#allocation2 + $0x15a] sm:$0xff] }
 0x166   : > { %v6866_v14 = vadd.f32 %v9421_v22, %v6371_v10  ;;  %v2418_v30 = vcombine.high %v2416_v58, %v2416_v58  ;;  %v2425_v20 = vrot.slane %v9436_v26, %v9148_v33  ;;  %v2432_v63 = vrot.slane %v2416_v58, %v9148_v33  ;;  %7235 = vmatmul.mubr.msk.f32.gmra.mrb[88].mxu1 %vm3257_vm0, %v3660_v17 }
 0x167   : > { %v2439_v1 = vrot.slane %v2417_v61, %v9148_v33  ;;  %v9497_v11 = vadd.f32 %v5960_v23, %v5418_v40  ;;  %v738_v39 = vcombine.high %v9425_v48, %v9425_v48  ;;  %v9503_v6 = vrot.slane %v9425_v48, %v9148_v33 }
 0x168   : > { %v2446_v51 = vrot.slane %v2418_v30, %v9148_v33  ;;  %v2447_v22 = vcombine.high %v2425_v20, %v2425_v20  ;;  %v2448_v38 = vcombine.high %v2432_v63, %v2432_v63  ;;  %v2780_v60 = vrot.slane %v2425_v20, %v9128_v45  ;;  %v9525_v20 = vpop.f32.mrb[11].mxu0 }
 0x169   : > { %v2449_v26 = vcombine.high %v2439_v1, %v2439_v1  ;;  %v2784_v4 = vrot.slane %v2439_v1, %v9128_v45  ;;  %v2796_v7 = vrot.slane %v2432_v63, %v9128_v45  ;;  %v9509_v57 = vadd.f32 %v6866_v14, %v6388_v3 }
 0x16a   : > { %v2450_v13 = vcombine.high %v2446_v51, %v2446_v51  ;;  %v2788_v56 = vrot.slane %v2447_v22, %v9128_v45  ;;  %v2800_v2 = vrot.slane %v2446_v51, %v9128_v45  ;;  %v2804_v48 = vrot.slane %v2448_v38, %v9128_v45 }
 0x16b   : > { %v2792_v50 = vrot.slane %v2449_v26, %v9128_v45  ;;  %v3073_v37 = vsel %vm1816_vm2, %v1961_v43, %v2780_v60  ;;  %v3074_v40 = vsel %vm1816_vm2, %v1975_v21, %v2784_v4  ;;  %v3077_v29 = vsel %vm1816_vm2, %v1968_v44, %v2796_v7 }
 0x16c   : > { %v2808_v34 = vrot.slane %v2450_v13, %v9128_v45  ;;  %v3075_v23 = vsel %vm1816_vm2, %v1983_v28, %v2788_v56  ;;  %v3078_v0 = vsel %vm1816_vm2, %v1982_v18, %v2800_v2  ;;  %v3079_v10 = vsel %vm1816_vm2, %v1984_v41, %v2804_v48 }
 0x16d   : > { %v3076_v58 = vsel %vm1816_vm2, %v1985_v53, %v2792_v50  ;;  %v3153_v3 = vmax.f32 %v3073_v37, 0.0  ;;  %v3154_v61 = vmax.f32 %v3074_v40, 0.0  ;;  %v3155_v43 = vmax.f32 %v3075_v23, 0.0 }
 0x16e   : > { %v3080_v21 = vsel %vm1816_vm2, %v1986_v24, %v2808_v34  ;;  %v3156_v14 = vmax.f32 %v3076_v58, 0.0  ;;  %v3157_v44 = vmax.f32 %v3077_v29, 0.0  ;;  %v3158_v30 = vmax.f32 %v3078_v0, 0.0 }
 0x16f   : > { %v3159_v63 = vmax.f32 %v3079_v10, 0.0  ;;  %v3160_v28 = vmax.f32 %v3080_v21, 0.0  ;;  %v5419_v1 = vcombine.low %v3153_v3, %v3154_v61  ;;  %v6055_v18 = vmul.f32 %v3153_v3, %v3153_v3 }
 0x170   : > { %v5420_v51 = vcombine.low %v3155_v43, %v3156_v14  ;;  %v5436_v41 = vcombine.low %v3157_v44, %v3158_v30  ;;  %v6056_v22 = vmul.f32 %v3154_v61, %v3154_v61  ;;  %v6057_v38 = vmul.f32 %v3155_v43, %v3155_v43 }
 0x171   : > { %v5427_v53 = vrot.slane %v5419_v1, %v9155_v47  ;;  %v5437_v60 = vcombine.low %v3159_v63, %v3160_v28  ;;  %v6058_v26 = vmul.f32 %v3156_v14, %v3156_v14  ;;  %v6059_v4 = vmul.f32 %v3157_v44, %v3157_v44 }
 0x172   : > { %v5434_v24 = vrot.slane %v5420_v51, %v9155_v47  ;;  %v5444_v7 = vrot.slane %v5436_v41, %v9155_v47  ;;  %v6060_v13 = vmul.f32 %v3158_v30, %v3158_v30  ;;  %v6061_v56 = vmul.f32 %v3159_v63, %v3159_v63  ;;  %v3661_v63 = vld [vmem:[#allocation2 + $0x16a] sm:$0xff] }
 0x173   : > { %v5451_v2 = vrot.slane %v5437_v60, %v9155_v47  ;;  %v6062_v48 = vmul.f32 %v3160_v28, %v3160_v28  ;;  %v6389_v50 = vcombine.low %v6055_v18, %v6056_v22  ;;  %v6390_v37 = vcombine.low %v6057_v38, %v6058_v26  ;;  %7237 = vmatprep.mubr.msk.f32.mxu1 %vm3257_vm0, %v3661_v63 }
 0x174   : > { %v5435_v40 = vcombine.low %v5427_v53, %v5434_v24  ;;  %v6406_v29 = vcombine.low %v6059_v4, %v6060_v13  ;;  %v752_v17 = vrot.slane %v738_v39, %v9148_v33  ;;  %v753_v34 = vcombine.high %v9503_v6, %v9503_v6  ;;  %v9563_v4 = vpop.f32.mrb[10].mxu1 }
 0x175   : > { %v5452_v23 = vcombine.low %v5444_v7, %v5451_v2  ;;  %v6397_v0 = vrot.slane %v6389_v50, %v9155_v47  ;;  %v6404_v10 = vrot.slane %v6390_v37, %v9155_v47  ;;  %v6407_v58 = vcombine.low %v6061_v56, %v6062_v48 }
 0x176   : > { %5899 = vst [vmem:[%s9311_s14 + $0x60] sm:$0xff] %v5435_v40  ;;  %v5962_v3 = vadd.f32 %v9497_v11, %v5435_v40  ;;  %v6414_v61 = vrot.slane %v6406_v29, %v9155_v47  ;;  %v754_v43 = vcombine.high %v752_v17, %v752_v17  ;;  %v761_v21 = vrot.slane %v9503_v6, %v9148_v33  ;;  %v3577_v6 = vld [vmem:[#allocation2 + $0x78] sm:$0xff] }
 0x177   : > { %5900 = vst [vmem:[%s9311_s14 + $0x70] sm:$0xff] %v5452_v23  ;;  %v6405_v39 = vcombine.low %v6397_v0, %v6404_v10  ;;  %v6421_v14 = vrot.slane %v6407_v58, %v9155_v47  ;;  %v9544_v44 = vrot.slane %v752_v17, %v9148_v33  ;;  %v775_v30 = vrot.slane %v753_v34, %v9148_v33 }
 0x178   : > { %v9548_v28 = vrot.slane %v754_v43, %v9148_v33  ;;  %v783_v11 = vcombine.high %v761_v21, %v761_v21  ;;  %v487_v1 = vadd.f32 %v9262_v9, %v9144_v12  ;;  %v9552_v18 = vadd.f32 %v5962_v3, %v5452_v23 }
 0x179   : > { %v6422_v51 = vcombine.low %v6414_v61, %v6421_v14  ;;  %v6868_v41 = vadd.f32 %v9509_v57, %v6405_v39  ;;  %v784_v22 = vcombine.high %v9544_v44, %v9544_v44  ;;  %v785_v38 = vcombine.high %v775_v30, %v775_v30  ;;  %v3662_v39 = vld [vmem:[#allocation2 + $0x172] sm:$0xff] }
 0x17a   : > { %v786_v53 = vcombine.high %v9548_v28, %v9548_v28  ;;  %v1202_v60 = vcombine.high %v487_v1, %v487_v1  ;;  %v1209_v26 = vrot.slane %v487_v1, %v9148_v33  ;;  %v598_v9 = vadd.f32 %v9274_v32, %v9150_v42  ;;  %7238 = vmatmul.mubr.msk.f32.gmra.mrb[90].mxu1 %vm3257_vm0, %v3662_v39 }
 0x17b   : > { %v9565_v24 = vadd.f32 %v6868_v41, %v6422_v51  ;;  %v9569_v57 = vadd.f32 %v9284_v8, %v9157_v36  ;;  %v7857_v7 = vunpack.i.l.bf16 %v9246_v49  ;;  %v4281_v13 = vsel %vm3257_vm0, %v3577_v6, %v7852_v55 }
 0x17c   : > { %v1216_v56 = vrot.slane %v1202_v60, %v9148_v33  ;;  %v1217_v2 = vcombine.high %v1209_v26, %v1209_v26  ;;  %v1225_v48 = vrot.slane %v1209_v26, %v9148_v33  ;;  %v1987_v32 = vcombine.high %v598_v9, %v598_v9  ;;  %4801 = vmatprep.mubr.f32.mxu0 %v4281_v13 }
 0x17d   : > { %v9578_v50 = vrot.slane %v598_v9, %v9148_v33  ;;  %v2451_v8 = vcombine.high %v9569_v57, %v9569_v57  ;;  %v9584_v37 = vrot.slane %v9569_v57, %v9148_v33  ;;  %v9588_v55 = vadd.f32 %v9276_v27, %v9142_v62 }
 0x17e   : > { %v1218_v40 = vcombine.high %v1216_v56, %v1216_v56  ;;  %v1232_v29 = vrot.slane %v1216_v56, %v9148_v33  ;;  %v1239_v17 = vrot.slane %v1217_v2, %v9148_v33  ;;  %v1247_v34 = vcombine.high %v1225_v48, %v1225_v48  ;;  %v9617_v2 = vpop.f32.mrb[11].mxu1 }
 0x17f   : > { %v1563_v23 = vrot.slane %v1225_v48, %v9128_v45  ;;  %v9594_v0 = vrot.slane %v1987_v32, %v9148_v33  ;;  %v2002_v10 = vcombine.high %v9578_v50, %v9578_v50  ;;  %v9600_v58 = vrot.slane %v9578_v50, %v9148_v33 }
 0x180   : > { %v1246_v27 = vrot.slane %v1218_v40, %v9148_v33  ;;  %v1248_v3 = vcombine.high %v1232_v29, %v1232_v29  ;;  %v1249_v61 = vcombine.high %v1239_v17, %v1239_v17  ;;  %v1567_v43 = vrot.slane %v1239_v17, %v9128_v45 }
 0x181   : > { %v1571_v14 = vrot.slane %v1247_v34, %v9128_v45  ;;  %v1579_v63 = vrot.slane %v1232_v29, %v9128_v45  ;;  %v1833_v1 = vsel %vm1816_vm2, %v761_v21, %v1563_v23  ;;  %v2003_v6 = vcombine.high %v9594_v0, %v9594_v0 }
 0x182   : > { %v1250_v51 = vcombine.high %v1246_v27, %v1246_v27  ;;  %v1575_v41 = vrot.slane %v1249_v61, %v9128_v45  ;;  %v1583_v60 = vrot.slane %v1246_v27, %v9128_v45  ;;  %v1587_v26 = vrot.slane %v1248_v3, %v9128_v45 }
 0x183   : > { %v1834_v9 = vsel %vm1816_vm2, %v775_v30, %v1567_v43  ;;  %v1835_v13 = vsel %vm1816_vm2, %v783_v11, %v1571_v14  ;;  %v1837_v56 = vsel %vm1816_vm2, %v9544_v44, %v1579_v63  ;;  %v3161_v21 = vmax.f32 %v1833_v1, 0.0 }
 0x184   : > { %v1591_v48 = vrot.slane %v1250_v51, %v9128_v45  ;;  %v1836_v32 = vsel %vm1816_vm2, %v785_v38, %v1575_v41  ;;  %v1838_v50 = vsel %vm1816_vm2, %v9548_v28, %v1583_v60  ;;  %v1839_v40 = vsel %vm1816_vm2, %v784_v22, %v1587_v26 }
 0x185   : > { %v3162_v29 = vmax.f32 %v1834_v9, 0.0  ;;  %v3163_v17 = vmax.f32 %v1835_v13, 0.0  ;;  %v3164_v30 = vmax.f32 %v1836_v32, 0.0  ;;  %v3165_v34 = vmax.f32 %v1837_v56, 0.0 }
 0x186   : > { %v1840_v11 = vsel %vm1816_vm2, %v786_v53, %v1591_v48  ;;  %v3166_v23 = vmax.f32 %v1838_v50, 0.0  ;;  %v3167_v44 = vmax.f32 %v1839_v40, 0.0  ;;  %v6063_v27 = vmul.f32 %v3161_v21, %v3161_v21 }
 0x187   : > { %v3168_v3 = vmax.f32 %v1840_v11, 0.0  ;;  %v5453_v61 = vcombine.low %v3161_v21, %v3162_v29  ;;  %v5454_v43 = vcombine.low %v3163_v17, %v3164_v30  ;;  %v6064_v39 = vmul.f32 %v3162_v29, %v3162_v29 }
 0x188   : > { %v5470_v14 = vcombine.low %v3165_v34, %v3166_v23  ;;  %v6065_v38 = vmul.f32 %v3163_v17, %v3163_v17  ;;  %v6066_v63 = vmul.f32 %v3164_v30, %v3164_v30  ;;  %v6067_v1 = vmul.f32 %v3165_v34, %v3165_v34  ;;  %v3663_v17 = vld [vmem:[#allocation2 + $0x182] sm:$0xff] }
 0x189   : > { %v5461_v28 = vrot.slane %v5453_v61, %v9155_v47  ;;  %v5468_v22 = vrot.slane %v5454_v43, %v9155_v47  ;;  %v5471_v51 = vcombine.low %v3167_v44, %v3168_v3  ;;  %v6068_v41 = vmul.f32 %v3166_v23, %v3166_v23  ;;  %7240 = vmatprep.mubr.msk.f32.mxu1 %vm3257_vm0, %v3663_v17  ;;  %v3664_v17 = vld [vmem:[#allocation2 + $0x18a] sm:$0xff] }
 0x18a   : > { %v5478_v53 = vrot.slane %v5470_v14, %v9155_v47  ;;  %v6069_v60 = vmul.f32 %v3167_v44, %v3167_v44  ;;  %v6070_v26 = vmul.f32 %v3168_v3, %v3168_v3  ;;  %v6423_v9 = vcombine.low %v6063_v27, %v6064_v39  ;;  %v9649_v39 = vpop.f32.mrb[12].mxu0  ;;  %7241 = vmatmul.mubr.msk.f32.gmra.mrb[92].mxu1 %vm3257_vm0, %v3664_v17 }
 0x18b   : > { %v5469_v13 = vcombine.low %v5461_v28, %v5468_v22  ;;  %v5485_v56 = vrot.slane %v5471_v51, %v9155_v47  ;;  %v6424_v21 = vcombine.low %v6065_v38, %v6066_v63  ;;  %v6440_v48 = vcombine.low %v6067_v1, %v6068_v41 }
 0x18c   : > { %v6431_v32 = vrot.slane %v6423_v9, %v9155_v47  ;;  %v6441_v50 = vcombine.low %v6069_v60, %v6070_v26  ;;  %v2017_v40 = vrot.slane %v9594_v0, %v9148_v33  ;;  %v2024_v29 = vrot.slane %v2002_v10, %v9148_v33 }
 0x18d   : > { %v5486_v30 = vcombine.low %v5478_v53, %v5485_v56  ;;  %5901 = vst [vmem:[%s9311_s14 + $0x80] sm:$0xff] %v5469_v13  ;;  %v5964_v34 = vadd.f32 %v9552_v18, %v5469_v13  ;;  %v6438_v11 = vrot.slane %v6424_v21, %v9155_v47  ;;  %v6448_v23 = vrot.slane %v6440_v48, %v9155_v47 }
 0x18e   : > { %v6455_v44 = vrot.slane %v6441_v50, %v9155_v47  ;;  %v2031_v27 = vrot.slane %v2003_v6, %v9148_v33  ;;  %v2032_v0 = vcombine.high %v9600_v58, %v9600_v58  ;;  %v2033_v3 = vcombine.high %v2017_v40, %v2017_v40 }
 0x18f   : > { %5902 = vst [vmem:[%s9311_s14 + $0x90] sm:$0xff] %v5486_v30  ;;  %v6439_v10 = vcombine.low %v6431_v32, %v6438_v11  ;;  %v2034_v61 = vcombine.high %v2024_v29, %v2024_v29  ;;  %v2465_v18 = vrot.slane %v2451_v8, %v9148_v33  ;;  %v2466_v43 = vcombine.high %v9584_v37, %v9584_v37 }
 0x190   : > { %v6456_v14 = vcombine.low %v6448_v23, %v6455_v44  ;;  %v2035_v38 = vcombine.high %v2031_v27, %v2031_v27  ;;  %v2474_v6 = vrot.slane %v9584_v37, %v9148_v33  ;;  %v9653_v63 = vadd.f32 %v5964_v34, %v5486_v30 }
 0x191   : > { %v6870_v1 = vadd.f32 %v9565_v24, %v6439_v10  ;;  %v2467_v28 = vcombine.high %v2465_v18, %v2465_v18  ;;  %v2481_v22 = vrot.slane %v2465_v18, %v9148_v33  ;;  %v2488_v57 = vrot.slane %v2466_v43, %v9148_v33 }
 0x192   : > { %v2496_v8 = vcombine.high %v2474_v6, %v2474_v6  ;;  %v2812_v51 = vrot.slane %v2474_v6, %v9128_v45  ;;  %v787_v41 = vcombine.high %v9588_v55, %v9588_v55  ;;  %v9663_v53 = vrot.slane %v9588_v55, %v9148_v33 }
 0x193   : > { %v2495_v37 = vrot.slane %v2467_v28, %v9148_v33  ;;  %v2497_v60 = vcombine.high %v2481_v22, %v2481_v22  ;;  %v2498_v26 = vcombine.high %v2488_v57, %v2488_v57  ;;  %v2816_v24 = vrot.slane %v2488_v57, %v9128_v45 }
 0x194   : > { %v2820_v9 = vrot.slane %v2496_v8, %v9128_v45  ;;  %v2828_v13 = vrot.slane %v2481_v22, %v9128_v45  ;;  %v3081_v56 = vsel %vm1816_vm2, %v9600_v58, %v2812_v51  ;;  %v9671_v21 = vadd.f32 %v6870_v1, %v6456_v14 }
 0x195   : > { %v2499_v48 = vcombine.high %v2495_v37, %v2495_v37  ;;  %v2824_v32 = vrot.slane %v2498_v26, %v9128_v45  ;;  %v2832_v55 = vrot.slane %v2495_v37, %v9128_v45  ;;  %v2836_v50 = vrot.slane %v2497_v60, %v9128_v45 }
 0x196   : > { %v3082_v30 = vsel %vm1816_vm2, %v2024_v29, %v2816_v24  ;;  %v3083_v34 = vsel %vm1816_vm2, %v2032_v0, %v2820_v9  ;;  %v3085_v11 = vsel %vm1816_vm2, %v2017_v40, %v2828_v13  ;;  %v3169_v23 = vmax.f32 %v3081_v56, 0.0  ;;  %v9684_v29 = vpop.f32.mrb[13].mxu0 }
 0x197   : > { %v2840_v58 = vrot.slane %v2499_v48, %v9128_v45  ;;  %v3084_v44 = vsel %vm1816_vm2, %v2034_v61, %v2824_v32  ;;  %v3086_v10 = vsel %vm1816_vm2, %v2031_v27, %v2832_v55  ;;  %v3087_v18 = vsel %vm1816_vm2, %v2033_v3, %v2836_v50 }
 0x198   : > { %v3170_v43 = vmax.f32 %v3082_v30, 0.0  ;;  %v3171_v14 = vmax.f32 %v3083_v34, 0.0  ;;  %v3172_v6 = vmax.f32 %v3084_v44, 0.0  ;;  %v3173_v1 = vmax.f32 %v3085_v11, 0.0  ;;  %v3512_v44 = vld [vmem:[#allocation2 + $0x61] sm:$0xff] }
 0x199   : > { %v3088_v0 = vsel %vm1816_vm2, %v2035_v38, %v2840_v58  ;;  %v3174_v40 = vmax.f32 %v3086_v10, 0.0  ;;  %v3175_v28 = vmax.f32 %v3087_v18, 0.0  ;;  %v6071_v22 = vmul.f32 %v3169_v23, %v3169_v23 }
 0x19a   : > { %v3176_v57 = vmax.f32 %v3088_v0, 0.0  ;;  %v5487_v8 = vcombine.low %v3169_v23, %v3170_v43  ;;  %v5488_v51 = vcombine.low %v3171_v14, %v3172_v6  ;;  %v6072_v37 = vmul.f32 %v3170_v43, %v3170_v43 }
 0x19b   : > { %v5504_v61 = vcombine.low %v3173_v1, %v3174_v40  ;;  %v6073_v60 = vmul.f32 %v3171_v14, %v3171_v14  ;;  %v6074_v27 = vmul.f32 %v3172_v6, %v3172_v6  ;;  %v6075_v26 = vmul.f32 %v3173_v1, %v3173_v1 }
 0x19c   : > { %v5495_v3 = vrot.slane %v5487_v8, %v9155_v47  ;;  %v5502_v24 = vrot.slane %v5488_v51, %v9155_v47  ;;  %v5505_v9 = vcombine.low %v3175_v28, %v3176_v57  ;;  %v6076_v13 = vmul.f32 %v3174_v40, %v3174_v40  ;;  %v3665_v40 = vld [vmem:[#allocation2 + $0x19a] sm:$0xff] }
 0x19d   : > { %v5512_v38 = vrot.slane %v5504_v61, %v9155_v47  ;;  %v6077_v56 = vmul.f32 %v3175_v28, %v3175_v28  ;;  %v6078_v48 = vmul.f32 %v3176_v57, %v3176_v57  ;;  %v6457_v32 = vcombine.low %v6071_v22, %v6072_v37  ;;  %v3578_v8 = vld [vmem:[#allocation2 + $0x80] sm:$0xff]  ;;  %7243 = vmatprep.mubr.msk.f32.mxu1 %vm3257_vm0, %v3665_v40 }
 0x19e   : > { %v5503_v55 = vcombine.low %v5495_v3, %v5502_v24  ;;  %v5519_v50 = vrot.slane %v5505_v9, %v9155_v47  ;;  %v6458_v17 = vcombine.low %v6073_v60, %v6074_v27  ;;  %v6474_v30 = vcombine.low %v6075_v26, %v6076_v13  ;;  %v3513_v26 = vld [vmem:[#allocation2 + $0x69] sm:$0xff]  ;;  %v9718_v3 = vpop.f32.mrb[12].mxu1 }
 0x19f   : > { %v6465_v34 = vrot.slane %v6457_v32, %v9155_v47  ;;  %v6475_v11 = vcombine.low %v6077_v56, %v6078_v48  ;;  %v801_v23 = vrot.slane %v787_v41, %v9148_v33  ;;  %v802_v58 = vcombine.high %v9663_v53, %v9663_v53 }
 0x1a0   : > { %v5520_v10 = vcombine.low %v5512_v38, %v5519_v50  ;;  %5903 = vst [vmem:[%s9311_s14 + $0xa0] sm:$0xff] %v5503_v55  ;;  %v5966_v18 = vadd.f32 %v9653_v63, %v5503_v55  ;;  %v6472_v43 = vrot.slane %v6458_v17, %v9155_v47  ;;  %v6482_v14 = vrot.slane %v6474_v30, %v9155_v47 }
 0x1a1   : > { %v6489_v6 = vrot.slane %v6475_v11, %v9155_v47  ;;  %v803_v1 = vcombine.high %v801_v23, %v801_v23  ;;  %v810_v0 = vrot.slane %v9663_v53, %v9148_v33  ;;  %v9703_v41 = vrot.slane %v801_v23, %v9148_v33 }
 0x1a2   : > { %5904 = vst [vmem:[%s9311_s14 + $0xb0] sm:$0xff] %v5520_v10  ;;  %v6473_v28 = vcombine.low %v6465_v34, %v6472_v43  ;;  %v824_v22 = vrot.slane %v802_v58, %v9148_v33  ;;  %v4249_v63 = vsel %vm3257_vm0, %v3512_v44, %v7853_v35  ;;  %v493_v57 = vadd.f32 %v9286_v25, %v9144_v12 }
 0x1a3   : > { %v6490_v51 = vcombine.low %v6482_v14, %v6489_v6  ;;  %v831_v53 = vrot.slane %v803_v1, %v9148_v33  ;;  %v832_v37 = vcombine.high %v810_v0, %v810_v0  ;;  %v833_v61 = vcombine.high %v9703_v41, %v9703_v41  ;;  %4802 = vmatmul.mubr.f32.gmra.mrb[28].mxu0 %v4249_v63 }
 0x1a4   : > { %v6872_v60 = vadd.f32 %v9671_v21, %v6473_v28  ;;  %v834_v27 = vcombine.high %v824_v22, %v824_v22  ;;  %v1251_v59 = vcombine.high %v493_v57, %v493_v57  ;;  %v1258_v35 = vrot.slane %v493_v57, %v9148_v33 }
 0x1a5   : > { %v835_v25 = vcombine.high %v831_v53, %v831_v53  ;;  %v9720_v24 = vadd.f32 %v5966_v18, %v5520_v10  ;;  %v4282_v9 = vsel %vm3257_vm0, %v3578_v8, %v7857_v7  ;;  %v604_v13 = vadd.f32 %v9299_v52, %v9150_v42  ;;  %v3666_v18 = vld [vmem:[#allocation2 + $0x1a2] sm:$0xff] }
 0x1a6   : > { %v1265_v38 = vrot.slane %v1251_v59, %v9148_v33  ;;  %v1266_v21 = vcombine.high %v1258_v35, %v1258_v35  ;;  %v1274_v56 = vrot.slane %v1258_v35, %v9148_v33  ;;  %v9729_v48 = vadd.f32 %v6872_v60, %v6490_v51  ;;  %4806 = vmatprep.mubr.f32.mxu0 %v4282_v9  ;;  %v9768_v59 = vpop.f32.mrb[13].mxu1 }
 0x1a7   : > { %v2036_v32 = vcombine.high %v604_v13, %v604_v13  ;;  %v9732_v55 = vrot.slane %v604_v13, %v9148_v33  ;;  %v4250_v50 = vsel %vm3257_vm0, %v3513_v26, %v7858_v19  ;;  %v9739_v7 = vadd.f32 %v9301_v5, %v9157_v36  ;;  %7244 = vmatmul.mubr.msk.f32.gmra.mrb[94].mxu1 %vm3257_vm0, %v3666_v18 }
 0x1a8   : > { %v1267_v52 = vcombine.high %v1265_v38, %v1265_v38  ;;  %v1281_v17 = vrot.slane %v1265_v38, %v9148_v33  ;;  %v1288_v30 = vrot.slane %v1266_v21, %v9148_v33  ;;  %v1296_v34 = vcombine.high %v1274_v56, %v1274_v56  ;;  %4807 = vmatmul.mubr.f32.gmra.mrb[30].mxu0 %v4250_v50 }
 0x1a9   : > { %v1595_v11 = vrot.slane %v1274_v56, %v9128_v45  ;;  %v9745_v23 = vrot.slane %v2036_v32, %v9148_v33  ;;  %v2051_v49 = vcombine.high %v9732_v55, %v9732_v55  ;;  %v9751_v19 = vrot.slane %v9732_v55, %v9148_v33 }
 0x1aa   : > { %v1295_v5 = vrot.slane %v1267_v52, %v9148_v33  ;;  %v1297_v58 = vcombine.high %v1281_v17, %v1281_v17  ;;  %v1298_v44 = vcombine.high %v1288_v30, %v1288_v30  ;;  %v1599_v10 = vrot.slane %v1288_v30, %v9128_v45 }
 0x1ab   : > { %v1603_v43 = vrot.slane %v1296_v34, %v9128_v45  ;;  %v1611_v14 = vrot.slane %v1281_v17, %v9128_v45  ;;  %v1841_v6 = vsel %vm1816_vm2, %v810_v0, %v1595_v11  ;;  %v2052_v1 = vcombine.high %v9745_v23, %v9745_v23 }
 0x1ac   : > { %v1299_v40 = vcombine.high %v1295_v5, %v1295_v5  ;;  %v1607_v28 = vrot.slane %v1298_v44, %v9128_v45  ;;  %v1615_v63 = vrot.slane %v1295_v5, %v9128_v45  ;;  %v1619_v57 = vrot.slane %v1297_v58, %v9128_v45 }
 0x1ad   : > { %v1842_v8 = vsel %vm1816_vm2, %v824_v22, %v1599_v10  ;;  %v1843_v51 = vsel %vm1816_vm2, %v832_v37, %v1603_v43  ;;  %v1845_v60 = vsel %vm1816_vm2, %v9703_v41, %v1611_v14  ;;  %v3177_v0 = vmax.f32 %v1841_v6, 0.0 }
 0x1ae   : > { %v1623_v35 = vrot.slane %v1299_v40, %v9128_v45  ;;  %v1844_v26 = vsel %vm1816_vm2, %v834_v27, %v1607_v28  ;;  %v1846_v9 = vsel %vm1816_vm2, %v831_v53, %v1615_v63  ;;  %v1847_v13 = vsel %vm1816_vm2, %v833_v61, %v1619_v57 }
 0x1af   : > { %v3178_v38 = vmax.f32 %v1842_v8, 0.0  ;;  %v3179_v21 = vmax.f32 %v1843_v51, 0.0  ;;  %v3180_v56 = vmax.f32 %v1844_v26, 0.0  ;;  %v3181_v22 = vmax.f32 %v1845_v60, 0.0 }
 0x1b0   : > { %v1848_v37 = vsel %vm1816_vm2, %v835_v25, %v1623_v35  ;;  %v3182_v32 = vmax.f32 %v1846_v9, 0.0  ;;  %v3183_v55 = vmax.f32 %v1847_v13, 0.0  ;;  %v6079_v41 = vmul.f32 %v3177_v0, %v3177_v0 }
 0x1b1   : > { %v3184_v50 = vmax.f32 %v1848_v37, 0.0  ;;  %v5521_v52 = vcombine.low %v3177_v0, %v3178_v38  ;;  %v5522_v17 = vcombine.low %v3179_v21, %v3180_v56  ;;  %v6080_v30 = vmul.f32 %v3178_v38, %v3178_v38 }
 0x1b2   : > { %v5538_v34 = vcombine.low %v3181_v22, %v3182_v32  ;;  %v6081_v11 = vmul.f32 %v3179_v21, %v3179_v21  ;;  %v6082_v27 = vmul.f32 %v3180_v56, %v3180_v56  ;;  %v6083_v5 = vmul.f32 %v3181_v22, %v3181_v22  ;;  %v9796_v22 = vpop.f32.mrb[14].mxu0 }
 0x1b3   : > { %v5529_v53 = vrot.slane %v5521_v52, %v9155_v47  ;;  %v5536_v61 = vrot.slane %v5522_v17, %v9155_v47  ;;  %v5539_v58 = vcombine.low %v3183_v55, %v3184_v50  ;;  %v6084_v44 = vmul.f32 %v3182_v32, %v3182_v32 }
 0x1b4   : > { %v5546_v25 = vrot.slane %v5538_v34, %v9155_v47  ;;  %v6085_v10 = vmul.f32 %v3183_v55, %v3183_v55  ;;  %v6086_v18 = vmul.f32 %v3184_v50, %v3184_v50  ;;  %v6491_v43 = vcombine.low %v6079_v41, %v6080_v30 }
 0x1b5   : > { %v5537_v14 = vcombine.low %v5529_v53, %v5536_v61  ;;  %v5553_v6 = vrot.slane %v5539_v58, %v9155_v47  ;;  %v6492_v40 = vcombine.low %v6081_v11, %v6082_v27  ;;  %v6508_v28 = vcombine.low %v6083_v5, %v6084_v44 }
 0x1b6   : > { %v6499_v63 = vrot.slane %v6491_v43, %v9155_v47  ;;  %v6509_v57 = vcombine.low %v6085_v10, %v6086_v18  ;;  %v2066_v8 = vrot.slane %v9745_v23, %v9148_v33  ;;  %v2073_v51 = vrot.slane %v2051_v49, %v9148_v33 }
 0x1b7   : > { %v5554_v60 = vcombine.low %v5546_v25, %v5553_v6  ;;  %5905 = vst [vmem:[%s9311_s14 + $0xc0] sm:$0xff] %v5537_v14  ;;  %v5968_v0 = vadd.f32 %v9720_v24, %v5537_v14  ;;  %v6506_v35 = vrot.slane %v6492_v40, %v9155_v47  ;;  %v6516_v26 = vrot.slane %v6508_v28, %v9155_v47 }
 0x1b8   : > { %v6523_v9 = vrot.slane %v6509_v57, %v9155_v47  ;;  %v2080_v13 = vrot.slane %v2052_v1, %v9148_v33  ;;  %v2081_v38 = vcombine.high %v9751_v19, %v9751_v19  ;;  %v2082_v21 = vcombine.high %v2066_v8, %v2066_v8 }
 0x1b9   : > { %5906 = vst [vmem:[%s9311_s14 + $0xd0] sm:$0xff] %v5554_v60  ;;  %v6507_v23 = vcombine.low %v6499_v63, %v6506_v35  ;;  %v2083_v56 = vcombine.high %v2073_v51, %v2073_v51  ;;  %v2500_v49 = vcombine.high %v9739_v7, %v9739_v7  ;;  %v2507_v24 = vrot.slane %v9739_v7, %v9148_v33 }
 0x1ba   : > { %v6524_v37 = vcombine.low %v6516_v26, %v6523_v9  ;;  %v2084_v32 = vcombine.high %v2080_v13, %v2080_v13  ;;  %v9798_v55 = vadd.f32 %v5968_v0, %v5554_v60  ;;  %v497_v1 = vadd.f32 %v9346_v54, %v9142_v62  ;;  %v9840_v9 = vpop.f32.mrb[15].mxu0 }
 0x1bb   : > { %v6874_v41 = vadd.f32 %v9729_v48, %v6507_v23  ;;  %v2514_v50 = vrot.slane %v2500_v49, %v9148_v33  ;;  %v2515_v52 = vcombine.high %v2507_v24, %v2507_v24  ;;  %v2523_v17 = vrot.slane %v2507_v24, %v9148_v33 }
 0x1bc   : > { %v836_v30 = vcombine.high %v497_v1, %v497_v1  ;;  %v9806_v34 = vrot.slane %v497_v1, %v9148_v33  ;;  %v9810_v7 = vadd.f32 %v9380_v31, %v9144_v12  ;;  %v9814_v11 = vadd.f32 %v9418_v16, %v9150_v42 }
 0x1bd   : > { %v2516_v54 = vcombine.high %v2514_v50, %v2514_v50  ;;  %v2530_v48 = vrot.slane %v2514_v50, %v9148_v33  ;;  %v2537_v27 = vrot.slane %v2515_v52, %v9148_v33  ;;  %v2545_v5 = vcombine.high %v2523_v17, %v2523_v17 }
 0x1be   : > { %v2844_v53 = vrot.slane %v2523_v17, %v9128_v45  ;;  %v9819_v61 = vadd.f32 %v6874_v41, %v6524_v37  ;;  %v9822_v58 = vrot.slane %v836_v30, %v9148_v33  ;;  %v851_v31 = vcombine.high %v9806_v34, %v9806_v34 }
 0x1bf   : > { %v2544_v44 = vrot.slane %v2516_v54, %v9148_v33  ;;  %v2546_v16 = vcombine.high %v2530_v48, %v2530_v48  ;;  %v2547_v25 = vcombine.high %v2537_v27, %v2537_v27  ;;  %v2848_v10 = vrot.slane %v2537_v27, %v9128_v45 }
 0x1c0   : > { %v2852_v18 = vrot.slane %v2545_v5, %v9128_v45  ;;  %v2860_v43 = vrot.slane %v2530_v48, %v9128_v45  ;;  %v3089_v14 = vsel %vm1816_vm2, %v9751_v19, %v2844_v53  ;;  %v852_v6 = vcombine.high %v9822_v58, %v9822_v58 }
 0x1c1   : > { %v2548_v40 = vcombine.high %v2544_v44, %v2544_v44  ;;  %v2856_v28 = vrot.slane %v2547_v25, %v9128_v45  ;;  %v2864_v63 = vrot.slane %v2544_v44, %v9128_v45  ;;  %v2868_v57 = vrot.slane %v2546_v16, %v9128_v45 }
 0x1c2   : > { %v3090_v60 = vsel %vm1816_vm2, %v2073_v51, %v2848_v10  ;;  %v3091_v0 = vsel %vm1816_vm2, %v2081_v38, %v2852_v18  ;;  %v3093_v35 = vsel %vm1816_vm2, %v2066_v8, %v2860_v43  ;;  %v3185_v26 = vmax.f32 %v3089_v14, 0.0 }
 0x1c3   : > { %v2872_v19 = vrot.slane %v2548_v40, %v9128_v45  ;;  %v3092_v23 = vsel %vm1816_vm2, %v2083_v56, %v2856_v28  ;;  %v3094_v49 = vsel %vm1816_vm2, %v2080_v13, %v2864_v63  ;;  %v3095_v24 = vsel %vm1816_vm2, %v2082_v21, %v2868_v57 }
 0x1c4   : > { %v3186_v37 = vmax.f32 %v3090_v60, 0.0  ;;  %v3187_v1 = vmax.f32 %v3091_v0, 0.0  ;;  %v3188_v41 = vmax.f32 %v3092_v23, 0.0  ;;  %v3189_v50 = vmax.f32 %v3093_v35, 0.0 }
 0x1c5   : > { %v3096_v51 = vsel %vm1816_vm2, %v2084_v32, %v2872_v19  ;;  %v3190_v38 = vmax.f32 %v3094_v49, 0.0  ;;  %v3191_v52 = vmax.f32 %v3095_v24, 0.0  ;;  %v6087_v8 = vmul.f32 %v3185_v26, %v3185_v26 }
 0x1c6   : > { %v3192_v17 = vmax.f32 %v3096_v51, 0.0  ;;  %v5555_v30 = vcombine.low %v3185_v26, %v3186_v37  ;;  %v5556_v54 = vcombine.low %v3187_v1, %v3188_v41  ;;  %v6088_v48 = vmul.f32 %v3186_v37, %v3186_v37 }
 0x1c7   : > { %v5572_v27 = vcombine.low %v3189_v50, %v3190_v38  ;;  %v6089_v5 = vmul.f32 %v3187_v1, %v3187_v1  ;;  %v6090_v56 = vmul.f32 %v3188_v41, %v3188_v41  ;;  %v6091_v53 = vmul.f32 %v3189_v50, %v3189_v50  ;;  %v9868_v50 = vpop.f32.mrb[14].mxu1 }
 0x1c8   : > { %v5563_v13 = vrot.slane %v5555_v30, %v9155_v47  ;;  %v5570_v21 = vrot.slane %v5556_v54, %v9155_v47  ;;  %v5573_v44 = vcombine.low %v3191_v52, %v3192_v17  ;;  %v6092_v16 = vmul.f32 %v3190_v38, %v3190_v38 }
 0x1c9   : > { %v5580_v32 = vrot.slane %v5572_v27, %v9155_v47  ;;  %v6093_v25 = vmul.f32 %v3191_v52, %v3191_v52  ;;  %v6094_v10 = vmul.f32 %v3192_v17, %v3192_v17  ;;  %v6525_v18 = vcombine.low %v6087_v8, %v6088_v48 }
 0x1ca   : > { %v5571_v43 = vcombine.low %v5563_v13, %v5570_v21  ;;  %v5587_v14 = vrot.slane %v5573_v44, %v9155_v47  ;;  %v6526_v40 = vcombine.low %v6089_v5, %v6090_v56  ;;  %v6542_v28 = vcombine.low %v6091_v53, %v6092_v16 }
 0x1cb   : > { %v6533_v63 = vrot.slane %v6525_v18, %v9155_v47  ;;  %v6543_v57 = vcombine.low %v6093_v25, %v6094_v10  ;;  %v859_v60 = vrot.slane %v9806_v34, %v9148_v33  ;;  %v866_v0 = vrot.slane %v9822_v58, %v9148_v33 }
 0x1cc   : > { %v5588_v35 = vcombine.low %v5580_v32, %v5587_v14  ;;  %5907 = vst [vmem:[%s9311_s14 + $0xe0] sm:$0xff] %v5571_v43  ;;  %v5970_v26 = vadd.f32 %v9798_v55, %v5571_v43  ;;  %v6540_v19 = vrot.slane %v6526_v40, %v9155_v47  ;;  %v6550_v23 = vrot.slane %v6542_v28, %v9155_v47 }
 0x1cd   : > { %v6557_v49 = vrot.slane %v6543_v57, %v9155_v47  ;;  %v873_v24 = vrot.slane %v851_v31, %v9148_v33  ;;  %v880_v37 = vrot.slane %v852_v6, %v9148_v33  ;;  %v881_v1 = vcombine.high %v859_v60, %v859_v60 }
 0x1ce   : > { %5908 = vst [vmem:[%s9311_s14 + $0xf0] sm:$0xff] %v5588_v35  ;;  %v6541_v34 = vcombine.low %v6533_v63, %v6540_v19  ;;  %v882_v41 = vcombine.high %v866_v0, %v866_v0  ;;  %v1300_v58 = vcombine.high %v9810_v7, %v9810_v7  ;;  %v1307_v55 = vrot.slane %v9810_v7, %v9148_v33 }
 0x1cf   : > { %v6558_v51 = vcombine.low %v6550_v23, %v6557_v49  ;;  %v883_v38 = vcombine.high %v873_v24, %v873_v24  ;;  %v884_v52 = vcombine.high %v880_v37, %v880_v37  ;;  %v9870_v8 = vadd.f32 %v5970_v26, %v5588_v35  ;;  %v9912_v23 = vpop.f32.mrb[15].mxu1 }
 0x1d0   : > { %v6876_v31 = vadd.f32 %v9819_v61, %v6541_v34  ;;  %v1314_v6 = vrot.slane %v1300_v58, %v9148_v33  ;;  %v1315_v17 = vcombine.high %v1307_v55, %v1307_v55  ;;  %v1323_v30 = vrot.slane %v1307_v55, %v9148_v33 }
 0x1d1   : > { %v2085_v54 = vcombine.high %v9814_v11, %v9814_v11  ;;  %v9879_v7 = vrot.slane %v9814_v11, %v9148_v33  ;;  %v9883_v48 = vadd.f32 %v9460_v46, %v9157_v36  ;;  %v9887_v27 = vadd.f32 %v9490_v15, %v9142_v62 }
 0x1d2   : > { %v1316_v61 = vcombine.high %v1314_v6, %v1314_v6  ;;  %v1330_v5 = vrot.slane %v1314_v6, %v9148_v33  ;;  %v1337_v56 = vrot.slane %v1315_v17, %v9148_v33  ;;  %v1345_v53 = vcombine.high %v1323_v30, %v1323_v30 }
 0x1d3   : > { %v1627_v13 = vrot.slane %v1323_v30, %v9128_v45  ;;  %v9892_v21 = vadd.f32 %v6876_v31, %v6558_v51  ;;  %v9895_v11 = vrot.slane %v2085_v54, %v9148_v33  ;;  %v2100_v46 = vcombine.high %v9879_v7, %v9879_v7 }
 0x1d4   : > { %v1344_v44 = vrot.slane %v1316_v61, %v9148_v33  ;;  %v1346_v15 = vcombine.high %v1330_v5, %v1330_v5  ;;  %v1347_v16 = vcombine.high %v1337_v56, %v1337_v56  ;;  %v1631_v32 = vrot.slane %v1337_v56, %v9128_v45 }
 0x1d5   : > { %v1635_v25 = vrot.slane %v1345_v53, %v9128_v45  ;;  %v1643_v10 = vrot.slane %v1330_v5, %v9128_v45  ;;  %v1849_v18 = vsel %vm1816_vm2, %v859_v60, %v1627_v13  ;;  %v2101_v43 = vcombine.high %v9895_v11, %v9895_v11 }
 0x1d6   : > { %v1348_v14 = vcombine.high %v1344_v44, %v1344_v44  ;;  %v1639_v40 = vrot.slane %v1347_v16, %v9128_v45  ;;  %v1647_v28 = vrot.slane %v1344_v44, %v9128_v45  ;;  %v1651_v63 = vrot.slane %v1346_v15, %v9128_v45 }
 0x1d7   : > { %v1850_v57 = vsel %vm1816_vm2, %v873_v24, %v1631_v32  ;;  %v1851_v35 = vsel %vm1816_vm2, %v881_v1, %v1635_v25  ;;  %v1853_v26 = vsel %vm1816_vm2, %v866_v0, %v1643_v10  ;;  %v3193_v19 = vmax.f32 %v1849_v18, 0.0 }
 0x1d8   : > { %v1655_v60 = vrot.slane %v1348_v14, %v9128_v45  ;;  %v1852_v49 = vsel %vm1816_vm2, %v883_v38, %v1639_v40  ;;  %v1854_v34 = vsel %vm1816_vm2, %v880_v37, %v1647_v28  ;;  %v1855_v58 = vsel %vm1816_vm2, %v882_v41, %v1651_v63 }
 0x1d9   : > { %v3194_v55 = vmax.f32 %v1850_v57, 0.0  ;;  %v3195_v51 = vmax.f32 %v1851_v35, 0.0  ;;  %v3196_v31 = vmax.f32 %v1852_v49, 0.0  ;;  %v3197_v6 = vmax.f32 %v1853_v26, 0.0 }
 0x1da   : > { %v1856_v24 = vsel %vm1816_vm2, %v884_v52, %v1655_v60  ;;  %v3198_v1 = vmax.f32 %v1854_v34, 0.0  ;;  %v3199_v17 = vmax.f32 %v1855_v58, 0.0  ;;  %v6095_v0 = vmul.f32 %v3193_v19, %v3193_v19 }
 0x1db   : > { %v3200_v30 = vmax.f32 %v1856_v24, 0.0  ;;  %v5589_v54 = vcombine.low %v3193_v19, %v3194_v55  ;;  %v5590_v61 = vcombine.low %v3195_v51, %v3196_v31  ;;  %v6096_v5 = vmul.f32 %v3194_v55, %v3194_v55 }
 0x1dc   : > { %v5606_v56 = vcombine.low %v3197_v6, %v3198_v1  ;;  %v6097_v53 = vmul.f32 %v3195_v51, %v3195_v51  ;;  %v6098_v38 = vmul.f32 %v3196_v31, %v3196_v31  ;;  %v6099_v13 = vmul.f32 %v3197_v6, %v3197_v6 }
 0x1dd   : > { %v5597_v37 = vrot.slane %v5589_v54, %v9155_v47  ;;  %v5604_v41 = vrot.slane %v5590_v61, %v9155_v47  ;;  %v5607_v44 = vcombine.low %v3199_v17, %v3200_v30  ;;  %v6100_v15 = vmul.f32 %v3198_v1, %v3198_v1 }
 0x1de   : > { %v5614_v52 = vrot.slane %v5606_v56, %v9155_v47  ;;  %v6101_v16 = vmul.f32 %v3199_v17, %v3199_v17  ;;  %v6102_v32 = vmul.f32 %v3200_v30, %v3200_v30  ;;  %v6559_v25 = vcombine.low %v6095_v0, %v6096_v5 }
 0x1df   : > { %v5605_v10 = vcombine.low %v5597_v37, %v5604_v41  ;;  %v5621_v18 = vrot.slane %v5607_v44, %v9155_v47  ;;  %v6560_v14 = vcombine.low %v6097_v53, %v6098_v38  ;;  %v6576_v40 = vcombine.low %v6099_v13, %v6100_v15 }
 0x1e0   : > { %v6567_v28 = vrot.slane %v6559_v25, %v9155_v47  ;;  %v6577_v63 = vcombine.low %v6101_v16, %v6102_v32  ;;  %v2108_v57 = vrot.slane %v9879_v7, %v9148_v33  ;;  %v2115_v35 = vrot.slane %v9895_v11, %v9148_v33 }
 0x1e1   : > { %v5622_v26 = vcombine.low %v5614_v52, %v5621_v18  ;;  %5909 = vst [vmem:[%s9311_s14 + $0x100] sm:$0xff] %v5605_v10  ;;  %v5972_v19 = vadd.f32 %v9870_v8, %v5605_v10  ;;  %v6574_v60 = vrot.slane %v6560_v14, %v9155_v47  ;;  %v6584_v49 = vrot.slane %v6576_v40, %v9155_v47 }
 0x1e2   : > { %v6591_v34 = vrot.slane %v6577_v63, %v9155_v47  ;;  %v2122_v58 = vrot.slane %v2100_v46, %v9148_v33  ;;  %v2129_v55 = vrot.slane %v2101_v43, %v9148_v33  ;;  %v2130_v51 = vcombine.high %v2108_v57, %v2108_v57 }
 0x1e3   : > { %5910 = vst [vmem:[%s9311_s14 + $0x110] sm:$0xff] %v5622_v26  ;;  %v6575_v7 = vcombine.low %v6567_v28, %v6574_v60  ;;  %v2131_v31 = vcombine.high %v2115_v35, %v2115_v35  ;;  %v2549_v11 = vcombine.high %v9883_v48, %v9883_v48  ;;  %v2556_v8 = vrot.slane %v9883_v48, %v9148_v33 }
 0x1e4   : > { %v6592_v6 = vcombine.low %v6584_v49, %v6591_v34  ;;  %v2132_v24 = vcombine.high %v2122_v58, %v2122_v58  ;;  %v2133_v1 = vcombine.high %v2129_v55, %v2129_v55  ;;  %v9940_v17 = vadd.f32 %v5972_v19, %v5622_v26 }
 0x1e5   : > { %v6878_v0 = vadd.f32 %v9892_v21, %v6575_v7  ;;  %v2563_v46 = vrot.slane %v2549_v11, %v9148_v33  ;;  %v2564_v43 = vcombine.high %v2556_v8, %v2556_v8  ;;  %v2572_v30 = vrot.slane %v2556_v8, %v9148_v33 }
 0x1e6   : > { %v885_v54 = vcombine.high %v9887_v27, %v9887_v27  ;;  %v9949_v61 = vrot.slane %v9887_v27, %v9148_v33  ;;  %v9953_v48 = vadd.f32 %v9525_v20, %v9144_v12  ;;  %v9957_v5 = vadd.f32 %v9563_v4, %v9150_v42 }
 0x1e7   : > { %v2565_v21 = vcombine.high %v2563_v46, %v2563_v46  ;;  %v2579_v56 = vrot.slane %v2563_v46, %v9148_v33  ;;  %v2586_v53 = vrot.slane %v2564_v43, %v9148_v33  ;;  %v2594_v38 = vcombine.high %v2572_v30, %v2572_v30 }
 0x1e8   : > { %v2876_v13 = vrot.slane %v2572_v30, %v9128_v45  ;;  %v9962_v37 = vadd.f32 %v6878_v0, %v6592_v6  ;;  %v899_v27 = vrot.slane %v885_v54, %v9148_v33  ;;  %v900_v20 = vcombine.high %v9949_v61, %v9949_v61 }
 0x1e9   : > { %v2593_v41 = vrot.slane %v2565_v21, %v9148_v33  ;;  %v2595_v44 = vcombine.high %v2579_v56, %v2579_v56  ;;  %v2596_v4 = vcombine.high %v2586_v53, %v2586_v53  ;;  %v2880_v15 = vrot.slane %v2586_v53, %v9128_v45 }
 0x1ea   : > { %v2884_v52 = vrot.slane %v2594_v38, %v9128_v45  ;;  %v2892_v16 = vrot.slane %v2579_v56, %v9128_v45  ;;  %v3097_v32 = vsel %vm1816_vm2, %v2108_v57, %v2876_v13  ;;  %v901_v25 = vcombine.high %v899_v27, %v899_v27 }
 0x1eb   : > { %v2597_v10 = vcombine.high %v2593_v41, %v2593_v41  ;;  %v2888_v18 = vrot.slane %v2596_v4, %v9128_v45  ;;  %v2896_v14 = vrot.slane %v2593_v41, %v9128_v45  ;;  %v2900_v40 = vrot.slane %v2595_v44, %v9128_v45 }
 0x1ec   : > { %v3098_v28 = vsel %vm1816_vm2, %v2122_v58, %v2880_v15  ;;  %v3099_v63 = vsel %vm1816_vm2, %v2130_v51, %v2884_v52  ;;  %v3101_v26 = vsel %vm1816_vm2, %v2115_v35, %v2892_v16  ;;  %v3201_v19 = vmax.f32 %v3097_v32, 0.0 }
 0x1ed   : > { %v2904_v60 = vrot.slane %v2597_v10, %v9128_v45  ;;  %v3100_v49 = vsel %vm1816_vm2, %v2132_v24, %v2888_v18  ;;  %v3102_v57 = vsel %vm1816_vm2, %v2129_v55, %v2896_v14  ;;  %v3103_v34 = vsel %vm1816_vm2, %v2131_v31, %v2900_v40 }
 0x1ee   : > { %v3202_v7 = vmax.f32 %v3098_v28, 0.0  ;;  %v3203_v11 = vmax.f32 %v3099_v63, 0.0  ;;  %v3204_v8 = vmax.f32 %v3100_v49, 0.0  ;;  %v3205_v6 = vmax.f32 %v3101_v26, 0.0 }
 0x1ef   : > { %v3104_v0 = vsel %vm1816_vm2, %v2133_v1, %v2904_v60  ;;  %v3206_v58 = vmax.f32 %v3102_v57, 0.0  ;;  %v3207_v46 = vmax.f32 %v3103_v34, 0.0  ;;  %v6103_v51 = vmul.f32 %v3201_v19, %v3201_v19 }
 0x1f0   : > { %v3208_v43 = vmax.f32 %v3104_v0, 0.0  ;;  %v5623_v35 = vcombine.low %v3201_v19, %v3202_v7  ;;  %v5624_v30 = vcombine.low %v3203_v11, %v3204_v8  ;;  %v6104_v54 = vmul.f32 %v3202_v7, %v3202_v7 }
 0x1f1   : > { %v5640_v21 = vcombine.low %v3205_v6, %v3206_v58  ;;  %v6105_v56 = vmul.f32 %v3203_v11, %v3203_v11  ;;  %v6106_v24 = vmul.f32 %v3204_v8, %v3204_v8  ;;  %v6107_v53 = vmul.f32 %v3205_v6, %v3205_v6 }
 0x1f2   : > { %v5631_v55 = vrot.slane %v5623_v35, %v9155_v47  ;;  %v5638_v31 = vrot.slane %v5624_v30, %v9155_v47  ;;  %v5641_v38 = vcombine.low %v3207_v46, %v3208_v43  ;;  %v6108_v13 = vmul.f32 %v3206_v58, %v3206_v58 }
 0x1f3   : > { %v5648_v1 = vrot.slane %v5640_v21, %v9155_v47  ;;  %v6109_v41 = vmul.f32 %v3207_v46, %v3207_v46  ;;  %v6110_v44 = vmul.f32 %v3208_v43, %v3208_v43  ;;  %v6593_v4 = vcombine.low %v6103_v51, %v6104_v54 }
 0x1f4   : > { %v5639_v15 = vcombine.low %v5631_v55, %v5638_v31  ;;  %v5655_v52 = vrot.slane %v5641_v38, %v9155_v47  ;;  %v6594_v16 = vcombine.low %v6105_v56, %v6106_v24  ;;  %v6610_v32 = vcombine.low %v6107_v53, %v6108_v13 }
 0x1f5   : > { %v6601_v10 = vrot.slane %v6593_v4, %v9155_v47  ;;  %v6611_v18 = vcombine.low %v6109_v41, %v6110_v44  ;;  %v908_v14 = vrot.slane %v9949_v61, %v9148_v33  ;;  %v915_v40 = vrot.slane %v899_v27, %v9148_v33 }
 0x1f6   : > { %v5656_v28 = vcombine.low %v5648_v1, %v5655_v52  ;;  %5911 = vst [vmem:[%s9311_s14 + $0x120] sm:$0xff] %v5639_v15  ;;  %v5974_v63 = vadd.f32 %v9940_v17, %v5639_v15  ;;  %v6608_v26 = vrot.slane %v6594_v16, %v9155_v47  ;;  %v6618_v19 = vrot.slane %v6610_v32, %v9155_v47  ;;  %v10042_v16 = vpop.f32.mrb[32].mxu0  ;;  %v10044_v32 = vpop.f32.mrb[16].mxu1 }
 0x1f7   : > { %v6625_v60 = vrot.slane %v6611_v18, %v9155_v47  ;;  %v922_v49 = vrot.slane %v900_v20, %v9148_v33  ;;  %v929_v57 = vrot.slane %v901_v25, %v9148_v33  ;;  %v930_v34 = vcombine.high %v908_v14, %v908_v14 }
 0x1f8   : > { %5912 = vst [vmem:[%s9311_s14 + $0x130] sm:$0xff] %v5656_v28  ;;  %v6609_v7 = vcombine.low %v6601_v10, %v6608_v26  ;;  %v931_v61 = vcombine.high %v915_v40, %v915_v40  ;;  %v1349_v27 = vcombine.high %v9953_v48, %v9953_v48  ;;  %v1356_v17 = vrot.slane %v9953_v48, %v9148_v33  ;;  %v4815_v26 = vpop.f32.mrb[17].mxu1 }
 0x1f9   : > { %v6626_v11 = vcombine.low %v6618_v19, %v6625_v60  ;;  %v932_v8 = vcombine.high %v922_v49, %v922_v49  ;;  %v933_v6 = vcombine.high %v929_v57, %v929_v57  ;;  %v10003_v0 = vadd.f32 %v5974_v63, %v5656_v28  ;;  %v4590_v63 = vpop.f32.mrb[33].mxu0 }
 0x1fa   : > { %v6880_v58 = vadd.f32 %v9962_v37, %v6609_v7  ;;  %v1363_v20 = vrot.slane %v1349_v27, %v9148_v33  ;;  %v1364_v25 = vcombine.high %v1356_v17, %v1356_v17  ;;  %v1372_v46 = vrot.slane %v1356_v17, %v9148_v33  ;;  %v10053_v17 = vpop.f32.mrb[34].mxu0 }
 0x1fb   : > { %v2134_v51 = vcombine.high %v9957_v5, %v9957_v5  ;;  %v10012_v43 = vrot.slane %v9957_v5, %v9148_v33  ;;  %v10016_v48 = vadd.f32 %v9617_v2, %v9157_v36  ;;  %v10020_v35 = vadd.f32 %v9649_v39, %v9142_v62 }
 0x1fc   : > { %v1365_v37 = vcombine.high %v1363_v20, %v1363_v20  ;;  %v1379_v30 = vrot.slane %v1363_v20, %v9148_v33  ;;  %v1386_v54 = vrot.slane %v1364_v25, %v9148_v33  ;;  %v1394_v21 = vcombine.high %v1372_v46, %v1372_v46 }
 0x1fd   : > { %v1659_v56 = vrot.slane %v1372_v46, %v9128_v45  ;;  %v10025_v24 = vadd.f32 %v6880_v58, %v6626_v11  ;;  %v10028_v5 = vrot.slane %v2134_v51, %v9148_v33  ;;  %v2149_v2 = vcombine.high %v10012_v43, %v10012_v43  ;;  %v10055_v11 = vpop.f32.mrb[18].mxu1 }
 0x1fe   : > { %v1393_v53 = vrot.slane %v1365_v37, %v9148_v33  ;;  %v1395_v39 = vcombine.high %v1379_v30, %v1379_v30  ;;  %v1396_v55 = vcombine.high %v1386_v54, %v1386_v54  ;;  %v1663_v31 = vrot.slane %v1386_v54, %v9128_v45  ;;  %v4820_v25 = vpop.f32.mrb[19].mxu1 }
 0x1ff   : > { %v1667_v38 = vrot.slane %v1394_v21, %v9128_v45  ;;  %v1675_v13 = vrot.slane %v1379_v30, %v9128_v45  ;;  %v1857_v1 = vsel %vm1816_vm2, %v908_v14, %v1659_v56  ;;  %v2150_v41 = vcombine.high %v10028_v5, %v10028_v5 }
 0x200   : > { %v1397_v44 = vcombine.high %v1393_v53, %v1393_v53  ;;  %v1671_v4 = vrot.slane %v1396_v55, %v9128_v45  ;;  %v1679_v15 = vrot.slane %v1393_v53, %v9128_v45  ;;  %v1683_v52 = vrot.slane %v1395_v39, %v9128_v45 }
 0x201   : > { %v1858_v10 = vsel %vm1816_vm2, %v922_v49, %v1663_v31  ;;  %v1859_v18 = vsel %vm1816_vm2, %v930_v34, %v1667_v38  ;;  %v1861_v14 = vsel %vm1816_vm2, %v915_v40, %v1675_v13  ;;  %v3209_v28 = vmax.f32 %v1857_v1, 0.0  ;;  %v4595_v40 = vpop.f32.mrb[35].mxu0 }
 0x202   : > { %v1687_v19 = vrot.slane %v1397_v44, %v9128_v45  ;;  %v1860_v60 = vsel %vm1816_vm2, %v932_v8, %v1671_v4  ;;  %v1862_v7 = vsel %vm1816_vm2, %v929_v57, %v1679_v15  ;;  %v1863_v27 = vsel %vm1816_vm2, %v931_v61, %v1683_v52  ;;  %v10058_v8 = vpop.f32.mrb[36].mxu0  ;;  %v10060_v57 = vpop.f32.mrb[20].mxu1 }
 0x203   : > { %v3210_v49 = vmax.f32 %v1858_v10, 0.0  ;;  %v3211_v58 = vmax.f32 %v1859_v18, 0.0  ;;  %v3212_v34 = vmax.f32 %v1860_v60, 0.0  ;;  %v3213_v20 = vmax.f32 %v1861_v14, 0.0  ;;  %v4600_v53 = vpop.f32.mrb[37].mxu0  ;;  %v4825_v39 = vpop.f32.mrb[21].mxu1 }
 0x204   : > { %v1864_v46 = vsel %vm1816_vm2, %v933_v6, %v1687_v19  ;;  %v3214_v51 = vmax.f32 %v1862_v7, 0.0  ;;  %v3215_v37 = vmax.f32 %v1863_v27, 0.0  ;;  %v6111_v30 = vmul.f32 %v3209_v28, %v3209_v28  ;;  %v10062_v1 = vpop.f32.mrb[38].mxu0  ;;  %v10064_v6 = vpop.f32.mrb[22].mxu1 }
 0x205   : > { %v3216_v61 = vmax.f32 %v1864_v46, 0.0  ;;  %v5657_v54 = vcombine.low %v3209_v28, %v3210_v49  ;;  %v5658_v21 = vcombine.low %v3211_v58, %v3212_v34  ;;  %v6112_v56 = vmul.f32 %v3210_v49, %v3210_v49  ;;  %v4605_v10 = vpop.f32.mrb[39].mxu0  ;;  %v4830_v18 = vpop.f32.mrb[23].mxu1 }
 0x206   : > { %v5674_v55 = vcombine.low %v3213_v20, %v3214_v51  ;;  %v6113_v31 = vmul.f32 %v3211_v58, %v3211_v58  ;;  %v6114_v38 = vmul.f32 %v3212_v34, %v3212_v34  ;;  %v6115_v13 = vmul.f32 %v3213_v20, %v3213_v20  ;;  %v10069_v19 = vpop.f32.mrb[40].mxu0  ;;  %v10071_v60 = vpop.f32.mrb[24].mxu1 }
 0x207   : > { %v5665_v44 = vrot.slane %v5657_v54, %v9155_v47  ;;  %v5672_v4 = vrot.slane %v5658_v21, %v9155_v47  ;;  %v5675_v15 = vcombine.low %v3215_v37, %v3216_v61  ;;  %v6116_v52 = vmul.f32 %v3214_v51, %v3214_v51  ;;  %v4610_v34 = vpop.f32.mrb[41].mxu0  ;;  %v4835_v20 = vpop.f32.mrb[25].mxu1 }
 0x208   : > { %v5682_v14 = vrot.slane %v5674_v55, %v9155_v47  ;;  %v6117_v28 = vmul.f32 %v3215_v37, %v3215_v37  ;;  %v6118_v63 = vmul.f32 %v3216_v61, %v3216_v61  ;;  %v6627_v26 = vcombine.low %v6111_v30, %v6112_v56  ;;  %v10083_v37 = vpop.f32.mrb[42].mxu0  ;;  %v10085_v30 = vpop.f32.mrb[26].mxu1 }
 0x209   : > { %v5673_v7 = vcombine.low %v5665_v44, %v5672_v4  ;;  %v5689_v27 = vrot.slane %v5675_v15, %v9155_v47  ;;  %v6628_v49 = vcombine.low %v6113_v31, %v6114_v38  ;;  %v6644_v58 = vcombine.low %v6115_v13, %v6116_v52  ;;  %v4615_v53 = vpop.f32.mrb[43].mxu0  ;;  %v4840_v39 = vpop.f32.mrb[27].mxu1 }
 0x20a   : > { %v6635_v40 = vrot.slane %v6627_v26, %v9155_v47  ;;  %v6645_v25 = vcombine.low %v6117_v28, %v6118_v63  ;;  %v10077_v46 = vrot.slane %v10012_v43, %v9148_v33  ;;  %v10081_v51 = vrot.slane %v10028_v5, %v9148_v33  ;;  %v10106_v13 = vpop.f32.mrb[44].mxu0  ;;  %v10108_v44 = vpop.f32.mrb[28].mxu1 }
 0x20b   : > { %v5690_v61 = vcombine.low %v5682_v14, %v5689_v27  ;;  %5913 = vst [vmem:[%s9311_s14 + $0x140] sm:$0xff] %v5673_v7  ;;  %v5976_v54 = vadd.f32 %v10003_v0, %v5673_v7  ;;  %v6642_v21 = vrot.slane %v6628_v49, %v9155_v47  ;;  %v6652_v56 = vrot.slane %v6644_v58, %v9155_v47  ;;  %v4845_v15 = vpop.f32.mrb[29].mxu1 }
 0x20c   : > { %v6659_v55 = vrot.slane %v6645_v25, %v9155_v47  ;;  %v10096_v31 = vrot.slane %v2149_v2, %v9148_v33  ;;  %v10102_v38 = vrot.slane %v2150_v41, %v9148_v33  ;;  %v2179_v0 = vcombine.high %v10077_v46, %v10077_v46  ;;  %v4620_v41 = vpop.f32.mrb[45].mxu0  ;;  %v10125_v63 = vpop.f32.mrb[30].mxu1 }
 0x20d   : > { %5914 = vst [vmem:[%s9311_s14 + $0x150] sm:$0xff] %v5690_v61  ;;  %v6643_v4 = vcombine.low %v6635_v40, %v6642_v21  ;;  %v2598_v2 = vcombine.high %v10016_v48, %v10016_v48  ;;  %v2605_v5 = vrot.slane %v10016_v48, %v9148_v33  ;;  %v10121_v14 = vadd.f32 %v5976_v54, %v5690_v61  ;;  %v10123_v28 = vpop.f32.mrb[46].mxu0  ;;  %v4850_v58 = vpop.f32.mrb[31].mxu1 }
 0x20e   : > { %v6660_v52 = vcombine.low %v6652_v56, %v6659_v55  ;;  %v2181_v10 = vcombine.high %v10096_v31, %v10096_v31  ;;  %v4625_v49 = vpop.f32.mrb[47].mxu0  ;;  %v934_v34 = vcombine.high %v10020_v35, %v10020_v35  ;;  %v10134_v20 = vrot.slane %v10020_v35, %v9148_v33  ;;  %v10146_v61 = vpop.f32.mrb[32].mxu1 }
 0x20f   : > { %v6882_v26 = vadd.f32 %v10025_v24, %v6643_v4  ;;  %v2612_v7 = vrot.slane %v2598_v2, %v9148_v33  ;;  %v2613_v48 = vcombine.high %v2605_v5, %v2605_v5  ;;  %v2621_v27 = vrot.slane %v2605_v5, %v9148_v33  ;;  %v10144_v25 = vpop.f32.mrb[48].mxu0  ;;  %11054 = vst [vmem:[#allocation3_spill] sm:$0xff] %v10146_v61  ;;  %v4855_v39 = vpop.f32.mrb[33].mxu1 }
 0x210   : > { %v10138_v40 = vadd.f32 %v9684_v29, %v9144_v12  ;;  %v10142_v24 = vadd.f32 %v9718_v3, %v9150_v42  ;;  %v4630_v35 = vpop.f32.mrb[49].mxu0  ;;  %v10154_v4 = vrot.slane %v934_v34, %v9148_v33  ;;  %v10160_v5 = vpop.f32.mrb[34].mxu1 }
 0x211   : > { %v2614_v54 = vcombine.high %v2612_v7, %v2612_v7  ;;  %v2628_v21 = vrot.slane %v2612_v7, %v9148_v33  ;;  %v2635_v56 = vrot.slane %v2613_v48, %v9148_v33  ;;  %v2643_v53 = vcombine.high %v2621_v27, %v2621_v27  ;;  %v10158_v2 = vpop.f32.mrb[50].mxu0  ;;  %11055 = vst [vmem:[#allocation4_spill] sm:$0xff] %v10160_v5 }
 0x212   : > { %v2908_v55 = vrot.slane %v2621_v27, %v9128_v45  ;;  %v10151_v29 = vadd.f32 %v6882_v26, %v6660_v52  ;;  %v4635_v49 = vpop.f32.mrb[51].mxu0  ;;  %v4860_v27 = vpop.f32.mrb[35].mxu1 }
 0x213   : > { %v2642_v41 = vrot.slane %v2614_v54, %v9148_v33  ;;  %v2644_v15 = vcombine.high %v2628_v21, %v2628_v21  ;;  %v2645_v7 = vcombine.high %v2635_v56, %v2635_v56  ;;  %v2912_v48 = vrot.slane %v2635_v56, %v9128_v45  ;;  %v10170_v35 = vpop.f32.mrb[52].mxu0  ;;  %v10172_v39 = vpop.f32.mrb[36].mxu1 }
 0x214   : > { %v2916_v52 = vrot.slane %v2643_v53, %v9128_v45  ;;  %v2924_v26 = vrot.slane %v2628_v21, %v9128_v45  ;;  %v3105_v58 = vsel %vm1816_vm2, %v10077_v46, %v2908_v55  ;;  %11056 = vst [vmem:[#allocation5_spill] sm:$0xff] %v10172_v39  ;;  %v4640_v53 = vpop.f32.mrb[53].mxu0  ;;  %v4865_v27 = vpop.f32.mrb[37].mxu1 }
 0x215   : > { %v2646_v54 = vcombine.high %v2642_v41, %v2642_v41  ;;  %v2920_v3 = vrot.slane %v2645_v7, %v9128_v45  ;;  %v2928_v56 = vrot.slane %v2642_v41, %v9128_v45  ;;  %v2932_v49 = vrot.slane %v2644_v15, %v9128_v45  ;;  %v10182_v18 = vpop.f32.mrb[54].mxu0  ;;  %v10184_v43 = vpop.f32.mrb[38].mxu1 }
 0x216   : > { %v3106_v21 = vsel %vm1816_vm2, %v10096_v31, %v2912_v48  ;;  %v3107_v46 = vsel %vm1816_vm2, %v2179_v0, %v2916_v52  ;;  %v3109_v55 = vsel %vm1816_vm2, %v10081_v51, %v2924_v26  ;;  %v3217_v34 = vmax.f32 %v3105_v58, 0.0  ;;  %11057 = vst [vmem:[#allocation6_spill] sm:$0xff] %v10182_v18  ;;  %11058 = vst [vmem:[#allocation7_spill] sm:$0xff] %v10184_v43  ;;  %v4645_v48 = vpop.f32.mrb[55].mxu0  ;;  %v4870_v52 = vpop.f32.mrb[39].mxu1 }
 0x217   : > { %v2936_v7 = vrot.slane %v2646_v54, %v9128_v45  ;;  %v3108_v41 = vsel %vm1816_vm2, %v2181_v10, %v2920_v3  ;;  %v3110_v15 = vsel %vm1816_vm2, %v10102_v38, %v2928_v56  ;;  %v11059_v31 = vcombine.high %v10081_v51, %v10081_v51  ;;  %v10194_v18 = vpop.f32.mrb[56].mxu0  ;;  %v10196_v43 = vpop.f32.mrb[40].mxu1 }
 0x218   : > { %v3218_v26 = vmax.f32 %v3106_v21, 0.0  ;;  %v3219_v58 = vmax.f32 %v3107_v46, 0.0  ;;  %v3220_v53 = vmax.f32 %v3108_v41, 0.0  ;;  %v3221_v27 = vmax.f32 %v3109_v55, 0.0  ;;  %11060 = vst [vmem:[#allocation8_spill] sm:$0xff] %v10194_v18  ;;  %11061 = vst [vmem:[#allocation9_spill] sm:$0xff] %v10196_v43 }
 0x219   : > { %v3111_v0 = vsel %vm1816_vm2, %v11059_v31, %v2932_v49  ;;  %v11062_v10 = vcombine.high %v10102_v38, %v10102_v38  ;;  %v3222_v54 = vmax.f32 %v3110_v15, 0.0  ;;  %v6119_v51 = vmul.f32 %v3217_v34, %v3217_v34  ;;  %v4650_v39 = vpop.f32.mrb[57].mxu0  ;;  %v4875_v49 = vpop.f32.mrb[41].mxu1 }
 0x21a   : > { %v3223_v56 = vmax.f32 %v3111_v0, 0.0  ;;  %v5691_v48 = vcombine.low %v3217_v34, %v3218_v26  ;;  %v5692_v21 = vcombine.low %v3219_v58, %v3220_v53  ;;  %v6120_v46 = vmul.f32 %v3218_v26, %v3218_v26  ;;  %v10202_v41 = vpop.f32.mrb[58].mxu0  ;;  %v10204_v55 = vpop.f32.mrb[42].mxu1 }
 0x21b   : > { %v3112_v3 = vsel %vm1816_vm2, %v11062_v10, %v2936_v7  ;;  %11063 = vst [vmem:[#allocation10_spill] sm:$0xff] %v10204_v55  ;;  %v5708_v52 = vcombine.low %v3221_v27, %v3222_v54  ;;  %v6121_v43 = vmul.f32 %v3219_v58, %v3219_v58  ;;  %v6122_v18 = vmul.f32 %v3220_v53, %v3220_v53  ;;  %v4655_v38 = vpop.f32.mrb[59].mxu0  ;;  %v4880_v61 = vpop.f32.mrb[43].mxu1 }
 0x21c   : > { %v3224_v31 = vmax.f32 %v3112_v3, 0.0  ;;  %v6123_v5 = vmul.f32 %v3221_v27, %v3221_v27  ;;  %v5699_v7 = vrot.slane %v5691_v48, %v9155_v47  ;;  %v5706_v15 = vrot.slane %v5692_v21, %v9155_v47  ;;  %v10208_v10 = vpop.f32.mrb[60].mxu0  ;;  %v10210_v34 = vpop.f32.mrb[44].mxu1 }
 0x21d   : > { %v6124_v0 = vmul.f32 %v3222_v54, %v3222_v54  ;;  %11064 = vst [vmem:[#allocation11_spill] sm:$0xff] %v10208_v10  ;;  %11065 = vst [vmem:[#allocation12_spill] sm:$0xff] %v10210_v34  ;;  %v5716_v26 = vrot.slane %v5708_v52, %v9155_v47  ;;  %v6125_v3 = vmul.f32 %v3223_v56, %v3223_v56  ;;  %v4660_v58 = vpop.f32.mrb[61].mxu0  ;;  %v4885_v53 = vpop.f32.mrb[45].mxu1 }
 0x21e   : > { %v5709_v39 = vcombine.low %v3223_v56, %v3224_v31  ;;  %v6126_v49 = vmul.f32 %v3224_v31, %v3224_v31  ;;  %v6661_v55 = vcombine.low %v6119_v51, %v6120_v46  ;;  %v5707_v27 = vcombine.low %v5699_v7, %v5706_v15  ;;  %v10214_v21 = vpop.f32.mrb[62].mxu0  ;;  %v10216_v54 = vpop.f32.mrb[46].mxu1 }
 0x21f   : > { %v6662_v48 = vcombine.low %v6121_v43, %v6122_v18  ;;  %v6678_v38 = vcombine.low %v6123_v5, %v6124_v0  ;;  %v10221_v56 = vrot.slane %v10134_v20, %v9148_v33  ;;  %v10225_v51 = vrot.slane %v10154_v4, %v9148_v33  ;;  %v4665_v31 = vpop.f32.mrb[63].mxu0  ;;  %v4890_v46 = vpop.f32.mrb[47].mxu1 }
 0x220   : > { %v5723_v61 = vrot.slane %v5709_v39, %v9155_v47  ;;  %v6669_v10 = vrot.slane %v6661_v55, %v9155_v47  ;;  %v6679_v34 = vcombine.low %v6125_v3, %v6126_v49  ;;  %5915 = vst [vmem:[%s9311_s14 + $0x160] sm:$0xff] %v5707_v27  ;;  %v5978_v18 = vadd.f32 %v10121_v14, %v5707_v27  ;;  %v10231_v52 = vpop.f32.mrb[64].mxu0  ;;  %v10233_v7 = vpop.f32.mrb[48].mxu1 }
 0x221   : > { %v6676_v5 = vrot.slane %v6662_v48, %v9155_v47  ;;  %v6686_v55 = vrot.slane %v6678_v38, %v9155_v47  ;;  %11066 = vst [vmem:[#allocation13_spill] sm:$0xff] %v10233_v7  ;;  %v11067_v39 = vcombine.high %v10134_v20, %v10134_v20  ;;  %v11068_v14 = vcombine.high %v10154_v4, %v10154_v4  ;;  %v4670_v49 = vpop.f32.mrb[65].mxu0  ;;  %v4895_v58 = vpop.f32.mrb[49].mxu1 }
 0x222   : > { %v5724_v43 = vcombine.low %v5716_v26, %v5723_v61  ;;  %v6693_v15 = vrot.slane %v6679_v34, %v9155_v47  ;;  %v979_v3 = vcombine.high %v10221_v56, %v10221_v56  ;;  %v1398_v20 = vcombine.high %v10138_v40, %v10138_v40  ;;  %v10257_v61 = vpop.f32.mrb[66].mxu0  ;;  %v10259_v4 = vpop.f32.mrb[50].mxu1 }
 0x223   : > { %v10240_v0 = vrot.slane %v11067_v39, %v9148_v33  ;;  %v10246_v26 = vrot.slane %v11068_v14, %v9148_v33  ;;  %v6677_v53 = vcombine.low %v6669_v10, %v6676_v5  ;;  %v1405_v27 = vrot.slane %v10138_v40, %v9148_v33  ;;  %11069 = vst [vmem:[#allocation14_spill] sm:$0xff] %v10257_v61  ;;  %v4675_v46 = vpop.f32.mrb[67].mxu0  ;;  %v4900_v5 = vpop.f32.mrb[51].mxu1 }
 0x224   : > { %5916 = vst [vmem:[%s9311_s14 + $0x170] sm:$0xff] %v5724_v43  ;;  %11070 = vst [vmem:[#allocation15_spill] sm:$0xff] %v10259_v4  ;;  %v6694_v48 = vcombine.low %v6686_v55, %v6693_v15  ;;  %v10265_v31 = vadd.f32 %v5978_v18, %v5724_v43  ;;  %v1412_v14 = vrot.slane %v1398_v20, %v9148_v33  ;;  %v10270_v58 = vpop.f32.mrb[68].mxu0  ;;  %v10272_v55 = vpop.f32.mrb[52].mxu1 }
 0x225   : > { %v981_v38 = vcombine.high %v10240_v0, %v10240_v0  ;;  %v6884_v39 = vadd.f32 %v10151_v29, %v6677_v53  ;;  %v1413_v40 = vcombine.high %v1405_v27, %v1405_v27  ;;  %v1421_v49 = vrot.slane %v1405_v27, %v9148_v33  ;;  %11071 = vst [vmem:[#allocation16_spill] sm:$0xff] %v10270_v58  ;;  %v4680_v53 = vpop.f32.mrb[69].mxu0  ;;  %v4905_v20 = vpop.f32.mrb[53].mxu1 }
 0x226   : > { %11072 = vst [vmem:[#allocation17_spill] sm:$0xff] %v10272_v55  ;;  %v2183_v15 = vcombine.high %v10142_v24, %v10142_v24  ;;  %v10278_v43 = vrot.slane %v10142_v24, %v9148_v33  ;;  %v10282_v18 = vadd.f32 %v9768_v59, %v9157_v36  ;;  %v10286_v29 = vadd.f32 %v9796_v22, %v9142_v62  ;;  %v10290_v34 = vpop.f32.mrb[70].mxu0  ;;  %v10292_v24 = vpop.f32.mrb[54].mxu1 }
 0x227   : > { %v1414_v27 = vcombine.high %v1412_v14, %v1412_v14  ;;  %v1428_v46 = vrot.slane %v1412_v14, %v9148_v33  ;;  %v1435_v5 = vrot.slane %v1413_v40, %v9148_v33  ;;  %v1443_v10 = vcombine.high %v1421_v49, %v1421_v49  ;;  %11073 = vst [vmem:[#allocation18_spill] sm:$0xff] %v10290_v34  ;;  %v4685_v22 = vpop.f32.mrb[71].mxu0  ;;  %v4910_v53 = vpop.f32.mrb[55].mxu1 }
 0x228   : > { %11074 = vst [vmem:[#allocation19_spill] sm:$0xff] %v10292_v24  ;;  %v1691_v55 = vrot.slane %v1421_v49, %v9128_v45  ;;  %v10295_v59 = vadd.f32 %v6884_v39, %v6694_v48  ;;  %v10298_v4 = vrot.slane %v2183_v15, %v9148_v33  ;;  %v10304_v58 = vpop.f32.mrb[72].mxu0  ;;  %v10306_v24 = vpop.f32.mrb[56].mxu1 }
 0x229   : > { %v1442_v14 = vrot.slane %v1414_v27, %v9148_v33  ;;  %v1444_v40 = vcombine.high %v1428_v46, %v1428_v46  ;;  %v1445_v20 = vcombine.high %v1435_v5, %v1435_v5  ;;  %v1695_v34 = vrot.slane %v1435_v5, %v9128_v45  ;;  %11075 = vst [vmem:[#allocation20_spill] sm:$0xff] %v10304_v58  ;;  %v4690_v22 = vpop.f32.mrb[73].mxu0  ;;  %v4915_v27 = vpop.f32.mrb[57].mxu1 }
 0x22a   : > { %11076 = vst [vmem:[#allocation21_spill] sm:$0xff] %v10306_v24  ;;  %v1699_v48 = vrot.slane %v1443_v10, %v9128_v45  ;;  %v1707_v39 = vrot.slane %v1428_v46, %v9128_v45  ;;  %v1865_v49 = vsel %vm1816_vm2, %v10221_v56, %v1691_v55  ;;  %v10317_v24 = vpop.f32.mrb[74].mxu0  ;;  %v10319_v10 = vpop.f32.mrb[58].mxu1 }
 0x22b   : > { %v1446_v53 = vcombine.high %v1442_v14, %v1442_v14  ;;  %v1703_v62 = vrot.slane %v1445_v20, %v9128_v45  ;;  %v1711_v5 = vrot.slane %v1442_v14, %v9128_v45  ;;  %v1715_v58 = vrot.slane %v1444_v40, %v9128_v45  ;;  %11077 = vst [vmem:[#allocation22_spill] sm:$0xff] %v10317_v24  ;;  %v4695_v27 = vpop.f32.mrb[75].mxu0  ;;  %v4920_v15 = vpop.f32.mrb[59].mxu1 }
 0x22c   : > { %11078 = vst [vmem:[#allocation23_spill] sm:$0xff] %v10319_v10  ;;  %v1866_v46 = vsel %vm1816_vm2, %v10240_v0, %v1695_v34  ;;  %v1867_v56 = vsel %vm1816_vm2, %v979_v3, %v1699_v48  ;;  %v1869_v55 = vsel %vm1816_vm2, %v10225_v51, %v1707_v39  ;;  %v3225_v22 = vmax.f32 %v1865_v49, 0.0  ;;  %v10334_v34 = vpop.f32.mrb[76].mxu0  ;;  %v10336_v3 = vpop.f32.mrb[60].mxu1 }
 0x22d   : > { %v1719_v20 = vrot.slane %v1446_v53, %v9128_v45  ;;  %v1868_v14 = vsel %vm1816_vm2, %v981_v38, %v1703_v62  ;;  %v1870_v40 = vsel %vm1816_vm2, %v10246_v26, %v1711_v5  ;;  %v11079_v10 = vcombine.high %v10225_v51, %v10225_v51  ;;  %11080 = vst [vmem:[#allocation24_spill] sm:$0xff] %v10334_v34  ;;  %v4700_v27 = vpop.f32.mrb[77].mxu0  ;;  %v4925_v53 = vpop.f32.mrb[61].mxu1 }
 0x22e   : > { %11081 = vst [vmem:[#allocation25_spill] sm:$0xff] %v10336_v3  ;;  %v3226_v48 = vmax.f32 %v1866_v46, 0.0  ;;  %v3227_v39 = vmax.f32 %v1867_v56, 0.0  ;;  %v3228_v49 = vmax.f32 %v1868_v14, 0.0  ;;  %v3229_v15 = vmax.f32 %v1869_v55, 0.0  ;;  %v10342_v61 = vpop.f32.mrb[78].mxu0 }
 0x22f   : > { %v1871_v0 = vsel %vm1816_vm2, %v11079_v10, %v1715_v58  ;;  %v11082_v38 = vcombine.high %v10246_v26, %v10246_v26  ;;  %v3230_v5 = vmax.f32 %v1870_v40, 0.0  ;;  %v6127_v51 = vmul.f32 %v3225_v22, %v3225_v22  ;;  %11083 = vst [vmem:[#allocation26_spill] sm:$0xff] %v10342_v61  ;;  %v10344_v58 = vpop.f32.mrb[62].mxu1  ;;  %v4705_v14 = vpop.f32.mrb[79].mxu0 }
 0x230   : > { %v3231_v24 = vmax.f32 %v1871_v0, 0.0  ;;  %11084 = vst [vmem:[#allocation27_spill] sm:$0xff] %v10344_v58  ;;  %v5725_v3 = vcombine.low %v3225_v22, %v3226_v48  ;;  %v5726_v46 = vcombine.low %v3227_v39, %v3228_v49  ;;  %v6128_v56 = vmul.f32 %v3226_v48, %v3226_v48  ;;  %v4930_v55 = vpop.f32.mrb[63].mxu1  ;;  %v10346_v26 = vpop.f32.mrb[16].mxu0 }
 0x231   : > { %v1872_v62 = vsel %vm1816_vm2, %v11082_v38, %v1719_v20  ;;  %v5742_v27 = vcombine.low %v3229_v15, %v3230_v5  ;;  %v6129_v53 = vmul.f32 %v3227_v39, %v3227_v39  ;;  %v6130_v34 = vmul.f32 %v3228_v49, %v3228_v49  ;;  %11085 = vst [vmem:[#allocation28_spill] sm:$0xff] %v10346_v26  ;;  %v10348_v20 = vpop.f32.mrb[64].mxu1 }
 0x232   : > { %v3232_v10 = vmax.f32 %v1872_v62, 0.0  ;;  %v6131_v7 = vmul.f32 %v3229_v15, %v3229_v15  ;;  %11086 = vst [vmem:[#allocation29_spill] sm:$0xff] %v10348_v20  ;;  %v5733_v40 = vrot.slane %v5725_v3, %v9155_v47  ;;  %v5740_v0 = vrot.slane %v5726_v46, %v9155_v47  ;;  %v4775_v62 = vpop.f32.mrb[17].mxu0  ;;  %v10352_v22 = vpop.f32.mrb[65].mxu1 }
 0x233   : > { %v6132_v58 = vmul.f32 %v3230_v5, %v3230_v5  ;;  %11087 = vst [vmem:[#allocation30_spill] sm:$0xff] %v10352_v22  ;;  %v5750_v48 = vrot.slane %v5742_v27, %v9155_v47  ;;  %v6133_v14 = vmul.f32 %v3231_v24, %v3231_v24  ;;  %v6695_v39 = vcombine.low %v6127_v51, %v6128_v56  ;;  %v10355_v49 = vpop.f32.mrb[66].mxu1  ;;  %v10357_v15 = vpop.f32.mrb[18].mxu0 }
 0x234   : > { %v5743_v38 = vcombine.low %v3231_v24, %v3232_v10  ;;  %v6134_v55 = vmul.f32 %v3232_v10, %v3232_v10  ;;  %11088 = vst [vmem:[#allocation31_spill] sm:$0xff] %v10355_v49  ;;  %v5741_v20 = vcombine.low %v5733_v40, %v5740_v0  ;;  %v6696_v26 = vcombine.low %v6129_v53, %v6130_v34  ;;  %v10360_v61 = vpop.f32.mrb[67].mxu1  ;;  %v4780_v5 = vpop.f32.mrb[19].mxu0 }
 0x235   : > { %v6712_v46 = vcombine.low %v6131_v7, %v6132_v58  ;;  %11089 = vst [vmem:[#allocation32_spill] sm:$0xff] %v10360_v61  ;;  %v6703_v62 = vrot.slane %v6695_v39, %v9155_v47  ;;  %v10365_v24 = vrot.slane %v10278_v43, %v9148_v33  ;;  %v10369_v51 = vrot.slane %v10298_v4, %v9148_v33  ;;  %v10371_v10 = vpop.f32.mrb[68].mxu1  ;;  %v10373_v56 = vpop.f32.mrb[20].mxu0 }
 0x236   : > { %v5757_v3 = vrot.slane %v5743_v38, %v9155_v47  ;;  %v6713_v22 = vcombine.low %v6133_v14, %v6134_v55  ;;  %11090 = vst [vmem:[#allocation33_spill] sm:$0xff] %v10371_v10  ;;  %11091 = vst [vmem:[#allocation34_spill] sm:$0xff] %v10373_v56  ;;  %v5980_v34 = vadd.f32 %v10265_v31, %v5741_v20  ;;  %v10379_v53 = vpop.f32.mrb[69].mxu1  ;;  %v4785_v40 = vpop.f32.mrb[21].mxu0 }
 0x237   : > { %5917 = vst [vmem:[%s9311_s14 + $0x180] sm:$0xff] %v5741_v20  ;;  %v6710_v58 = vrot.slane %v6696_v26, %v9155_v47  ;;  %v6720_v27 = vrot.slane %v6712_v46, %v9155_v47  ;;  %11092 = vst [vmem:[#allocation35_spill] sm:$0xff] %v10379_v53  ;;  %v11093_v38 = vcombine.high %v10278_v43, %v10278_v43  ;;  %v10396_v20 = vpop.f32.mrb[70].mxu1  ;;  %v10398_v55 = vpop.f32.mrb[22].mxu0 }
 0x238   : > { %v5758_v7 = vcombine.low %v5750_v48, %v5757_v3  ;;  %v6727_v0 = vrot.slane %v6713_v22, %v9155_v47  ;;  %v11094_v48 = vcombine.high %v10298_v4, %v10298_v4  ;;  %v2228_v26 = vcombine.high %v10365_v24, %v10365_v24  ;;  %11095 = vst [vmem:[#allocation36_spill] sm:$0xff] %v10396_v20  ;;  %v10407_v3 = vpop.f32.mrb[71].mxu1  ;;  %v4790_v46 = vpop.f32.mrb[23].mxu0 }
 0x239   : > { %v10386_v14 = vrot.slane %v11093_v38, %v9148_v33  ;;  %11096 = vst [vmem:[#allocation37_spill] sm:$0xff] %v10398_v55  ;;  %v6711_v22 = vcombine.low %v6703_v62, %v6710_v58  ;;  %v2229_v43 = vcombine.high %v10369_v51, %v10369_v51  ;;  %v2647_v39 = vcombine.high %v10282_v18, %v10282_v18  ;;  %v10415_v58 = vpop.f32.mrb[72].mxu1 }
 0x23a   : > { %v10392_v31 = vrot.slane %v11094_v48, %v9148_v33  ;;  %5918 = vst [vmem:[%s9311_s14 + $0x190] sm:$0xff] %v5758_v7  ;;  %v2654_v4 = vrot.slane %v10282_v18, %v9148_v33  ;;  %11097 = vst [vmem:[#allocation38_spill] sm:$0xff] %v10407_v3  ;;  %v6728_v5 = vcombine.low %v6720_v27, %v6727_v0  ;;  %v10417_v48 = vpop.f32.mrb[24].mxu0  ;;  %v10422_v27 = vpop.f32.mrb[73].mxu1 }
 0x23b   : > { %v2230_v40 = vcombine.high %v10386_v14, %v10386_v14  ;;  %v10413_v62 = vadd.f32 %v5980_v34, %v5758_v7  ;;  %11098 = vst [vmem:[#allocation39_spill] sm:$0xff] %v10415_v58  ;;  %11099 = vst [vmem:[#allocation40_spill] sm:$0xff] %v10417_v48  ;;  %v6886_v20 = vadd.f32 %v10295_v59, %v6711_v22  ;;  %v4795_v0 = vpop.f32.mrb[25].mxu0  ;;  %v10438_v22 = vpop.f32.mrb[74].mxu1 }
 0x23c   : > { %v2231_v38 = vcombine.high %v10392_v31, %v10392_v31  ;;  %v2661_v18 = vrot.slane %v2647_v39, %v9148_v33  ;;  %v2662_v10 = vcombine.high %v2654_v4, %v2654_v4  ;;  %v2670_v46 = vrot.slane %v2654_v4, %v9148_v33  ;;  %11100 = vst [vmem:[#allocation41_spill] sm:$0xff] %v10422_v27  ;;  %v10440_v39 = vpop.f32.mrb[26].mxu0 }
 0x23d   : > { %v983_v3 = vcombine.high %v10286_v29, %v10286_v29  ;;  %v10428_v7 = vrot.slane %v10286_v29, %v9148_v33  ;;  %v10432_v34 = vadd.f32 %v9840_v9, %v9144_v12  ;;  %v10436_v59 = vadd.f32 %v9868_v50, %v9150_v42  ;;  %11101 = vst [vmem:[#allocation42_spill] sm:$0xff] %v10438_v22  ;;  %v10444_v29 = vpop.f32.mrb[75].mxu1  ;;  %v4800_v49 = vpop.f32.mrb[27].mxu0 }
 0x23e   : > { %11102 = vst [vmem:[#allocation43_spill] sm:$0xff] %v10440_v39  ;;  %v2663_v4 = vcombine.high %v2661_v18, %v2661_v18  ;;  %v2677_v0 = vrot.slane %v2661_v18, %v9148_v33  ;;  %v2684_v53 = vrot.slane %v2662_v10, %v9148_v33  ;;  %v2692_v48 = vcombine.high %v2670_v46, %v2670_v46  ;;  %v10454_v39 = vpop.f32.mrb[76].mxu1 }
 0x23f   : > { %11103 = vst [vmem:[#allocation44_spill] sm:$0xff] %v10444_v29  ;;  %v2940_v12 = vrot.slane %v2670_v46, %v9128_v45  ;;  %v10447_v9 = vadd.f32 %v6886_v20, %v6728_v5  ;;  %v10450_v42 = vrot.slane %v983_v3, %v9148_v33  ;;  %11104 = vst [vmem:[#allocation45_spill] sm:$0xff] %v10454_v39  ;;  %v10458_v29 = vpop.f32.mrb[77].mxu1 }
 0x240   : > { %v2691_v18 = vrot.slane %v2663_v4, %v9148_v33  ;;  %v2693_v61 = vcombine.high %v2677_v0, %v2677_v0  ;;  %v2694_v10 = vcombine.high %v2684_v53, %v2684_v53  ;;  %v2944_v22 = vrot.slane %v2684_v53, %v9128_v45  ;;  %11105 = vst [vmem:[#allocation46_spill] sm:$0xff] %v10458_v29  ;;  %v10466_v46 = vpop.f32.mrb[78].mxu1 }
 0x241   : > { %v2948_v49 = vrot.slane %v2692_v48, %v9128_v45  ;;  %v2956_v20 = vrot.slane %v2677_v0, %v9128_v45  ;;  %v3113_v3 = vsel %vm1816_vm2, %v10365_v24, %v2940_v12  ;;  %11106 = vst [vmem:[#allocation47_spill] sm:$0xff] %v10466_v46  ;;  %v10471_v29 = vpop.f32.mrb[79].mxu1 }
 0x242   : > { %v2695_v50 = vcombine.high %v2691_v18, %v2691_v18  ;;  %v2952_v4 = vrot.slane %v2694_v10, %v9128_v45  ;;  %v2960_v39 = vrot.slane %v2691_v18, %v9128_v45  ;;  %v2964_v53 = vrot.slane %v2693_v61, %v9128_v45  ;;  %11107 = vst [vmem:[#allocation48_spill] sm:$0xff] %v10471_v29  ;;  %v10478_v5 = vpop.f32.mrb[80].mxu1 }
 0x243   : > { %v3114_v48 = vsel %vm1816_vm2, %v10386_v14, %v2944_v22  ;;  %v3115_v0 = vsel %vm1816_vm2, %v2228_v26, %v2948_v49  ;;  %v3117_v24 = vsel %vm1816_vm2, %v10369_v51, %v2956_v20  ;;  %v3233_v12 = vmax.f32 %v3113_v3, 0.0  ;;  %11108 = vst [vmem:[#allocation49_spill] sm:$0xff] %v10478_v5  ;;  %v10485_v29 = vpop.f32.mrb[81].mxu1 }
 0x244   : > { %v2968_v46 = vrot.slane %v2695_v50, %v9128_v45  ;;  %v3116_v10 = vsel %vm1816_vm2, %v2230_v40, %v2952_v4  ;;  %v3118_v61 = vsel %vm1816_vm2, %v10392_v31, %v2960_v39  ;;  %v3119_v18 = vsel %vm1816_vm2, %v2229_v43, %v2964_v53  ;;  %11109 = vst [vmem:[#allocation50_spill] sm:$0xff] %v10485_v29  ;;  %v10487_v55 = vpop.f32.mrb[82].mxu1 }
 0x245   : > { %v3234_v14 = vmax.f32 %v3114_v48, 0.0  ;;  %v3235_v22 = vmax.f32 %v3115_v0, 0.0  ;;  %v3236_v26 = vmax.f32 %v3116_v10, 0.0  ;;  %v3237_v49 = vmax.f32 %v3117_v24, 0.0  ;;  %11110 = vst [vmem:[#allocation51_spill] sm:$0xff] %v10487_v55  ;;  %v10490_v5 = vpop.f32.mrb[83].mxu1 }
 0x246   : > { %v3120_v51 = vsel %vm1816_vm2, %v2231_v38, %v2968_v46  ;;  %v3238_v20 = vmax.f32 %v3118_v61, 0.0  ;;  %v3239_v3 = vmax.f32 %v3119_v18, 0.0  ;;  %v6135_v50 = vmul.f32 %v3233_v12, %v3233_v12  ;;  %11111 = vst [vmem:[#allocation52_spill] sm:$0xff] %v10490_v5  ;;  %v10492_v43 = vpop.f32.mrb[84].mxu1 }
 0x247   : > { %v3240_v40 = vmax.f32 %v3120_v51, 0.0  ;;  %v5759_v4 = vcombine.low %v3233_v12, %v3234_v14  ;;  %v5760_v31 = vcombine.low %v3235_v22, %v3236_v26  ;;  %v6136_v39 = vmul.f32 %v3234_v14, %v3234_v14  ;;  %11112 = vst [vmem:[#allocation53_spill] sm:$0xff] %v10492_v43  ;;  %v10494_v24 = vpop.f32.mrb[85].mxu1 }
 0x248   : > { %v5776_v53 = vcombine.low %v3237_v49, %v3238_v20  ;;  %v6137_v48 = vmul.f32 %v3235_v22, %v3235_v22  ;;  %v6138_v0 = vmul.f32 %v3236_v26, %v3236_v26  ;;  %v6139_v10 = vmul.f32 %v3237_v49, %v3237_v49  ;;  %11113 = vst [vmem:[#allocation54_spill] sm:$0xff] %v10494_v24  ;;  %v10498_v18 = vpop.f32.mrb[86].mxu1 }
 0x249   : > { %v5767_v55 = vrot.slane %v5759_v4, %v9155_v47  ;;  %v5774_v38 = vrot.slane %v5760_v31, %v9155_v47  ;;  %v5777_v46 = vcombine.low %v3239_v3, %v3240_v40  ;;  %v6140_v61 = vmul.f32 %v3238_v20, %v3238_v20  ;;  %11114 = vst [vmem:[#allocation55_spill] sm:$0xff] %v10498_v18  ;;  %v10501_v5 = vpop.f32.mrb[87].mxu1 }
 0x24a   : > { %v5784_v12 = vrot.slane %v5776_v53, %v9155_v47  ;;  %v6141_v14 = vmul.f32 %v3239_v3, %v3239_v3  ;;  %v6142_v51 = vmul.f32 %v3240_v40, %v3240_v40  ;;  %v6729_v43 = vcombine.low %v6135_v50, %v6136_v39  ;;  %11115 = vst [vmem:[#allocation56_spill] sm:$0xff] %v10501_v5  ;;  %v10504_v4 = vpop.f32.mrb[88].mxu1 }
 0x24b   : > { %v5775_v22 = vcombine.low %v5767_v55, %v5774_v38  ;;  %v5791_v26 = vrot.slane %v5777_v46, %v9155_v47  ;;  %v6730_v49 = vcombine.low %v6137_v48, %v6138_v0  ;;  %v6746_v24 = vcombine.low %v6139_v10, %v6140_v61  ;;  %11116 = vst [vmem:[#allocation57_spill] sm:$0xff] %v10504_v4  ;;  %v10511_v50 = vpop.f32.mrb[89].mxu1 }
 0x24c   : > { %v6737_v20 = vrot.slane %v6729_v43, %v9155_v47  ;;  %v6747_v31 = vcombine.low %v6141_v14, %v6142_v51  ;;  %v1006_v53 = vrot.slane %v10428_v7, %v9148_v33  ;;  %v1013_v3 = vrot.slane %v10450_v42, %v9148_v33  ;;  %11117 = vst [vmem:[#allocation58_spill] sm:$0xff] %v10511_v50 }
 0x24d   : > { %v5792_v40 = vcombine.low %v5784_v12, %v5791_v26  ;;  %5919 = vst [vmem:[%s9311_s14 + $0x1a0] sm:$0xff] %v5775_v22  ;;  %v5982_v55 = vadd.f32 %v10413_v62, %v5775_v22  ;;  %v6744_v39 = vrot.slane %v6730_v49, %v9155_v47  ;;  %v6754_v48 = vrot.slane %v6746_v24, %v9155_v47  ;;  %v10575_v5 = vpop.f32.mrb[90].mxu1 }
 0x24e   : > { %v6761_v0 = vrot.slane %v6747_v31, %v9155_v47  ;;  %v11118_v43 = vcombine.high %v10428_v7, %v10428_v7  ;;  %v11119_v38 = vcombine.high %v10450_v42, %v10450_v42  ;;  %v1028_v61 = vcombine.high %v1006_v53, %v1006_v53  ;;  %v10534_v7 = vld [vmem:[%s11050_s5] ss:$0 sm:$0xff]  ;;  %11120 = vst [vmem:[#allocation59_spill] sm:$0xff] %v10575_v5 }
 0x24f   : > { %5920 = vst [vmem:[%s9311_s14 + $0x1b0] sm:$0xff] %v5792_v40  ;;  %v6745_v12 = vcombine.low %v6737_v20, %v6744_v39  ;;  %v1029_v62 = vcombine.high %v1013_v3, %v1013_v3  ;;  %v1447_v14 = vcombine.high %v10432_v34, %v10432_v34  ;;  %v1454_v24 = vrot.slane %v10432_v34, %v9148_v33 }
 0x250   : > { %v1020_v10 = vrot.slane %v11118_v43, %v9148_v33  ;;  %v1027_v46 = vrot.slane %v11119_v38, %v9148_v33  ;;  %v6762_v51 = vcombine.low %v6754_v48, %v6761_v0  ;;  %v10536_v42 = vadd.f32 %v5982_v55, %v5792_v40 }
 0x251   : > { %v6888_v49 = vadd.f32 %v10447_v9, %v6745_v12  ;;  %v1461_v20 = vrot.slane %v1447_v14, %v9148_v33  ;;  %v1462_v31 = vcombine.high %v1454_v24, %v1454_v24  ;;  %v1470_v39 = vrot.slane %v1454_v24, %v9148_v33 }
 0x252   : > { %v1030_v22 = vcombine.high %v1020_v10, %v1020_v10  ;;  %v1031_v26 = vcombine.high %v1027_v46, %v1027_v46  ;;  %v2232_v34 = vcombine.high %v10436_v59, %v10436_v59  ;;  %v10545_v43 = vrot.slane %v10436_v59, %v9148_v33 }
 0x253   : > { %v10549_v48 = vadd.f32 %v9912_v23, %v9157_v36  ;;  %v10553_v40 = vadd.f32 %v10534_v7, %v10042_v16  ;;  %v1463_v9 = vcombine.high %v1461_v20, %v1461_v20  ;;  %v1477_v55 = vrot.slane %v1461_v20, %v9148_v33 }
 0x254   : > { %v1484_v0 = vrot.slane %v1462_v31, %v9148_v33  ;;  %v1492_v38 = vcombine.high %v1470_v39, %v1470_v39  ;;  %v1723_v12 = vrot.slane %v1470_v39, %v9128_v45  ;;  %v10558_v14 = vadd.f32 %v6888_v49, %v6762_v51 }
 0x255   : > { %v10561_v59 = vrot.slane %v2232_v34, %v9148_v33  ;;  %v2247_v36 = vcombine.high %v10545_v43, %v10545_v43  ;;  %v1491_v23 = vrot.slane %v1463_v9, %v9148_v33  ;;  %v1493_v16 = vcombine.high %v1477_v55, %v1477_v55 }
 0x256   : > { %v1494_v24 = vcombine.high %v1484_v0, %v1484_v0  ;;  %v1727_v50 = vrot.slane %v1484_v0, %v9128_v45  ;;  %v1731_v20 = vrot.slane %v1492_v38, %v9128_v45  ;;  %v1739_v31 = vrot.slane %v1477_v55, %v9128_v45 }
 0x257   : > { %v1873_v39 = vsel %vm1816_vm2, %v1006_v53, %v1723_v12  ;;  %v2248_v51 = vcombine.high %v10561_v59, %v10561_v59  ;;  %v1495_v49 = vcombine.high %v1491_v23, %v1491_v23  ;;  %v1743_v4 = vrot.slane %v1491_v23, %v9128_v45  ;;  %v10580_v53 = vpop.f32.mrb[91].mxu1 }
 0x258   : > { %v1735_v34 = vrot.slane %v1494_v24, %v9128_v45  ;;  %v1747_v9 = vrot.slane %v1493_v16, %v9128_v45  ;;  %v1874_v0 = vsel %vm1816_vm2, %v1020_v10, %v1727_v50  ;;  %v1875_v38 = vsel %vm1816_vm2, %v1028_v61, %v1731_v20  ;;  %11121 = vst [vmem:[#allocation60_spill] sm:$0xff] %v10580_v53 }
 0x259   : > { %v1877_v55 = vsel %vm1816_vm2, %v1013_v3, %v1739_v31  ;;  %v3241_v18 = vmax.f32 %v1873_v39, 0.0  ;;  %v1751_v12 = vrot.slane %v1495_v49, %v9128_v45  ;;  %v1878_v24 = vsel %vm1816_vm2, %v1027_v46, %v1743_v4 }
 0x25a   : > { %v1876_v29 = vsel %vm1816_vm2, %v1030_v22, %v1735_v34  ;;  %v1879_v23 = vsel %vm1816_vm2, %v1029_v62, %v1747_v9  ;;  %v3242_v16 = vmax.f32 %v1874_v0, 0.0  ;;  %v3243_v27 = vmax.f32 %v1875_v38, 0.0 }
 0x25b   : > { %v3244_v5 = vmax.f32 %v1876_v29, 0.0  ;;  %v3245_v58 = vmax.f32 %v1877_v55, 0.0  ;;  %v1880_v50 = vsel %vm1816_vm2, %v1031_v26, %v1751_v12  ;;  %v3246_v10 = vmax.f32 %v1878_v24, 0.0 }
 0x25c   : > { %v3247_v61 = vmax.f32 %v1879_v23, 0.0  ;;  %v6143_v3 = vmul.f32 %v3241_v18, %v3241_v18  ;;  %v3248_v20 = vmax.f32 %v1880_v50, 0.0  ;;  %v5793_v31 = vcombine.low %v3241_v18, %v3242_v16 }
 0x25d   : > { %v5794_v39 = vcombine.low %v3243_v27, %v3244_v5  ;;  %v6144_v53 = vmul.f32 %v3242_v16, %v3242_v16  ;;  %v5810_v49 = vcombine.low %v3245_v58, %v3246_v10  ;;  %v6145_v56 = vmul.f32 %v3243_v27, %v3243_v27 }
 0x25e   : > { %v6146_v22 = vmul.f32 %v3244_v5, %v3244_v5  ;;  %v6147_v34 = vmul.f32 %v3245_v58, %v3245_v58  ;;  %v5801_v4 = vrot.slane %v5793_v31, %v9155_v47  ;;  %v5811_v29 = vcombine.low %v3247_v61, %v3248_v20 }
 0x25f   : > { %v5808_v46 = vrot.slane %v5794_v39, %v9155_v47  ;;  %v6148_v62 = vmul.f32 %v3246_v10, %v3246_v10  ;;  %v5818_v26 = vrot.slane %v5810_v49, %v9155_v47  ;;  %v6149_v9 = vmul.f32 %v3247_v61, %v3247_v61 }
 0x260   : > { %v6150_v0 = vmul.f32 %v3248_v20, %v3248_v20  ;;  %v6763_v38 = vcombine.low %v6143_v3, %v6144_v53  ;;  %v5825_v18 = vrot.slane %v5811_v29, %v9155_v47  ;;  %v6764_v12 = vcombine.low %v6145_v56, %v6146_v22 }
 0x261   : > { %v5809_v55 = vcombine.low %v5801_v4, %v5808_v46  ;;  %v6780_v27 = vcombine.low %v6147_v34, %v6148_v62  ;;  %v2255_v24 = vrot.slane %v10545_v43, %v9148_v33  ;;  %v2262_v23 = vrot.slane %v10561_v59, %v9148_v33 }
 0x262   : > { %v6771_v58 = vrot.slane %v6763_v38, %v9155_v47  ;;  %v6781_v5 = vcombine.low %v6149_v9, %v6150_v0  ;;  %v5826_v16 = vcombine.low %v5818_v26, %v5825_v18  ;;  %v6778_v53 = vrot.slane %v6764_v12, %v9155_v47 }
 0x263   : > { %5921 = vst [vmem:[%s9311_s14 + $0x1c0] sm:$0xff] %v5809_v55  ;;  %v5984_v50 = vadd.f32 %v10536_v42, %v5809_v55  ;;  %v6788_v10 = vrot.slane %v6780_v27, %v9155_v47  ;;  %v2269_v61 = vrot.slane %v2247_v36, %v9148_v33  ;;  %v2276_v3 = vrot.slane %v2248_v51, %v9148_v33 }
 0x264   : > { %v6795_v56 = vrot.slane %v6781_v5, %v9155_v47  ;;  %v2277_v20 = vcombine.high %v2255_v24, %v2255_v24  ;;  %5922 = vst [vmem:[%s9311_s14 + $0x1d0] sm:$0xff] %v5826_v16  ;;  %v6779_v43 = vcombine.low %v6771_v58, %v6778_v53  ;;  %v2278_v31 = vcombine.high %v2262_v23, %v2262_v23  ;;  %v10645_v53 = vpop.f32.mrb[92].mxu1 }
 0x265   : > { %v2696_v59 = vcombine.high %v10549_v48, %v10549_v48  ;;  %v2703_v42 = vrot.slane %v10549_v48, %v9148_v33  ;;  %v2279_v49 = vcombine.high %v2269_v61, %v2269_v61  ;;  %v2280_v22 = vcombine.high %v2276_v3, %v2276_v3 }
 0x266   : > { %v6796_v39 = vcombine.low %v6788_v10, %v6795_v56  ;;  %v10608_v34 = vadd.f32 %v5984_v50, %v5826_v16  ;;  %v6890_v4 = vadd.f32 %v10558_v14, %v6779_v43  ;;  %v10615_v29 = vadd.f32 %v10044_v32, %v10553_v40 }
 0x267   : > { %v2710_v36 = vrot.slane %v2696_v59, %v9148_v33  ;;  %v2711_v51 = vcombine.high %v2703_v42, %v2703_v42  ;;  %v2719_v46 = vrot.slane %v2703_v42, %v9148_v33  ;;  %v4594_v62 = vadd.f32 %v10534_v7, %v10053_v17 }
 0x268   : > { %v4599_v48 = vadd.f32 %v10534_v7, %v10058_v8  ;;  %v4604_v26 = vadd.f32 %v10534_v7, %v10062_v1  ;;  %v10626_v18 = vadd.f32 %v6890_v4, %v6796_v39 }
 0x269   : > { %v2712_v9 = vcombine.high %v2710_v36, %v2710_v36  ;;  %v2726_v14 = vrot.slane %v2710_v36, %v9148_v33  ;;  %v2733_v0 = vrot.slane %v2711_v51, %v9148_v33  ;;  %v2741_v38 = vcombine.high %v2719_v46, %v2719_v46 }
 0x26a   : > { %v2972_v55 = vrot.slane %v2719_v46, %v9128_v45  ;;  %v10629_v32 = vadd.f32 %v10055_v11, %v4594_v62  ;;  %v10632_v17 = vadd.f32 %v10060_v57, %v4599_v48  ;;  %v10640_v16 = vadd.f32 %v10064_v6, %v4604_v26 }
 0x26b   : > { %v2740_v8 = vrot.slane %v2712_v9, %v9148_v33  ;;  %v2742_v40 = vcombine.high %v2726_v14, %v2726_v14  ;;  %v2743_v1 = vcombine.high %v2733_v0, %v2733_v0  ;;  %v2976_v12 = vrot.slane %v2733_v0, %v9128_v45 }
 0x26c   : > { %v2980_v27 = vrot.slane %v2741_v38, %v9128_v45  ;;  %v2988_v58 = vrot.slane %v2726_v14, %v9128_v45  ;;  %v3121_v5 = vsel %vm1816_vm2, %v2255_v24, %v2972_v55  ;;  %v10650_v24 = vpop.f32.mrb[93].mxu1 }
 0x26d   : > { %v2744_v11 = vcombine.high %v2740_v8, %v2740_v8  ;;  %v2984_v50 = vrot.slane %v2743_v1, %v9128_v45  ;;  %v2992_v57 = vrot.slane %v2740_v8, %v9128_v45  ;;  %v2996_v33 = vrot.slane %v2742_v40, %v9128_v45 }
 0x26e   : > { %v3122_v10 = vsel %vm1816_vm2, %v2269_v61, %v2976_v12  ;;  %v3123_v56 = vsel %vm1816_vm2, %v2277_v20, %v2980_v27  ;;  %v3125_v43 = vsel %vm1816_vm2, %v2262_v23, %v2988_v58  ;;  %v3249_v59 = vmax.f32 %v3121_v5, 0.0 }
 0x26f   : > { %v3000_v6 = vrot.slane %v2744_v11, %v9128_v45  ;;  %v3124_v42 = vsel %vm1816_vm2, %v2279_v49, %v2984_v50  ;;  %v3126_v39 = vsel %vm1816_vm2, %v2276_v3, %v2992_v57  ;;  %v3127_v4 = vsel %vm1816_vm2, %v2278_v31, %v2996_v33 }
 0x270   : > { %v3250_v36 = vmax.f32 %v3122_v10, 0.0  ;;  %v3251_v51 = vmax.f32 %v3123_v56, 0.0  ;;  %v3252_v46 = vmax.f32 %v3124_v42, 0.0  ;;  %v3253_v62 = vmax.f32 %v3125_v43, 0.0 }
 0x271   : > { %v3128_v61 = vsel %vm1816_vm2, %v2280_v22, %v3000_v6  ;;  %v3254_v20 = vmax.f32 %v3126_v39, 0.0  ;;  %v3255_v48 = vmax.f32 %v3127_v4, 0.0  ;;  %v6151_v23 = vmul.f32 %v3249_v59, %v3249_v59 }
 0x272   : > { %v3256_v26 = vmax.f32 %v3128_v61, 0.0  ;;  %v5827_v9 = vcombine.low %v3249_v59, %v3250_v36  ;;  %v5828_v14 = vcombine.low %v3251_v51, %v3252_v46  ;;  %v6152_v0 = vmul.f32 %v3250_v36, %v3250_v36 }
 0x273   : > { %v5844_v45 = vcombine.low %v3253_v62, %v3254_v20  ;;  %v6153_v38 = vmul.f32 %v3251_v51, %v3251_v51  ;;  %v6154_v49 = vmul.f32 %v3252_v46, %v3252_v46  ;;  %v6155_v55 = vmul.f32 %v3253_v62, %v3253_v62 }
 0x274   : > { %v5835_v3 = vrot.slane %v5827_v9, %v9155_v47  ;;  %v5842_v31 = vrot.slane %v5828_v14, %v9155_v47  ;;  %v5845_v8 = vcombine.low %v3255_v48, %v3256_v26  ;;  %v6156_v40 = vmul.f32 %v3254_v20, %v3254_v20  ;;  %v11125_v14 = vld [vmem:[#allocation6_spill] sm:$0xff] }
 0x275   : > { %v5852_v22 = vrot.slane %v5844_v45, %v9155_v47  ;;  %v6157_v1 = vmul.f32 %v3255_v48, %v3255_v48  ;;  %v6158_v12 = vmul.f32 %v3256_v26, %v3256_v26  ;;  %v6797_v27 = vcombine.low %v6151_v23, %v6152_v0  ;;  %v11122_v48 = vld [vmem:[#allocation3_spill] sm:$0xff]  ;;  %v11123_v23 = vld [vmem:[#allocation4_spill] sm:$0xff] }
 0x276   : > { %v5843_v58 = vcombine.low %v5835_v3, %v5842_v31  ;;  %v5859_v5 = vrot.slane %v5845_v8, %v9155_v47  ;;  %v6798_v11 = vcombine.low %v6153_v38, %v6154_v49  ;;  %v6814_v50 = vcombine.low %v6155_v55, %v6156_v40  ;;  %v11126_v0 = vld [vmem:[#allocation8_spill] sm:$0xff]  ;;  %v11128_v49 = vld [vmem:[#allocation7_spill] sm:$0xff]  ;;  %v11129_v3 = vld [vmem:[#allocation9_spill] sm:$0xff] }
 0x277   : > { %v6805_v57 = vrot.slane %v6797_v27, %v9155_v47  ;;  %v6815_v33 = vcombine.low %v6157_v1, %v6158_v12  ;;  %v4609_v10 = vadd.f32 %v10534_v7, %v10069_v19  ;;  %v4614_v56 = vadd.f32 %v10534_v7, %v10083_v37  ;;  %v11130_v1 = vld [vmem:[#allocation10_spill] sm:$0xff] }
 0x278   : > { %v5860_v43 = vcombine.low %v5852_v22, %v5859_v5  ;;  %5923 = vst [vmem:[%s9311_s14 + $0x1e0] sm:$0xff] %v5843_v58  ;;  %v5986_v59 = vadd.f32 %v10608_v34, %v5843_v58  ;;  %v6812_v6 = vrot.slane %v6798_v11, %v9155_v47  ;;  %v6822_v42 = vrot.slane %v6814_v50, %v9155_v47  ;;  %v11132_v11 = vld [vmem:[#allocation13_spill] sm:$0xff] }
 0x279   : > { %v6829_v39 = vrot.slane %v6815_v33, %v9155_v47  ;;  %v10672_v4 = vadd.f32 %v10071_v60, %v4609_v10  ;;  %v10675_v36 = vadd.f32 %v10085_v30, %v4614_v56  ;;  %v4619_v19 = vadd.f32 %v10534_v7, %v10106_v13  ;;  %v10686_v47 = vpop.f32.mrb[28].mxu0  ;;  %v11134_v33 = vld [vmem:[#allocation16_spill] sm:$0xff]  ;;  %v11135_v10 = vld [vmem:[#allocation18_spill] sm:$0xff] }
 0x27a   : > { %5924 = vst [vmem:[%s9311_s14 + $0x1f0] sm:$0xff] %v5860_v43  ;;  %v10680_v37 = vadd.f32 %v5986_v59, %v5860_v43  ;;  %v6813_v51 = vcombine.low %v6805_v57, %v6812_v6  ;;  %v4624_v34 = vadd.f32 %v10534_v7, %v10123_v28  ;;  %v4629_v46 = vadd.f32 %v10534_v7, %v10144_v25  ;;  %v4805_v61 = vpop.f32.mrb[29].mxu0  ;;  %v11133_v57 = vld [vmem:[#allocation14_spill] sm:$0xff]  ;;  %v11136_v43 = vld [vmem:[#allocation20_spill] sm:$0xff]  ;;  %v10750_v6 = vpop.f32.mrb[94].mxu1 }
 0x27b   : > { %v6830_v60 = vcombine.low %v6822_v42, %v6829_v39  ;;  %v10689_v62 = vadd.f32 %v10108_v44, %v4619_v19  ;;  %v4634_v30 = vadd.f32 %v10534_v7, %v10158_v2  ;;  %v4639_v13 = vadd.f32 %v10534_v7, %v10170_v35  ;;  %v11124_v44 = vld [vmem:[#allocation5_spill] sm:$0xff]  ;;  %v10728_v22 = vpop.f32.mrb[30].mxu0  ;;  %v11137_v42 = vld [vmem:[#allocation15_spill] sm:$0xff] }
 0x27c   : > { %v6892_v20 = vadd.f32 %v10626_v18, %v6813_v51  ;;  %v10697_v28 = vadd.f32 %v10125_v63, %v4624_v34  ;;  %v10700_v25 = vadd.f32 %v11122_v48, %v4629_v46  ;;  %v4644_v2 = vadd.f32 %v10534_v7, %v11125_v14  ;;  %v11127_v18 = vld [vmem:[#allocation11_spill] sm:$0xff]  ;;  %v4810_v58 = vpop.f32.mrb[31].mxu0  ;;  %v11138_v39 = vld [vmem:[#allocation17_spill] sm:$0xff]  ;;  %v11139_v51 = vld [vmem:[#allocation22_spill] sm:$0xff] }
 0x27d   : > { %v10703_v26 = vadd.f32 %v11123_v23, %v4634_v30  ;;  %v10706_v9 = vadd.f32 %v11124_v44, %v4639_v13  ;;  %v4649_v35 = vadd.f32 %v10534_v7, %v11126_v0  ;;  %v4654_v63 = vadd.f32 %v10534_v7, %v10202_v41  ;;  %v11131_v41 = vld [vmem:[#allocation12_spill] sm:$0xff]  ;;  %v10762_v30 = vpop.f32.mrb[95].mxu1  ;;  %v11141_v13 = vld [vmem:[#allocation19_spill] sm:$0xff]  ;;  %v11143_v23 = vld [vmem:[#allocation26_spill] sm:$0xff] }
 0x27e   : > { %v10712_v45 = vadd.f32 %v6892_v20, %v6830_v60  ;;  %v4659_v38 = vadd.f32 %v10534_v7, %v11127_v18  ;;  %v10719_v55 = vadd.f32 %v11128_v49, %v4644_v2  ;;  %v4664_v8 = vadd.f32 %v10534_v7, %v10214_v21  ;;  %v11140_v46 = vld [vmem:[#allocation24_spill] sm:$0xff]  ;;  %v11142_v20 = vld [vmem:[#allocation21_spill] sm:$0xff]  ;;  %v11144_v14 = vld [vmem:[#allocation23_spill] sm:$0xff] }
 0x27f   : > { %v10722_v31 = vadd.f32 %v11129_v3, %v4649_v35  ;;  %v4669_v40 = vadd.f32 %v10534_v7, %v10231_v52  ;;  %v10731_v12 = vadd.f32 %v11130_v1, %v4654_v63  ;;  %v4674_v21 = vadd.f32 %v10534_v7, %v11133_v57  ;;  %v11145_v0 = vld [vmem:[#allocation25_spill] sm:$0xff]  ;;  %v11146_v63 = vld [vmem:[#allocation28_spill] sm:$0xff]  ;;  %v11147_v49 = vld [vmem:[#allocation27_spill] sm:$0xff] }
 0x280   : > { %v10734_v27 = vadd.f32 %v11131_v41, %v4659_v38  ;;  %v10737_v5 = vadd.f32 %v10216_v54, %v4664_v8  ;;  %v4679_v52 = vadd.f32 %v10534_v7, %v11134_v33  ;;  %v4684_v56 = vadd.f32 %v10534_v7, %v11135_v10  ;;  %v11148_v8 = vld [vmem:[#allocation34_spill] sm:$0xff]  ;;  %v11149_v1 = vld [vmem:[#allocation39_spill] sm:$0xff]  ;;  %v11150_v58 = vld [vmem:[#allocation41_spill] sm:$0xff] }
 0x281   : > { %v10740_v50 = vadd.f32 %v11132_v11, %v4669_v40  ;;  %v4689_v59 = vadd.f32 %v10534_v7, %v11136_v43  ;;  %v10753_v54 = vadd.f32 %v11137_v42, %v4674_v21  ;;  %v4694_v34 = vadd.f32 %v10534_v7, %v11139_v51  ;;  %v11151_v57 = vld [vmem:[#allocation30_spill] sm:$0xff]  ;;  %v11152_v33 = vld [vmem:[#allocation29_spill] sm:$0xff] }
 0x282   : > { %v10756_v19 = vadd.f32 %v11138_v39, %v4679_v52  ;;  %v4699_v60 = vadd.f32 %v10534_v7, %v11140_v46  ;;  %v10765_v61 = vadd.f32 %v11141_v13, %v4684_v56  ;;  %v4704_v44 = vadd.f32 %v10534_v7, %v11143_v23  ;;  %v11154_v56 = vld [vmem:[#allocation42_spill] sm:$0xff] }
 0x283   : > { %v10768_v48 = vadd.f32 %v11142_v20, %v4689_v59  ;;  %v10773_v2 = vadd.f32 %v11144_v14, %v4694_v34  ;;  %v7454_v18 = vadd.f32 %v10534_v7, %v11146_v63  ;;  %v7455_v38 = vadd.f32 %v10534_v7, %v10357_v15  ;;  %v11153_v15 = vld [vmem:[#allocation37_spill] sm:$0xff]  ;;  %v11155_v59 = vld [vmem:[#allocation32_spill] sm:$0xff] }
 0x284   : > { %v10776_v35 = vadd.f32 %v11145_v0, %v4699_v60  ;;  %v10783_v3 = vadd.f32 %v11147_v49, %v4704_v44  ;;  %v7456_v40 = vadd.f32 %v10534_v7, %v11148_v8  ;;  %v5044_v41 = vadd.f32 %v11149_v1, %v10629_v32  ;;  %v11157_v60 = vld [vmem:[#allocation31_spill] sm:$0xff] }
 0x285   : > { %v5039_v11 = vadd.f32 %v11150_v58, %v10615_v29  ;;  %v4999_v21 = vadd.f32 %v7454_v18, %v11151_v57  ;;  %v5004_v52 = vadd.f32 %v7455_v38, %v11152_v33  ;;  %v7457_v10 = vadd.f32 %v10534_v7, %v11153_v15  ;;  %v11156_v29 = vld [vmem:[#allocation44_spill] sm:$0xff] }
 0x286   : > { %v5054_v43 = vadd.f32 %v11154_v56, %v10640_v16  ;;  %v5009_v42 = vadd.f32 %v7456_v40, %v11155_v59  ;;  %v10798_v39 = vmax.f32 %v5044_v41, 0.0  ;;  %v5049_v51 = vadd.f32 %v11156_v29, %v10632_v17  ;;  %v11158_v38 = vld [vmem:[#allocation40_spill] sm:$0xff]  ;;  %v11159_v41 = vld [vmem:[#allocation45_spill] sm:$0xff] }
 0x287   : > { %v10800_v32 = vmax.f32 %v5039_v11, 0.0  ;;  %v5157_v34 = vmax.f32 %v4999_v21, 0.0  ;;  %v5158_v46 = vmax.f32 %v5004_v52, 0.0  ;;  %v5014_v13 = vadd.f32 %v7457_v10, %v11157_v60  ;;  %v11160_v11 = vld [vmem:[#allocation35_spill] sm:$0xff]  ;;  %v11161_v21 = vld [vmem:[#allocation46_spill] sm:$0xff] }
 0x288   : > { %v10805_v20 = vmax.f32 %v5054_v43, 0.0  ;;  %v5159_v23 = vmax.f32 %v5009_v42, 0.0  ;;  %5934 = vst [vmem:[%s9311_s14 + $0x98] sm:$0xff] %v10798_v39  ;;  %v10811_v16 = vmax.f32 %v5049_v51, 0.0  ;;  %v5988_v63 = vrot.slane %v10680_v37, 4  ;;  %v11162_v52 = vld [vmem:[#allocation43_spill] sm:$0xff] }
 0x289   : > { %5933 = vst [vmem:[%s9311_s14 + $0x88] sm:$0xff] %v10800_v32  ;;  %5925 = vst [vmem:[%s9311_s14 + $0x8] sm:$0xff] %v5157_v34  ;;  %v6900_v44 = vmul.f32 %v5157_v34, %v5157_v34  ;;  %v5994_v17 = vadd.f32 %v5158_v46, %v5157_v34  ;;  %v6901_v14 = vmul.f32 %v5158_v46, %v5158_v46  ;;  %v5160_v0 = vmax.f32 %v5014_v13, 0.0  ;;  %v11163_v10 = vld [vmem:[#allocation47_spill] sm:$0xff] }
 0x28a   : > { %5926 = vst [vmem:[%s9311_s14 + $0x18] sm:$0xff] %v5158_v46  ;;  %5936 = vst [vmem:[%s9311_s14 + $0xb8] sm:$0xff] %v10805_v20  ;;  %v6902_v18 = vmul.f32 %v5159_v23, %v5159_v23  ;;  %v7458_v49 = vadd.f32 %v10534_v7, %v11158_v38  ;;  %v5064_v58 = vadd.f32 %v11159_v41, %v10675_v36  ;;  %v11164_v36 = vld [vmem:[#allocation48_spill] sm:$0xff]  ;;  %v11168_v41 = vld [vmem:[#allocation50_spill] sm:$0xff] }
 0x28b   : > { %5927 = vst [vmem:[%s9311_s14 + $0x28] sm:$0xff] %v5159_v23  ;;  %5935 = vst [vmem:[%s9311_s14 + $0xa8] sm:$0xff] %v10811_v16  ;;  %v6932_v8 = vadd.f32 %v6901_v14, %v6900_v44  ;;  %v5995_v40 = vadd.f32 %v5994_v17, %v5159_v23  ;;  %v6903_v1 = vmul.f32 %v5160_v0, %v5160_v0 }
 0x28c   : > { %5928 = vst [vmem:[%s9311_s14 + $0x38] sm:$0xff] %v5160_v0  ;;  %v5019_v57 = vadd.f32 %v7458_v49, %v11160_v11  ;;  %v5059_v33 = vadd.f32 %v11161_v21, %v10672_v4  ;;  %v7459_v15 = vadd.f32 %v10534_v7, %v11162_v52  ;;  %v5074_v56 = vadd.f32 %v11163_v10, %v10697_v28  ;;  %v11165_v4 = vld [vmem:[#allocation33_spill] sm:$0xff]  ;;  %v11170_v52 = vld [vmem:[#allocation52_spill] sm:$0xff] }
 0x28d   : > { %v6933_v43 = vadd.f32 %v6932_v8, %v6902_v18  ;;  %v5996_v59 = vadd.f32 %v5995_v40, %v5160_v0  ;;  %v10833_v42 = vmax.f32 %v5064_v58, 0.0  ;;  %v5069_v29 = vadd.f32 %v11164_v36, %v10689_v62  ;;  %v11166_v18 = vld [vmem:[#allocation38_spill] sm:$0xff]  ;;  %v11167_v49 = vld [vmem:[#allocation49_spill] sm:$0xff] }
 0x28e   : > { %v5161_v51 = vmax.f32 %v5019_v57, 0.0  ;;  %v10837_v34 = vmax.f32 %v5059_v33, 0.0  ;;  %v5024_v46 = vadd.f32 %v7459_v15, %v11165_v4  ;;  %v10840_v60 = vmax.f32 %v5074_v56, 0.0  ;;  %v11169_v57 = vld [vmem:[#allocation51_spill] sm:$0xff]  ;;  %v11171_v10 = vld [vmem:[#allocation53_spill] sm:$0xff] }
 0x28f   : > { %v6934_v13 = vadd.f32 %v6933_v43, %v6903_v1  ;;  %5938 = vst [vmem:[%s9311_s14 + $0xd8] sm:$0xff] %v10833_v42  ;;  %v10844_v28 = vmax.f32 %v5069_v29, 0.0  ;;  %v7460_v23 = vadd.f32 %v10534_v7, %v10686_v47  ;;  %v5989_v14 = vadd.f32 %v5988_v63, %v10680_v37  ;;  %v11173_v29 = vld [vmem:[#allocation54_spill] sm:$0xff]  ;;  %v11174_v4 = vld [vmem:[#allocation55_spill] sm:$0xff] }
 0x290   : > { %5929 = vst [vmem:[%s9311_s14 + $0x48] sm:$0xff] %v5161_v51  ;;  %v5997_v44 = vadd.f32 %v5996_v59, %v5161_v51  ;;  %v6904_v62 = vmul.f32 %v5161_v51, %v5161_v51  ;;  %5937 = vst [vmem:[%s9311_s14 + $0xc8] sm:$0xff] %v10837_v34  ;;  %v5162_v17 = vmax.f32 %v5024_v46, 0.0  ;;  %v6894_v0 = vrot.slane %v10712_v45, 4 }
 0x291   : > { %5940 = vst [vmem:[%s9311_s14 + $0xf8] sm:$0xff] %v10840_v60  ;;  %5939 = vst [vmem:[%s9311_s14 + $0xe8] sm:$0xff] %v10844_v28  ;;  %v5029_v38 = vadd.f32 %v7460_v23, %v11166_v18  ;;  %v5084_v47 = vadd.f32 %v11167_v49, %v10703_v26  ;;  %v5079_v58 = vadd.f32 %v11168_v41, %v10700_v25  ;;  %v11177_v49 = vld [vmem:[#allocation58_spill] sm:$0xff] }
 0x292   : > { %v6935_v8 = vadd.f32 %v6934_v13, %v6904_v62  ;;  %5930 = vst [vmem:[%s9311_s14 + $0x58] sm:$0xff] %v5162_v17  ;;  %v5998_v40 = vadd.f32 %v5997_v44, %v5162_v17  ;;  %v6905_v1 = vmul.f32 %v5162_v17, %v5162_v17  ;;  %v7461_v11 = vadd.f32 %v10534_v7, %v10728_v22  ;;  %v11172_v7 = vld [vmem:[#allocation36_spill] sm:$0xff] }
 0x293   : > { %v5163_v37 = vmax.f32 %v5029_v38, 0.0  ;;  %v10863_v63 = vmax.f32 %v5084_v47, 0.0  ;;  %v5094_v21 = vadd.f32 %v11169_v57, %v10719_v55  ;;  %v10869_v26 = vmax.f32 %v5079_v58, 0.0  ;;  %v11175_v44 = vld [vmem:[#allocation56_spill] sm:$0xff] }
 0x294   : > { %v6936_v33 = vadd.f32 %v6935_v8, %v6905_v1  ;;  %v5089_v15 = vadd.f32 %v11170_v52, %v10706_v9  ;;  %v5104_v56 = vadd.f32 %v11171_v10, %v10731_v12  ;;  %v5034_v55 = vadd.f32 %v7461_v11, %v11172_v7  ;;  %v11178_v8 = vld [vmem:[#allocation59_spill] sm:$0xff]  ;;  %v11179_v11 = vld [vmem:[#allocation60_spill] sm:$0xff] }
 0x295   : > { %5931 = vst [vmem:[%s9311_s14 + $0x68] sm:$0xff] %v5163_v37  ;;  %v5999_v25 = vadd.f32 %v5998_v40, %v5163_v37  ;;  %v6906_v43 = vmul.f32 %v5163_v37, %v5163_v37  ;;  %5942 = vst [vmem:[%s9311_s14 + $0x118] sm:$0xff] %v10863_v63  ;;  %v10881_v22 = vmax.f32 %v5094_v21, 0.0  ;;  %v5099_v51 = vadd.f32 %v11173_v29, %v10722_v31 }
 0x296   : > { %5941 = vst [vmem:[%s9311_s14 + $0x108] sm:$0xff] %v10869_v26  ;;  %v10883_v59 = vmax.f32 %v5089_v15, 0.0  ;;  %v10885_v9 = vmax.f32 %v5104_v56, 0.0  ;;  %v5164_v36 = vmax.f32 %v5034_v55, 0.0  ;;  %v5114_v46 = vadd.f32 %v11174_v4, %v10737_v5 }
 0x297   : > { %v6937_v12 = vadd.f32 %v6936_v33, %v6906_v43  ;;  %v5990_v13 = vrot.slane %v5989_v14, 2  ;;  %v6895_v23 = vadd.f32 %v6894_v0, %v10712_v45  ;;  %5944 = vst [vmem:[%s9311_s14 + $0x138] sm:$0xff] %v10881_v22  ;;  %v5109_v62 = vadd.f32 %v11175_v44, %v10734_v27  ;;  %v11176_v0 = vld [vmem:[#allocation57_spill] sm:$0xff] }
 0x298   : > { %5943 = vst [vmem:[%s9311_s14 + $0x128] sm:$0xff] %v10883_v59  ;;  %5946 = vst [vmem:[%s9311_s14 + $0x158] sm:$0xff] %v10885_v9  ;;  %v6000_v31 = vadd.f32 %v5999_v25, %v5164_v36  ;;  %v6907_v17 = vmul.f32 %v5164_v36, %v5164_v36  ;;  %v10901_v18 = vmax.f32 %v5099_v51, 0.0  ;;  %v10903_v5 = vmax.f32 %v5114_v46, 0.0 }
 0x299   : > { %5932 = vst [vmem:[%s9311_s14 + $0x78] sm:$0xff] %v5164_v36  ;;  %v10905_v45 = vmax.f32 %v5109_v62, 0.0  ;;  %v5124_v38 = vadd.f32 %v11176_v0, %v10753_v54  ;;  %v5119_v47 = vadd.f32 %v11177_v49, %v10740_v50  ;;  %v5134_v40 = vadd.f32 %v11178_v8, %v10765_v61 }
 0x29a   : > { %v6908_v27 = vmul.f32 %v10800_v32, %v10800_v32  ;;  %v6001_v1 = vadd.f32 %v6000_v31, %v10800_v32  ;;  %v6938_v41 = vadd.f32 %v6937_v12, %v6907_v17  ;;  %5945 = vst [vmem:[%s9311_s14 + $0x148] sm:$0xff] %v10901_v18  ;;  %5948 = vst [vmem:[%s9311_s14 + $0x178] sm:$0xff] %v10903_v5  ;;  %v6896_v52 = vrot.slane %v6895_v23, 2 }
 0x29b   : > { %v6909_v54 = vmul.f32 %v10798_v39, %v10798_v39  ;;  %5947 = vst [vmem:[%s9311_s14 + $0x168] sm:$0xff] %v10905_v45  ;;  %v10924_v50 = vmax.f32 %v5124_v38, 0.0  ;;  %v10926_v61 = vmax.f32 %v5119_v47, 0.0  ;;  %v10928_v58 = vmax.f32 %v5134_v40, 0.0 }
 0x29c   : > { %v6002_v32 = vadd.f32 %v6001_v1, %v10798_v39  ;;  %v6939_v37 = vadd.f32 %v6938_v41, %v6908_v27  ;;  %v5129_v57 = vadd.f32 %v11179_v11, %v10756_v19  ;;  %v5144_v21 = vadd.f32 %v10645_v53, %v10773_v2 }
 0x29d   : > { %v5991_v33 = vadd.f32 %v5990_v13, %v5989_v14  ;;  %v6910_v15 = vmul.f32 %v10811_v16, %v10811_v16  ;;  %5950 = vst [vmem:[%s9311_s14 + $0x198] sm:$0xff] %v10924_v50  ;;  %5949 = vst [vmem:[%s9311_s14 + $0x188] sm:$0xff] %v10926_v61  ;;  %v5139_v19 = vadd.f32 %v10650_v24, %v10768_v48 }
 0x29e   : > { %5952 = vst [vmem:[%s9311_s14 + $0x1b8] sm:$0xff] %v10928_v58  ;;  %v6003_v39 = vadd.f32 %v6002_v32, %v10811_v16  ;;  %v6940_v53 = vadd.f32 %v6939_v37, %v6909_v54  ;;  %v10946_v2 = vmax.f32 %v5129_v57, 0.0  ;;  %v10948_v14 = vmax.f32 %v5144_v21, 0.0 }
 0x29f   : > { %v10950_v10 = vmax.f32 %v5139_v19, 0.0  ;;  %v5154_v56 = vadd.f32 %v10750_v6, %v10783_v3  ;;  %v5149_v25 = vadd.f32 %v10762_v30, %v10776_v35  ;;  %v6911_v24 = vmul.f32 %v10805_v20, %v10805_v20 }
 0x2a0   : > { %v6004_v48 = vadd.f32 %v6003_v39, %v10805_v20  ;;  %v6941_v16 = vadd.f32 %v6940_v53, %v6910_v15  ;;  %5951 = vst [vmem:[%s9311_s14 + $0x1a8] sm:$0xff] %v10946_v2  ;;  %5954 = vst [vmem:[%s9311_s14 + $0x1d8] sm:$0xff] %v10948_v14  ;;  %v6912_v43 = vmul.f32 %v10837_v34, %v10837_v34  ;;  %v5992_v7 = vrot.slane %v5991_v33, 1 }
 0x2a1   : > { %5953 = vst [vmem:[%s9311_s14 + $0x1c8] sm:$0xff] %v10950_v10  ;;  %v10967_v6 = vmax.f32 %v5154_v56, 0.0  ;;  %v10969_v3 = vmax.f32 %v5149_v25, 0.0  ;;  %v6897_v55 = vadd.f32 %v6896_v52, %v6895_v23  ;;  %v6913_v20 = vmul.f32 %v10833_v42, %v10833_v42 }
 0x2a2   : > { %v6942_v30 = vadd.f32 %v6941_v16, %v6911_v24  ;;  %v6005_v35 = vadd.f32 %v6004_v48, %v10837_v34  ;;  %v6914_v51 = vmul.f32 %v10844_v28, %v10844_v28  ;;  %v5993_v34 = vadd.f32 %v5992_v7, %v5991_v33 }
 0x2a3   : > { %5956 = vst [vmem:[%s9311_s14 + $0x1f8] sm:$0xff] %v10967_v6  ;;  %5955 = vst [vmem:[%s9311_s14 + $0x1e8] sm:$0xff] %v10969_v3  ;;  %v6898_v29 = vrot.slane %v6897_v55, 1  ;;  %v6915_v23 = vmul.f32 %v10840_v60, %v10840_v60  ;;  %v6919_v27 = vmul.f32 %v10881_v22, %v10881_v22  ;;  %v6920_v54 = vmul.f32 %v10901_v18, %v10901_v18 }
 0x2a4   : > { %v6006_v12 = vadd.f32 %v6005_v35, %v10833_v42  ;;  %v6943_v36 = vadd.f32 %v6942_v30, %v6912_v43  ;;  %v6916_v42 = vmul.f32 %v10869_v26, %v10869_v26  ;;  %v6922_v57 = vmul.f32 %v10905_v45, %v10905_v45 }
 0x2a5   : > { %v6899_v13 = vadd.f32 %v6898_v29, %v6897_v55  ;;  %v6924_v15 = vmul.f32 %v10926_v61, %v10926_v61  ;;  %v6926_v56 = vmul.f32 %v10946_v2, %v10946_v2  ;;  %v6928_v16 = vmul.f32 %v10950_v10, %v10950_v10 }
 0x2a6   : > { %v6007_v4 = vadd.f32 %v6006_v12, %v10844_v28  ;;  %v6944_v46 = vadd.f32 %v6943_v36, %v6913_v20  ;;  %v6917_v28 = vmul.f32 %v10863_v63, %v10863_v63  ;;  %v6930_v7 = vmul.f32 %v10969_v3, %v10969_v3 }
 0x2a7   : > { %v6971_v31 = vrot.slane %v6899_v13, 7 }
 0x2a8   : > { %v6008_v44 = vadd.f32 %v6007_v4, %v10840_v60  ;;  %v6945_v62 = vadd.f32 %v6944_v46, %v6914_v51  ;;  %v6918_v60 = vmul.f32 %v10883_v59, %v10883_v59 }
 0x2a9   : > { %v10989_v38 = vsel %vm1816_vm2, %v5993_v34, %v6971_v31 }
 0x2aa   : > { %v6009_v17 = vadd.f32 %v6008_v44, %v10869_v26  ;;  %v6946_v0 = vadd.f32 %v6945_v62, %v6915_v23 }
 0x2ac   : > { %v6010_v49 = vadd.f32 %v6009_v17, %v10863_v63  ;;  %v6947_v47 = vadd.f32 %v6946_v0, %v6916_v42  ;;  %v6921_v63 = vmul.f32 %v10885_v9, %v10885_v9 }
 0x2ae   : > { %v6011_v8 = vadd.f32 %v6010_v49, %v10883_v59  ;;  %v6948_v40 = vadd.f32 %v6947_v47, %v6917_v28 }
 0x2b0   : > { %v6949_v26 = vadd.f32 %v6948_v40, %v6918_v60  ;;  %v6012_v1 = vadd.f32 %v6011_v8, %v10881_v22  ;;  %v6923_v22 = vmul.f32 %v10903_v5, %v10903_v5 }
 0x2b2   : > { %v6013_v41 = vadd.f32 %v6012_v1, %v10901_v18  ;;  %v6950_v32 = vadd.f32 %v6949_v26, %v6919_v27 }
 0x2b4   : > { %v6951_v37 = vadd.f32 %v6950_v32, %v6920_v54  ;;  %v6014_v11 = vadd.f32 %v6013_v41, %v10885_v9  ;;  %v6925_v9 = vmul.f32 %v10924_v50, %v10924_v50 }
 0x2b6   : > { %v6015_v59 = vadd.f32 %v6014_v11, %v10905_v45  ;;  %v6952_v21 = vadd.f32 %v6951_v37, %v6921_v63 }
 0x2b8   : > { %v6953_v33 = vadd.f32 %v6952_v21, %v6922_v57  ;;  %v6016_v52 = vadd.f32 %v6015_v59, %v10903_v5  ;;  %v6927_v5 = vmul.f32 %v10928_v58, %v10928_v58 }
 0x2ba   : > { %v6017_v18 = vadd.f32 %v6016_v52, %v10926_v61  ;;  %v6954_v19 = vadd.f32 %v6953_v33, %v6923_v22 }
 0x2bc   : > { %v6955_v39 = vadd.f32 %v6954_v19, %v6924_v15  ;;  %v6018_v53 = vadd.f32 %v6017_v18, %v10924_v50  ;;  %v6929_v50 = vmul.f32 %v10948_v14, %v10948_v14 }
 0x2be   : > { %v6019_v45 = vadd.f32 %v6018_v53, %v10946_v2  ;;  %v6956_v25 = vadd.f32 %v6955_v39, %v6925_v9 }
 0x2c0   : > { %v6957_v24 = vadd.f32 %v6956_v25, %v6926_v56  ;;  %v6020_v48 = vadd.f32 %v6019_v45, %v10928_v58  ;;  %v6931_v58 = vmul.f32 %v10967_v6, %v10967_v6 }
 0x2c2   : > { %v6021_v61 = vadd.f32 %v6020_v48, %v10950_v10  ;;  %v6958_v43 = vadd.f32 %v6957_v24, %v6927_v5 }
 0x2c4   : > { %v6959_v30 = vadd.f32 %v6958_v43, %v6928_v16  ;;  %v6022_v35 = vadd.f32 %v6021_v61, %v10948_v14 }
 0x2c6   : > { %v6023_v2 = vadd.f32 %v6022_v35, %v10969_v3  ;;  %v6960_v55 = vadd.f32 %v6959_v30, %v6929_v50 }
 0x2c8   : > { %v6024_v20 = vadd.f32 %v6023_v2, %v10967_v6  ;;  %v6961_v10 = vadd.f32 %v6960_v55, %v6930_v7 }
 0x2ca   : > { %v6025_v12 = vrot.slane %v6024_v20, 4  ;;  %v6962_v36 = vadd.f32 %v6961_v10, %v6931_v58 }
 0x2cc   : > { %v6026_v29 = vadd.f32 %v6025_v12, %v6024_v20  ;;  %v6963_v51 = vrot.slane %v6962_v36, 4 }
 0x2ce   : > { %v6027_v4 = vrot.slane %v6026_v29, 2  ;;  %v6964_v46 = vadd.f32 %v6963_v51, %v6962_v36 }
 0x2d0   : > { %v6028_v14 = vadd.f32 %v6027_v4, %v6026_v29  ;;  %v6965_v34 = vrot.slane %v6964_v46, 2 }
 0x2d2   : > { %v6966_v13 = vadd.f32 %v6965_v34, %v6964_v46  ;;  %v6029_v23 = vrot.slane %v6028_v14, 1 }
 0x2d4   : > { %v6967_v44 = vrot.slane %v6966_v13, 1  ;;  %v6030_v62 = vadd.f32 %v6029_v23, %v6028_v14 }
 0x2d6   : > { %v6968_v3 = vadd.f32 %v6967_v44, %v6966_v13 }
 0x2d8   : > { %v6972_v31 = vrot.slane %v6968_v3, 7 }
 0x2da   : > { %v6976_v6 = vsel %vm1816_vm2, %v6030_v62, %v6972_v31 }
 0x2db   : > { %v6979_v42 = vcombine.low %v10989_v38, %v6976_v6 }
 0x2dd   : > { %7135 = vst.sshfl [vmem:[%s311_s21] sm:$0x33 pattern:$0x76325410] %v6979_v42 }
 0x2de PF: > { %s18_s24 = sadd.s32 1, %s7870_s24  }
 0x2df   : > { %p15_p4 = scmp.ge.s32.totalorder %s18_s24, 4  }
 0x2e1   :  { %17 = sbr.rel (!%p15_p4) target bundleno = 1 (0x1), region = 91 }

</bundles_post_ra>
